<compile_context>
chip_gen: v5e
topology: v5e:2x2
jax: 0.10.0
libtpu: 0.0.40
codegen_flags: <defaults>
</compile_context>

<pallas_src>
import functools
import math

import jax
import jax.numpy as jnp
from jax import lax
from jax.experimental import pallas as pl
from jax.experimental.pallas import tpu as pltpu


_MASK_VALUE = -1e30  # large finite negative (equivalent to -inf after softmax)


# ------------------------------ kernel helpers ------------------------------

def _layer_norm(x, g, b, eps=1e-5):
    mu = jnp.mean(x, axis=-1, keepdims=True)
    var = jnp.mean((x - mu) ** 2, axis=-1, keepdims=True)
    return (x - mu) * lax.rsqrt(var + eps) * g + b


def _gelu_new(x):
    # HF "gelu_new": 0.5*x*(1+tanh(sqrt(2/pi)*(x + 0.044715*x^3)))
    c = math.sqrt(2.0 / math.pi)
    return 0.5 * x * (1.0 + jnp.tanh(c * (x + 0.044715 * x * x * x)))


# ------------------------------ the Pallas kernel ----------------------------

def gpt2_stack_kernel(x_ref, sidr_ref, posr_ref, sidc_ref, posc_ref, keyok_ref,
                      ln1g_ref, ln1b_ref, wqkv_ref, bqkv_ref, wproj_ref, bproj_ref,
                      ln2g_ref, ln2b_ref, wfc_ref, bfc_ref, wfp_ref, bfp_ref,
                      o_ref, *, num_layers, num_heads):
    """One grid step == one list entry, all layers unrolled.

    x_ref     : (N, D)  padded activations of this entry
    sidr/posr : (N, 1)  per-query series id / position (f32)
    sidc/posc : (1, N)  per-key   series id / position (f32)
    keyok     : (1, N)  key validity (1.0 valid, 0.0 padded)
    weights   : full stacked parameters (leading L axis), resident in VMEM
    """
    N, D = x_ref.shape
    H = num_heads
    hd = D // H

    # ---- additive attention bias, built once per entry (same-series & causal
    # ---- & key-valid).  Pure VPU compares/selects, no (N,N) HBM traffic.
    sid_r = sidr_ref[...]                       # (N, 1)
    pos_r = posr_ref[...]                       # (N, 1)
    sid_c = sidc_ref[...]                       # (1, N)
    pos_c = posc_ref[...]                       # (1, N)
    key_c = keyok_ref[...]                      # (1, N)
    allowed = (sid_r == sid_c) & (pos_c <= pos_r) & (key_c > 0.5)
    bias = jnp.where(allowed, 0.0, _MASK_VALUE).astype(jnp.float32)   # (N, N)

    x = x_ref[...].astype(jnp.float32)          # (N, D) f32 resident activation

    for layer in range(num_layers):             # L=2, fully unrolled
        # ---------------- attention ----------------
        h = _layer_norm(x, ln1g_ref[layer], ln1b_ref[layer])          # (N, D)
        # fused QKV projection: one lane-dense (N,D)@(D,3D) matmul.
        # 1/sqrt(hd) is pre-folded into the Q columns host-side.
        qkv = jnp.dot(h.astype(jnp.bfloat16), wqkv_ref[layer],
                      preferred_element_type=jnp.float32) + bqkv_ref[layer]  # (N, 3D)

        ctx_heads = []
        for hidx in range(H):                   # H=4, unrolled; static lane slices
            qh = qkv[:, hidx * hd:(hidx + 1) * hd].astype(jnp.bfloat16)
            kh = qkv[:, D + hidx * hd:D + (hidx + 1) * hd].astype(jnp.bfloat16)
            vh = qkv[:, 2 * D + hidx * hd:2 * D + (hidx + 1) * hd].astype(jnp.bfloat16)

            scores = lax.dot_general(qh, kh, (((1,), (1,)), ((), ())),
                                     preferred_element_type=jnp.float32) + bias
            m = jnp.max(scores, axis=-1, keepdims=True)
            e = jnp.exp(scores - m)
            denom = jnp.sum(e, axis=-1, keepdims=True)
            p = e * pl.reciprocal(denom, approx=True)                 # softmax
            ctx_heads.append(jnp.dot(p.astype(jnp.bfloat16), vh,
                                     preferred_element_type=jnp.float32))  # (N, hd)

        # fused output projection: one (N,D)@(D,D) matmul on the concatenated heads
        ctx = jnp.concatenate(ctx_heads, axis=-1).astype(jnp.bfloat16)       # (N, D)
        attn = jnp.dot(ctx, wproj_ref[layer],
                       preferred_element_type=jnp.float32) + bproj_ref[layer]
        x = x + attn                                                   # residual 1

        # ---------------- MLP ----------------
        h2 = _layer_norm(x, ln2g_ref[layer], ln2b_ref[layer])
        fc = jnp.dot(h2.astype(jnp.bfloat16), wfc_ref[layer],
                     preferred_element_type=jnp.float32) + bfc_ref[layer]
        fc = _gelu_new(fc)
        mlp = jnp.dot(fc.astype(jnp.bfloat16), wfp_ref[layer],
                      preferred_element_type=jnp.float32) + bfp_ref[layer]
        x = x + mlp                                                    # residual 2

    o_ref[...] = x.astype(o_ref.dtype)


# ------------------------------ wrapper --------------------------------------

_PARAM_ORDER = ("ln1_g", "ln1_b", "w_qkv", "b_qkv", "w_proj", "b_proj",
                "ln2_g", "ln2_b", "w_fc", "b_fc", "w_fp", "b_fp")


@functools.partial(jax.jit, static_argnames=("num_heads",))
def gpt2_stack_batched(x_pad, sid_r, pos_r, sid_c, pos_c, keyok, params, num_heads):
    """Run the full GPT-2 stack on all (padded, stacked) entries in one call."""
    E, N, D = x_pad.shape
    L = params["ln1_g"].shape[0]
    weights = [params[k] for k in _PARAM_ORDER]

    def entry_spec(a):           # per-entry block, entry axis squeezed
        return pl.BlockSpec((None,) + a.shape[1:], lambda e: (e, 0, 0))

    def weight_spec(w):          # whole stacked weight, constant index -> one DMA
        nd = w.ndim
        return pl.BlockSpec(w.shape, lambda e, _n=nd: (0,) * _n)

    in_specs = ([entry_spec(a) for a in (x_pad, sid_r, pos_r, sid_c, pos_c, keyok)]
                + [weight_spec(w) for w in weights])

    return pl.pallas_call(
        functools.partial(gpt2_stack_kernel, num_layers=L, num_heads=num_heads),
        out_shape=jax.ShapeDtypeStruct((E, N, D), x_pad.dtype),
        grid=(E,),
        in_specs=in_specs,
        out_specs=pl.BlockSpec((None, N, D), lambda e: (e, 0, 0)),
        compiler_params=pltpu.CompilerParams(
            dimension_semantics=("parallel",)),   # entries independent -> v7x 2 TCs
    )(x_pad, sid_r, pos_r, sid_c, pos_c, keyok, *weights)


def _pad_and_pack(numeric_embeddings_list, padding_masks):
    """Flatten each entry to (S*T, D), zero-pad to a common N_max and stack,
    plus per-token series-id / position / key-valid vectors for the in-kernel
    mask generation."""
    E = len(numeric_embeddings_list)
    D = numeric_embeddings_list[0].shape[2]
    Ns = [x.shape[0] * x.shape[1] for x in numeric_embeddings_list]
    N_max = max(Ns)
    N_max = -(-N_max // 8) * 8                       # sublane-align

    x_pad = jnp.zeros((E, N_max, D), jnp.float32)
    sid_r = jnp.full((E, N_max, 1), -1.0, jnp.float32)
    pos_r = jnp.zeros((E, N_max, 1), jnp.float32)
    sid_c = jnp.full((E, 1, N_max), -2.0, jnp.float32)
    pos_c = jnp.zeros((E, 1, N_max), jnp.float32)
    keyok = jnp.zeros((E, 1, N_max), jnp.float32)    # padded keys stay invalid

    for e, (x, pad) in enumerate(zip(numeric_embeddings_list, padding_masks)):
        S, T, _ = x.shape
        n = S * T
        sid = jnp.repeat(jnp.arange(S), T).astype(jnp.float32)
        pos = jnp.tile(jnp.arange(T), S).astype(jnp.float32)
        ok = pad.reshape(n).astype(jnp.float32)
        x_pad = x_pad.at[e, :n].set(x.astype(jnp.float32).reshape(n, D))
        sid_r = sid_r.at[e, :n, 0].set(sid)
        pos_r = pos_r.at[e, :n, 0].set(pos)
        sid_c = sid_c.at[e, 0, :n].set(sid)
        pos_c = pos_c.at[e, 0, :n].set(pos)
        keyok = keyok.at[e, 0, :n].set(ok)
    return x_pad, sid_r, pos_r, sid_c, pos_c, keyok


def tsf_transformer_forward(numeric_embeddings_list, padding_masks,
                            stacked_params, num_heads):
    x_pad, sid_r, pos_r, sid_c, pos_c, keyok = _pad_and_pack(
        numeric_embeddings_list, padding_masks)
    out = gpt2_stack_batched(x_pad, sid_r, pos_r, sid_c, pos_c, keyok,
                             stacked_params, num_heads)
    D = numeric_embeddings_list[0].shape[2]
    hidden_states = []
    for e, x in enumerate(numeric_embeddings_list):
        S, T, _ = x.shape
        hidden_states.append(out[e, :S * T].reshape(S, T, D))
    return hidden_states


# ------------------------------ parameter init / layout ----------------------

def init_gpt2_block_params(key, D):
    """Per-layer GPT-2 shaped parameters (Conv1D convention: W (in, out))."""
    k1, k2, k3, k4 = jax.random.split(key, 4)
    std = 0.02
    return dict(
        ln1_g=jnp.ones((D,), jnp.float32),
        ln1_b=jnp.zeros((D,), jnp.float32),
        w_qkv=(jax.random.normal(k1, (D, 3 * D)) * std).astype(jnp.float32),
        b_qkv=jnp.zeros((3 * D,), jnp.float32),
        w_proj=(jax.random.normal(k2, (D, D)) * std).astype(jnp.float32),
        b_proj=jnp.zeros((D,), jnp.float32),
        ln2_g=jnp.ones((D,), jnp.float32),
        ln2_b=jnp.zeros((D,), jnp.float32),
        w_fc=(jax.random.normal(k3, (D, 4 * D)) * std).astype(jnp.float32),
        b_fc=jnp.zeros((4 * D,), jnp.float32),
        w_fcproj=(jax.random.normal(k4, (4 * D, D)) * std).astype(jnp.float32),
        b_fcproj=jnp.zeros((D,), jnp.float32),
    )


def stack_layer_params(per_layer, D, num_heads):
    """Stack per-layer params with a leading L axis in the lane-dense layouts the
    kernel uses: fused (L,D,3D)/(L,D,D)/(L,D,4D)/(L,4D,D) bf16 matmul weights,
    attention scale folded into the Q columns, LN/bias params kept f32."""
    H = num_heads
    hd = D // H
    L = len(per_layer)
    scale = 1.0 / math.sqrt(hd)
    stack = lambda name: jnp.stack([p[name] for p in per_layer])

    w_qkv = stack("w_qkv")                                    # (L, D, 3D) f32
    b_qkv = stack("b_qkv")                                    # (L, 3D)    f32
    q_scale = jnp.concatenate(
        [jnp.full((D,), scale, jnp.float32), jnp.ones((2 * D,), jnp.float32)])
    w_qkv = w_qkv * q_scale[None, None, :]                    # fold 1/sqrt(hd) into Q
    b_qkv = b_qkv * q_scale[None, :]

    return dict(
        ln1_g=stack("ln1_g").reshape(L, 1, D),
        ln1_b=stack("ln1_b").reshape(L, 1, D),
        w_qkv=w_qkv.astype(jnp.bfloat16),                     # (L, D, 3D)
        b_qkv=b_qkv.reshape(L, 1, 3 * D).astype(jnp.float32),
        w_proj=stack("w_proj").astype(jnp.bfloat16),          # (L, D, D)
        b_proj=stack("b_proj").reshape(L, 1, D),
        ln2_g=stack("ln2_g").reshape(L, 1, D),
        ln2_b=stack("ln2_b").reshape(L, 1, D),
        w_fc=stack("w_fc").astype(jnp.bfloat16),              # (L, D, 4D)
        b_fc=stack("b_fc").reshape(L, 1, 4 * D),
        w_fp=stack("w_fcproj").astype(jnp.bfloat16),          # (L, 4D, D)
        b_fp=stack("b_fcproj").reshape(L, 1, D),
    )


# ------------------------------ main ------------------------------------------

if __name__ == "__main__":
    num_layers = 2
    num_heads = 4
    D = 64                                 # embedding_dim (n_embd)

    key = jax.random.PRNGKey(0)
    k_inputs, k_params = jax.random.split(key)

    # Two entries in the list, with different num_series / patch_size.
    k0, k1 = jax.random.split(k_inputs)
    x0 = jax.random.normal(k0, (2, 8, D), dtype=jnp.float32)   # (num_series, patch, D)
    x1 = jax.random.normal(k1, (3, 16, D), dtype=jnp.float32)
    numeric_embeddings_list = [x0, x1]

    # Padding masks (True = valid). Trailing padding.
    pad0 = jnp.ones((2, 8), dtype=bool)
    lens = jnp.array([16, 12, 10])
    pad1 = jnp.arange(16)[None, :] < lens[:, None]
    padding_masks = [pad0, pad1]

    # Deterministic per-layer parameters (GPT2Block shapes, synthetic init),
    # stacked/re-laid-out once for the fused kernel.
    layer_keys = jax.random.split(k_params, num_layers)
    per_layer = [init_gpt2_block_params(lk, D) for lk in layer_keys]
    stacked = stack_layer_params(per_layer, D, num_heads)

    outs = tsf_transformer_forward(numeric_embeddings_list, padding_masks,
                                   stacked, num_heads)
    outs = [jax.block_until_ready(o) for o in outs]

    assert outs[0].shape == (2, 8, D) and outs[1].shape == (3, 16, D)
    assert all(bool(jnp.all(jnp.isfinite(o))) for o in outs)
    print("KERNEL_OK")
</pallas_src>

<mosaic_0001>
module attributes {stable_mosaic.version = 11 : i64} {
  func.func @gpt2_stack_kernel(%arg0: i32, %arg1: memref<1x48x64xf32, #tpu.memory_space<vmem>>, %arg2: memref<1x48x1xf32, #tpu.memory_space<vmem>>, %arg3: memref<1x48x1xf32, #tpu.memory_space<vmem>>, %arg4: memref<1x1x48xf32, #tpu.memory_space<vmem>>, %arg5: memref<1x1x48xf32, #tpu.memory_space<vmem>>, %arg6: memref<1x1x48xf32, #tpu.memory_space<vmem>>, %arg7: memref<2x1x64xf32, #tpu.memory_space<vmem>>, %arg8: memref<2x1x64xf32, #tpu.memory_space<vmem>>, %arg9: memref<2x64x192xbf16, #tpu.memory_space<vmem>>, %arg10: memref<2x1x192xf32, #tpu.memory_space<vmem>>, %arg11: memref<2x64x64xbf16, #tpu.memory_space<vmem>>, %arg12: memref<2x1x64xf32, #tpu.memory_space<vmem>>, %arg13: memref<2x1x64xf32, #tpu.memory_space<vmem>>, %arg14: memref<2x1x64xf32, #tpu.memory_space<vmem>>, %arg15: memref<2x64x256xbf16, #tpu.memory_space<vmem>>, %arg16: memref<2x1x256xf32, #tpu.memory_space<vmem>>, %arg17: memref<2x256x64xbf16, #tpu.memory_space<vmem>>, %arg18: memref<2x1x64xf32, #tpu.memory_space<vmem>>, %arg19: memref<1x48x64xf32, #tpu.memory_space<vmem>>) attributes {dimension_semantics = [#tpu.dimension_semantics<parallel>], iteration_bounds = array<i64: 2>, scalar_prefetch = 0 : i64, scratch_operands = 0 : i64, tpu.core_type = #tpu.core_type<tc>, window_params = [{transform_indices = @transform_0, window_bounds = array<i64: 1, 48, 64>}, {transform_indices = @transform_1, window_bounds = array<i64: 1, 48, 1>}, {transform_indices = @transform_2, window_bounds = array<i64: 1, 48, 1>}, {transform_indices = @transform_3, window_bounds = array<i64: 1, 1, 48>}, {transform_indices = @transform_4, window_bounds = array<i64: 1, 1, 48>}, {transform_indices = @transform_5, window_bounds = array<i64: 1, 1, 48>}, {pipeline_mode = #tpu.pipeline_mode<synchronous>, transform_indices = @transform_6, window_bounds = array<i64: 2, 1, 64>}, {pipeline_mode = #tpu.pipeline_mode<synchronous>, transform_indices = @transform_7, window_bounds = array<i64: 2, 1, 64>}, {pipeline_mode = #tpu.pipeline_mode<synchronous>, transform_indices = @transform_8, window_bounds = array<i64: 2, 64, 192>}, {pipeline_mode = #tpu.pipeline_mode<synchronous>, transform_indices = @transform_9, window_bounds = array<i64: 2, 1, 192>}, {pipeline_mode = #tpu.pipeline_mode<synchronous>, transform_indices = @transform_10, window_bounds = array<i64: 2, 64, 64>}, {pipeline_mode = #tpu.pipeline_mode<synchronous>, transform_indices = @transform_11, window_bounds = array<i64: 2, 1, 64>}, {pipeline_mode = #tpu.pipeline_mode<synchronous>, transform_indices = @transform_12, window_bounds = array<i64: 2, 1, 64>}, {pipeline_mode = #tpu.pipeline_mode<synchronous>, transform_indices = @transform_13, window_bounds = array<i64: 2, 1, 64>}, {pipeline_mode = #tpu.pipeline_mode<synchronous>, transform_indices = @transform_14, window_bounds = array<i64: 2, 64, 256>}, {pipeline_mode = #tpu.pipeline_mode<synchronous>, transform_indices = @transform_15, window_bounds = array<i64: 2, 1, 256>}, {pipeline_mode = #tpu.pipeline_mode<synchronous>, transform_indices = @transform_16, window_bounds = array<i64: 2, 256, 64>}, {pipeline_mode = #tpu.pipeline_mode<synchronous>, transform_indices = @transform_17, window_bounds = array<i64: 2, 1, 64>}, {transform_indices = @transform_18, window_bounds = array<i64: 1, 48, 64>}]} {
    %c0 = arith.constant 0 : index
    %c0_0 = arith.constant 0 : index
    %c0_1 = arith.constant 0 : index
    %0 = vector.load %arg2[%c0, %c0_0, %c0_1] : memref<1x48x1xf32, #tpu.memory_space<vmem>>, vector<1x48x1xf32>
    %1 = vector.shape_cast %0 : vector<1x48x1xf32> to vector<48x1xf32>
    %c0_2 = arith.constant 0 : index
    %c0_3 = arith.constant 0 : index
    %c0_4 = arith.constant 0 : index
    %2 = vector.load %arg3[%c0_2, %c0_3, %c0_4] : memref<1x48x1xf32, #tpu.memory_space<vmem>>, vector<1x48x1xf32>
    %3 = vector.shape_cast %2 : vector<1x48x1xf32> to vector<48x1xf32>
    %c0_5 = arith.constant 0 : index
    %c0_6 = arith.constant 0 : index
    %c0_7 = arith.constant 0 : index
    %4 = vector.load %arg4[%c0_5, %c0_6, %c0_7] : memref<1x1x48xf32, #tpu.memory_space<vmem>>, vector<1x1x48xf32>
    %5 = vector.shape_cast %4 : vector<1x1x48xf32> to vector<1x48xf32>
    %c0_8 = arith.constant 0 : index
    %c0_9 = arith.constant 0 : index
    %c0_10 = arith.constant 0 : index
    %6 = vector.load %arg5[%c0_8, %c0_9, %c0_10] : memref<1x1x48xf32, #tpu.memory_space<vmem>>, vector<1x1x48xf32>
    %7 = vector.shape_cast %6 : vector<1x1x48xf32> to vector<1x48xf32>
    %c0_11 = arith.constant 0 : index
    %c0_12 = arith.constant 0 : index
    %c0_13 = arith.constant 0 : index
    %8 = vector.load %arg6[%c0_11, %c0_12, %c0_13] : memref<1x1x48xf32, #tpu.memory_space<vmem>>, vector<1x1x48xf32>
    %9 = vector.shape_cast %8 : vector<1x1x48xf32> to vector<1x48xf32>
    %10 = vector.broadcast %1 : vector<48x1xf32> to vector<48x48xf32>
    %11 = vector.broadcast %5 : vector<1x48xf32> to vector<48x48xf32>
    %12 = arith.cmpf oeq, %10, %11 : vector<48x48xf32>
    %13 = vector.broadcast %7 : vector<1x48xf32> to vector<48x48xf32>
    %14 = vector.broadcast %3 : vector<48x1xf32> to vector<48x48xf32>
    %15 = arith.cmpf ole, %13, %14 : vector<48x48xf32>
    %16 = arith.andi %12, %15 : vector<48x48xi1>
    %cst = arith.constant 5.000000e-01 : f32
    %17 = vector.broadcast %cst : f32 to vector<1x48xf32>
    %18 = arith.cmpf ogt, %9, %17 : vector<1x48xf32>
    %19 = vector.broadcast %18 : vector<1x48xi1> to vector<48x48xi1>
    %20 = arith.andi %16, %19 : vector<48x48xi1>
    %cst_14 = arith.constant 0.000000e+00 : f32
    %cst_15 = arith.constant -1.000000e+30 : f32
    %21 = vector.broadcast %cst_14 : f32 to vector<48x48xf32>
    %22 = vector.broadcast %cst_15 : f32 to vector<48x48xf32>
    %23 = arith.select %20, %21, %22 : vector<48x48xi1>, vector<48x48xf32>
    %c0_16 = arith.constant 0 : index
    %c0_17 = arith.constant 0 : index
    %c0_18 = arith.constant 0 : index
    %24 = vector.load %arg1[%c0_16, %c0_17, %c0_18] : memref<1x48x64xf32, #tpu.memory_space<vmem>>, vector<1x48x64xf32>
    %25 = vector.shape_cast %24 : vector<1x48x64xf32> to vector<48x64xf32>
    %c0_19 = arith.constant 0 : index
    %c0_20 = arith.constant 0 : index
    %c0_21 = arith.constant 0 : index
    %26 = vector.load %arg7[%c0_19, %c0_20, %c0_21] : memref<2x1x64xf32, #tpu.memory_space<vmem>>, vector<1x1x64xf32>
    %27 = vector.shape_cast %26 : vector<1x1x64xf32> to vector<1x64xf32>
    %c0_22 = arith.constant 0 : index
    %c0_23 = arith.constant 0 : index
    %c0_24 = arith.constant 0 : index
    %28 = vector.load %arg8[%c0_22, %c0_23, %c0_24] : memref<2x1x64xf32, #tpu.memory_space<vmem>>, vector<1x1x64xf32>
    %29 = vector.shape_cast %28 : vector<1x1x64xf32> to vector<1x64xf32>
    %cst_25 = arith.constant dense<0.000000e+00> : vector<48xf32>
    %30 = vector.multi_reduction <add>, %25, %cst_25 [1] : vector<48x64xf32> to vector<48xf32>
    %31 = vector.shape_cast %30 : vector<48xf32> to vector<48x1xf32>
    %cst_26 = arith.constant 6.400000e+01 : f32
    %32 = vector.broadcast %cst_26 : f32 to vector<48x1xf32>
    %33 = arith.divf %31, %32 : vector<48x1xf32>
    %34 = vector.broadcast %33 : vector<48x1xf32> to vector<48x64xf32>
    %35 = arith.subf %25, %34 : vector<48x64xf32>
    %36 = arith.mulf %35, %35 : vector<48x64xf32>
    %cst_27 = arith.constant dense<0.000000e+00> : vector<48xf32>
    %37 = vector.multi_reduction <add>, %36, %cst_27 [1] : vector<48x64xf32> to vector<48xf32>
    %38 = vector.shape_cast %37 : vector<48xf32> to vector<48x1xf32>
    %cst_28 = arith.constant 6.400000e+01 : f32
    %39 = vector.broadcast %cst_28 : f32 to vector<48x1xf32>
    %40 = arith.divf %38, %39 : vector<48x1xf32>
    %41 = vector.broadcast %33 : vector<48x1xf32> to vector<48x64xf32>
    %42 = arith.subf %25, %41 : vector<48x64xf32>
    %cst_29 = arith.constant 9.99999974E-6 : f32
    %43 = vector.broadcast %cst_29 : f32 to vector<48x1xf32>
    %44 = arith.addf %40, %43 : vector<48x1xf32>
    %45 = math.rsqrt %44 : vector<48x1xf32>
    %46 = vector.broadcast %45 : vector<48x1xf32> to vector<48x64xf32>
    %47 = arith.mulf %42, %46 : vector<48x64xf32>
    %48 = vector.broadcast %27 : vector<1x64xf32> to vector<48x64xf32>
    %49 = arith.mulf %47, %48 : vector<48x64xf32>
    %50 = vector.broadcast %29 : vector<1x64xf32> to vector<48x64xf32>
    %51 = arith.addf %49, %50 : vector<48x64xf32>
    %52 = arith.truncf %51 : vector<48x64xf32> to vector<48x64xbf16>
    %c0_30 = arith.constant 0 : index
    %c0_31 = arith.constant 0 : index
    %c0_32 = arith.constant 0 : index
    %53 = vector.load %arg9[%c0_30, %c0_31, %c0_32] : memref<2x64x192xbf16, #tpu.memory_space<vmem>>, vector<1x64x192xbf16>
    %54 = vector.shape_cast %53 : vector<1x64x192xbf16> to vector<64x192xbf16>
    %cst_33 = arith.constant dense<0.000000e+00> : vector<48x192xf32>
    %55 = tpu.matmul %52, %54, %cst_33 {dimension_numbers = #tpu.dot_dimension_numbers<[1], [0], [0], [1], [0, 0, 1, 1], [], []>} : vector<48x64xbf16>, vector<64x192xbf16>, vector<48x192xf32> -> vector<48x192xf32>
    %c0_34 = arith.constant 0 : index
    %c0_35 = arith.constant 0 : index
    %c0_36 = arith.constant 0 : index
    %56 = vector.load %arg10[%c0_34, %c0_35, %c0_36] : memref<2x1x192xf32, #tpu.memory_space<vmem>>, vector<1x1x192xf32>
    %57 = vector.shape_cast %56 : vector<1x1x192xf32> to vector<1x192xf32>
    %58 = vector.broadcast %57 : vector<1x192xf32> to vector<48x192xf32>
    %59 = arith.addf %55, %58 : vector<48x192xf32>
    %60 = vector.extract_strided_slice %59 {offsets = [0, 0], sizes = [48, 16], strides = [1, 1]} : vector<48x192xf32> to vector<48x16xf32>
    %61 = arith.truncf %60 : vector<48x16xf32> to vector<48x16xbf16>
    %62 = vector.extract_strided_slice %59 {offsets = [0, 64], sizes = [48, 16], strides = [1, 1]} : vector<48x192xf32> to vector<48x16xf32>
    %63 = arith.truncf %62 : vector<48x16xf32> to vector<48x16xbf16>
    %64 = vector.extract_strided_slice %59 {offsets = [0, 128], sizes = [48, 16], strides = [1, 1]} : vector<48x192xf32> to vector<48x16xf32>
    %65 = arith.truncf %64 : vector<48x16xf32> to vector<48x16xbf16>
    %cst_37 = arith.constant dense<0.000000e+00> : vector<48x48xf32>
    %66 = tpu.matmul %61, %63, %cst_37 {dimension_numbers = #tpu.dot_dimension_numbers<[1], [1], [0], [0], [0, 0, 1, 0], [], []>} : vector<48x16xbf16>, vector<48x16xbf16>, vector<48x48xf32> -> vector<48x48xf32>
    %67 = arith.addf %66, %23 : vector<48x48xf32>
    %cst_38 = arith.constant dense<0xFF800000> : vector<48xf32>
    %68 = vector.multi_reduction <maximumf>, %67, %cst_38 [1] : vector<48x48xf32> to vector<48xf32>
    %69 = vector.shape_cast %68 : vector<48xf32> to vector<48x1xf32>
    %70 = vector.broadcast %69 : vector<48x1xf32> to vector<48x48xf32>
    %71 = arith.subf %67, %70 : vector<48x48xf32>
    %72 = math.exp %71 : vector<48x48xf32>
    %cst_39 = arith.constant dense<0.000000e+00> : vector<48xf32>
    %73 = vector.multi_reduction <add>, %72, %cst_39 [1] : vector<48x48xf32> to vector<48xf32>
    %74 = vector.shape_cast %73 : vector<48xf32> to vector<48x1xf32>
    %75 = tpu.reciprocal %74 {approx = true} : vector<48x1xf32> -> vector<48x1xf32>
    %76 = vector.broadcast %75 : vector<48x1xf32> to vector<48x48xf32>
    %77 = arith.mulf %72, %76 : vector<48x48xf32>
    %78 = arith.truncf %77 : vector<48x48xf32> to vector<48x48xbf16>
    %cst_40 = arith.constant dense<0.000000e+00> : vector<48x16xf32>
    %79 = tpu.matmul %78, %65, %cst_40 {dimension_numbers = #tpu.dot_dimension_numbers<[1], [0], [0], [1], [0, 0, 1, 1], [], []>} : vector<48x48xbf16>, vector<48x16xbf16>, vector<48x16xf32> -> vector<48x16xf32>
    %80 = vector.extract_strided_slice %59 {offsets = [0, 16], sizes = [48, 16], strides = [1, 1]} : vector<48x192xf32> to vector<48x16xf32>
    %81 = arith.truncf %80 : vector<48x16xf32> to vector<48x16xbf16>
    %82 = vector.extract_strided_slice %59 {offsets = [0, 80], sizes = [48, 16], strides = [1, 1]} : vector<48x192xf32> to vector<48x16xf32>
    %83 = arith.truncf %82 : vector<48x16xf32> to vector<48x16xbf16>
    %84 = vector.extract_strided_slice %59 {offsets = [0, 144], sizes = [48, 16], strides = [1, 1]} : vector<48x192xf32> to vector<48x16xf32>
    %85 = arith.truncf %84 : vector<48x16xf32> to vector<48x16xbf16>
    %cst_41 = arith.constant dense<0.000000e+00> : vector<48x48xf32>
    %86 = tpu.matmul %81, %83, %cst_41 {dimension_numbers = #tpu.dot_dimension_numbers<[1], [1], [0], [0], [0, 0, 1, 0], [], []>} : vector<48x16xbf16>, vector<48x16xbf16>, vector<48x48xf32> -> vector<48x48xf32>
    %87 = arith.addf %86, %23 : vector<48x48xf32>
    %cst_42 = arith.constant dense<0xFF800000> : vector<48xf32>
    %88 = vector.multi_reduction <maximumf>, %87, %cst_42 [1] : vector<48x48xf32> to vector<48xf32>
    %89 = vector.shape_cast %88 : vector<48xf32> to vector<48x1xf32>
    %90 = vector.broadcast %89 : vector<48x1xf32> to vector<48x48xf32>
    %91 = arith.subf %87, %90 : vector<48x48xf32>
    %92 = math.exp %91 : vector<48x48xf32>
    %cst_43 = arith.constant dense<0.000000e+00> : vector<48xf32>
    %93 = vector.multi_reduction <add>, %92, %cst_43 [1] : vector<48x48xf32> to vector<48xf32>
    %94 = vector.shape_cast %93 : vector<48xf32> to vector<48x1xf32>
    %95 = tpu.reciprocal %94 {approx = true} : vector<48x1xf32> -> vector<48x1xf32>
    %96 = vector.broadcast %95 : vector<48x1xf32> to vector<48x48xf32>
    %97 = arith.mulf %92, %96 : vector<48x48xf32>
    %98 = arith.truncf %97 : vector<48x48xf32> to vector<48x48xbf16>
    %cst_44 = arith.constant dense<0.000000e+00> : vector<48x16xf32>
    %99 = tpu.matmul %98, %85, %cst_44 {dimension_numbers = #tpu.dot_dimension_numbers<[1], [0], [0], [1], [0, 0, 1, 1], [], []>} : vector<48x48xbf16>, vector<48x16xbf16>, vector<48x16xf32> -> vector<48x16xf32>
    %100 = vector.extract_strided_slice %59 {offsets = [0, 32], sizes = [48, 16], strides = [1, 1]} : vector<48x192xf32> to vector<48x16xf32>
    %101 = arith.truncf %100 : vector<48x16xf32> to vector<48x16xbf16>
    %102 = vector.extract_strided_slice %59 {offsets = [0, 96], sizes = [48, 16], strides = [1, 1]} : vector<48x192xf32> to vector<48x16xf32>
    %103 = arith.truncf %102 : vector<48x16xf32> to vector<48x16xbf16>
    %104 = vector.extract_strided_slice %59 {offsets = [0, 160], sizes = [48, 16], strides = [1, 1]} : vector<48x192xf32> to vector<48x16xf32>
    %105 = arith.truncf %104 : vector<48x16xf32> to vector<48x16xbf16>
    %cst_45 = arith.constant dense<0.000000e+00> : vector<48x48xf32>
    %106 = tpu.matmul %101, %103, %cst_45 {dimension_numbers = #tpu.dot_dimension_numbers<[1], [1], [0], [0], [0, 0, 1, 0], [], []>} : vector<48x16xbf16>, vector<48x16xbf16>, vector<48x48xf32> -> vector<48x48xf32>
    %107 = arith.addf %106, %23 : vector<48x48xf32>
    %cst_46 = arith.constant dense<0xFF800000> : vector<48xf32>
    %108 = vector.multi_reduction <maximumf>, %107, %cst_46 [1] : vector<48x48xf32> to vector<48xf32>
    %109 = vector.shape_cast %108 : vector<48xf32> to vector<48x1xf32>
    %110 = vector.broadcast %109 : vector<48x1xf32> to vector<48x48xf32>
    %111 = arith.subf %107, %110 : vector<48x48xf32>
    %112 = math.exp %111 : vector<48x48xf32>
    %cst_47 = arith.constant dense<0.000000e+00> : vector<48xf32>
    %113 = vector.multi_reduction <add>, %112, %cst_47 [1] : vector<48x48xf32> to vector<48xf32>
    %114 = vector.shape_cast %113 : vector<48xf32> to vector<48x1xf32>
    %115 = tpu.reciprocal %114 {approx = true} : vector<48x1xf32> -> vector<48x1xf32>
    %116 = vector.broadcast %115 : vector<48x1xf32> to vector<48x48xf32>
    %117 = arith.mulf %112, %116 : vector<48x48xf32>
    %118 = arith.truncf %117 : vector<48x48xf32> to vector<48x48xbf16>
    %cst_48 = arith.constant dense<0.000000e+00> : vector<48x16xf32>
    %119 = tpu.matmul %118, %105, %cst_48 {dimension_numbers = #tpu.dot_dimension_numbers<[1], [0], [0], [1], [0, 0, 1, 1], [], []>} : vector<48x48xbf16>, vector<48x16xbf16>, vector<48x16xf32> -> vector<48x16xf32>
    %120 = vector.extract_strided_slice %59 {offsets = [0, 48], sizes = [48, 16], strides = [1, 1]} : vector<48x192xf32> to vector<48x16xf32>
    %121 = arith.truncf %120 : vector<48x16xf32> to vector<48x16xbf16>
    %122 = vector.extract_strided_slice %59 {offsets = [0, 112], sizes = [48, 16], strides = [1, 1]} : vector<48x192xf32> to vector<48x16xf32>
    %123 = arith.truncf %122 : vector<48x16xf32> to vector<48x16xbf16>
    %124 = vector.extract_strided_slice %59 {offsets = [0, 176], sizes = [48, 16], strides = [1, 1]} : vector<48x192xf32> to vector<48x16xf32>
    %125 = arith.truncf %124 : vector<48x16xf32> to vector<48x16xbf16>
    %cst_49 = arith.constant dense<0.000000e+00> : vector<48x48xf32>
    %126 = tpu.matmul %121, %123, %cst_49 {dimension_numbers = #tpu.dot_dimension_numbers<[1], [1], [0], [0], [0, 0, 1, 0], [], []>} : vector<48x16xbf16>, vector<48x16xbf16>, vector<48x48xf32> -> vector<48x48xf32>
    %127 = arith.addf %126, %23 : vector<48x48xf32>
    %cst_50 = arith.constant dense<0xFF800000> : vector<48xf32>
    %128 = vector.multi_reduction <maximumf>, %127, %cst_50 [1] : vector<48x48xf32> to vector<48xf32>
    %129 = vector.shape_cast %128 : vector<48xf32> to vector<48x1xf32>
    %130 = vector.broadcast %129 : vector<48x1xf32> to vector<48x48xf32>
    %131 = arith.subf %127, %130 : vector<48x48xf32>
    %132 = math.exp %131 : vector<48x48xf32>
    %cst_51 = arith.constant dense<0.000000e+00> : vector<48xf32>
    %133 = vector.multi_reduction <add>, %132, %cst_51 [1] : vector<48x48xf32> to vector<48xf32>
    %134 = vector.shape_cast %133 : vector<48xf32> to vector<48x1xf32>
    %135 = tpu.reciprocal %134 {approx = true} : vector<48x1xf32> -> vector<48x1xf32>
    %136 = vector.broadcast %135 : vector<48x1xf32> to vector<48x48xf32>
    %137 = arith.mulf %132, %136 : vector<48x48xf32>
    %138 = arith.truncf %137 : vector<48x48xf32> to vector<48x48xbf16>
    %cst_52 = arith.constant dense<0.000000e+00> : vector<48x16xf32>
    %139 = tpu.matmul %138, %125, %cst_52 {dimension_numbers = #tpu.dot_dimension_numbers<[1], [0], [0], [1], [0, 0, 1, 1], [], []>} : vector<48x48xbf16>, vector<48x16xbf16>, vector<48x16xf32> -> vector<48x16xf32>
    %140 = tpu.concatenate %79, %99, %119, %139 in 1 : vector<48x16xf32>, vector<48x16xf32>, vector<48x16xf32>, vector<48x16xf32> -> vector<48x64xf32>
    %141 = arith.truncf %140 : vector<48x64xf32> to vector<48x64xbf16>
    %c0_53 = arith.constant 0 : index
    %c0_54 = arith.constant 0 : index
    %c0_55 = arith.constant 0 : index
    %142 = vector.load %arg11[%c0_53, %c0_54, %c0_55] : memref<2x64x64xbf16, #tpu.memory_space<vmem>>, vector<1x64x64xbf16>
    %143 = vector.shape_cast %142 : vector<1x64x64xbf16> to vector<64x64xbf16>
    %cst_56 = arith.constant dense<0.000000e+00> : vector<48x64xf32>
    %144 = tpu.matmul %141, %143, %cst_56 {dimension_numbers = #tpu.dot_dimension_numbers<[1], [0], [0], [1], [0, 0, 1, 1], [], []>} : vector<48x64xbf16>, vector<64x64xbf16>, vector<48x64xf32> -> vector<48x64xf32>
    %c0_57 = arith.constant 0 : index
    %c0_58 = arith.constant 0 : index
    %c0_59 = arith.constant 0 : index
    %145 = vector.load %arg12[%c0_57, %c0_58, %c0_59] : memref<2x1x64xf32, #tpu.memory_space<vmem>>, vector<1x1x64xf32>
    %146 = vector.shape_cast %145 : vector<1x1x64xf32> to vector<1x64xf32>
    %147 = vector.broadcast %146 : vector<1x64xf32> to vector<48x64xf32>
    %148 = arith.addf %144, %147 : vector<48x64xf32>
    %149 = arith.addf %25, %148 : vector<48x64xf32>
    %c0_60 = arith.constant 0 : index
    %c0_61 = arith.constant 0 : index
    %c0_62 = arith.constant 0 : index
    %150 = vector.load %arg13[%c0_60, %c0_61, %c0_62] : memref<2x1x64xf32, #tpu.memory_space<vmem>>, vector<1x1x64xf32>
    %151 = vector.shape_cast %150 : vector<1x1x64xf32> to vector<1x64xf32>
    %c0_63 = arith.constant 0 : index
    %c0_64 = arith.constant 0 : index
    %c0_65 = arith.constant 0 : index
    %152 = vector.load %arg14[%c0_63, %c0_64, %c0_65] : memref<2x1x64xf32, #tpu.memory_space<vmem>>, vector<1x1x64xf32>
    %153 = vector.shape_cast %152 : vector<1x1x64xf32> to vector<1x64xf32>
    %cst_66 = arith.constant dense<0.000000e+00> : vector<48xf32>
    %154 = vector.multi_reduction <add>, %149, %cst_66 [1] : vector<48x64xf32> to vector<48xf32>
    %155 = vector.shape_cast %154 : vector<48xf32> to vector<48x1xf32>
    %cst_67 = arith.constant 6.400000e+01 : f32
    %156 = vector.broadcast %cst_67 : f32 to vector<48x1xf32>
    %157 = arith.divf %155, %156 : vector<48x1xf32>
    %158 = vector.broadcast %157 : vector<48x1xf32> to vector<48x64xf32>
    %159 = arith.subf %149, %158 : vector<48x64xf32>
    %160 = arith.mulf %159, %159 : vector<48x64xf32>
    %cst_68 = arith.constant dense<0.000000e+00> : vector<48xf32>
    %161 = vector.multi_reduction <add>, %160, %cst_68 [1] : vector<48x64xf32> to vector<48xf32>
    %162 = vector.shape_cast %161 : vector<48xf32> to vector<48x1xf32>
    %cst_69 = arith.constant 6.400000e+01 : f32
    %163 = vector.broadcast %cst_69 : f32 to vector<48x1xf32>
    %164 = arith.divf %162, %163 : vector<48x1xf32>
    %165 = vector.broadcast %157 : vector<48x1xf32> to vector<48x64xf32>
    %166 = arith.subf %149, %165 : vector<48x64xf32>
    %cst_70 = arith.constant 9.99999974E-6 : f32
    %167 = vector.broadcast %cst_70 : f32 to vector<48x1xf32>
    %168 = arith.addf %164, %167 : vector<48x1xf32>
    %169 = math.rsqrt %168 : vector<48x1xf32>
    %170 = vector.broadcast %169 : vector<48x1xf32> to vector<48x64xf32>
    %171 = arith.mulf %166, %170 : vector<48x64xf32>
    %172 = vector.broadcast %151 : vector<1x64xf32> to vector<48x64xf32>
    %173 = arith.mulf %171, %172 : vector<48x64xf32>
    %174 = vector.broadcast %153 : vector<1x64xf32> to vector<48x64xf32>
    %175 = arith.addf %173, %174 : vector<48x64xf32>
    %176 = arith.truncf %175 : vector<48x64xf32> to vector<48x64xbf16>
    %c0_71 = arith.constant 0 : index
    %c0_72 = arith.constant 0 : index
    %c0_73 = arith.constant 0 : index
    %177 = vector.load %arg15[%c0_71, %c0_72, %c0_73] : memref<2x64x256xbf16, #tpu.memory_space<vmem>>, vector<1x64x256xbf16>
    %178 = vector.shape_cast %177 : vector<1x64x256xbf16> to vector<64x256xbf16>
    %cst_74 = arith.constant dense<0.000000e+00> : vector<48x256xf32>
    %179 = tpu.matmul %176, %178, %cst_74 {dimension_numbers = #tpu.dot_dimension_numbers<[1], [0], [0], [1], [0, 0, 1, 1], [], []>} : vector<48x64xbf16>, vector<64x256xbf16>, vector<48x256xf32> -> vector<48x256xf32>
    %c0_75 = arith.constant 0 : index
    %c0_76 = arith.constant 0 : index
    %c0_77 = arith.constant 0 : index
    %180 = vector.load %arg16[%c0_75, %c0_76, %c0_77] : memref<2x1x256xf32, #tpu.memory_space<vmem>>, vector<1x1x256xf32>
    %181 = vector.shape_cast %180 : vector<1x1x256xf32> to vector<1x256xf32>
    %182 = vector.broadcast %181 : vector<1x256xf32> to vector<48x256xf32>
    %183 = arith.addf %179, %182 : vector<48x256xf32>
    %cst_78 = arith.constant 5.000000e-01 : f32
    %184 = vector.broadcast %cst_78 : f32 to vector<48x256xf32>
    %185 = arith.mulf %184, %183 : vector<48x256xf32>
    %cst_79 = arith.constant 4.471500e-02 : f32
    %186 = vector.broadcast %cst_79 : f32 to vector<48x256xf32>
    %187 = arith.mulf %186, %183 : vector<48x256xf32>
    %188 = arith.mulf %187, %183 : vector<48x256xf32>
    %189 = arith.mulf %188, %183 : vector<48x256xf32>
    %190 = arith.addf %183, %189 : vector<48x256xf32>
    %cst_80 = arith.constant 0.797884583 : f32
    %191 = vector.broadcast %cst_80 : f32 to vector<48x256xf32>
    %192 = arith.mulf %191, %190 : vector<48x256xf32>
    %193 = math.tanh %192 : vector<48x256xf32>
    %cst_81 = arith.constant 1.000000e+00 : f32
    %194 = vector.broadcast %cst_81 : f32 to vector<48x256xf32>
    %195 = arith.addf %194, %193 : vector<48x256xf32>
    %196 = arith.mulf %185, %195 : vector<48x256xf32>
    %197 = arith.truncf %196 : vector<48x256xf32> to vector<48x256xbf16>
    %c0_82 = arith.constant 0 : index
    %c0_83 = arith.constant 0 : index
    %c0_84 = arith.constant 0 : index
    %198 = vector.load %arg17[%c0_82, %c0_83, %c0_84] : memref<2x256x64xbf16, #tpu.memory_space<vmem>>, vector<1x256x64xbf16>
    %199 = vector.shape_cast %198 : vector<1x256x64xbf16> to vector<256x64xbf16>
    %cst_85 = arith.constant dense<0.000000e+00> : vector<48x64xf32>
    %200 = tpu.matmul %197, %199, %cst_85 {dimension_numbers = #tpu.dot_dimension_numbers<[1], [0], [0], [1], [0, 0, 1, 1], [], []>} : vector<48x256xbf16>, vector<256x64xbf16>, vector<48x64xf32> -> vector<48x64xf32>
    %c0_86 = arith.constant 0 : index
    %c0_87 = arith.constant 0 : index
    %c0_88 = arith.constant 0 : index
    %201 = vector.load %arg18[%c0_86, %c0_87, %c0_88] : memref<2x1x64xf32, #tpu.memory_space<vmem>>, vector<1x1x64xf32>
    %202 = vector.shape_cast %201 : vector<1x1x64xf32> to vector<1x64xf32>
    %203 = vector.broadcast %202 : vector<1x64xf32> to vector<48x64xf32>
    %204 = arith.addf %200, %203 : vector<48x64xf32>
    %205 = arith.addf %149, %204 : vector<48x64xf32>
    %c1 = arith.constant 1 : index
    %c0_89 = arith.constant 0 : index
    %c0_90 = arith.constant 0 : index
    %206 = vector.load %arg7[%c1, %c0_89, %c0_90] : memref<2x1x64xf32, #tpu.memory_space<vmem>>, vector<1x1x64xf32>
    %207 = vector.shape_cast %206 : vector<1x1x64xf32> to vector<1x64xf32>
    %c1_91 = arith.constant 1 : index
    %c0_92 = arith.constant 0 : index
    %c0_93 = arith.constant 0 : index
    %208 = vector.load %arg8[%c1_91, %c0_92, %c0_93] : memref<2x1x64xf32, #tpu.memory_space<vmem>>, vector<1x1x64xf32>
    %209 = vector.shape_cast %208 : vector<1x1x64xf32> to vector<1x64xf32>
    %cst_94 = arith.constant dense<0.000000e+00> : vector<48xf32>
    %210 = vector.multi_reduction <add>, %205, %cst_94 [1] : vector<48x64xf32> to vector<48xf32>
    %211 = vector.shape_cast %210 : vector<48xf32> to vector<48x1xf32>
    %cst_95 = arith.constant 6.400000e+01 : f32
    %212 = vector.broadcast %cst_95 : f32 to vector<48x1xf32>
    %213 = arith.divf %211, %212 : vector<48x1xf32>
    %214 = vector.broadcast %213 : vector<48x1xf32> to vector<48x64xf32>
    %215 = arith.subf %205, %214 : vector<48x64xf32>
    %216 = arith.mulf %215, %215 : vector<48x64xf32>
    %cst_96 = arith.constant dense<0.000000e+00> : vector<48xf32>
    %217 = vector.multi_reduction <add>, %216, %cst_96 [1] : vector<48x64xf32> to vector<48xf32>
    %218 = vector.shape_cast %217 : vector<48xf32> to vector<48x1xf32>
    %cst_97 = arith.constant 6.400000e+01 : f32
    %219 = vector.broadcast %cst_97 : f32 to vector<48x1xf32>
    %220 = arith.divf %218, %219 : vector<48x1xf32>
    %221 = vector.broadcast %213 : vector<48x1xf32> to vector<48x64xf32>
    %222 = arith.subf %205, %221 : vector<48x64xf32>
    %cst_98 = arith.constant 9.99999974E-6 : f32
    %223 = vector.broadcast %cst_98 : f32 to vector<48x1xf32>
    %224 = arith.addf %220, %223 : vector<48x1xf32>
    %225 = math.rsqrt %224 : vector<48x1xf32>
    %226 = vector.broadcast %225 : vector<48x1xf32> to vector<48x64xf32>
    %227 = arith.mulf %222, %226 : vector<48x64xf32>
    %228 = vector.broadcast %207 : vector<1x64xf32> to vector<48x64xf32>
    %229 = arith.mulf %227, %228 : vector<48x64xf32>
    %230 = vector.broadcast %209 : vector<1x64xf32> to vector<48x64xf32>
    %231 = arith.addf %229, %230 : vector<48x64xf32>
    %232 = arith.truncf %231 : vector<48x64xf32> to vector<48x64xbf16>
    %c1_99 = arith.constant 1 : index
    %c0_100 = arith.constant 0 : index
    %c0_101 = arith.constant 0 : index
    %233 = vector.load %arg9[%c1_99, %c0_100, %c0_101] : memref<2x64x192xbf16, #tpu.memory_space<vmem>>, vector<1x64x192xbf16>
    %234 = vector.shape_cast %233 : vector<1x64x192xbf16> to vector<64x192xbf16>
    %cst_102 = arith.constant dense<0.000000e+00> : vector<48x192xf32>
    %235 = tpu.matmul %232, %234, %cst_102 {dimension_numbers = #tpu.dot_dimension_numbers<[1], [0], [0], [1], [0, 0, 1, 1], [], []>} : vector<48x64xbf16>, vector<64x192xbf16>, vector<48x192xf32> -> vector<48x192xf32>
    %c1_103 = arith.constant 1 : index
    %c0_104 = arith.constant 0 : index
    %c0_105 = arith.constant 0 : index
    %236 = vector.load %arg10[%c1_103, %c0_104, %c0_105] : memref<2x1x192xf32, #tpu.memory_space<vmem>>, vector<1x1x192xf32>
    %237 = vector.shape_cast %236 : vector<1x1x192xf32> to vector<1x192xf32>
    %238 = vector.broadcast %237 : vector<1x192xf32> to vector<48x192xf32>
    %239 = arith.addf %235, %238 : vector<48x192xf32>
    %240 = vector.extract_strided_slice %239 {offsets = [0, 0], sizes = [48, 16], strides = [1, 1]} : vector<48x192xf32> to vector<48x16xf32>
    %241 = arith.truncf %240 : vector<48x16xf32> to vector<48x16xbf16>
    %242 = vector.extract_strided_slice %239 {offsets = [0, 64], sizes = [48, 16], strides = [1, 1]} : vector<48x192xf32> to vector<48x16xf32>
    %243 = arith.truncf %242 : vector<48x16xf32> to vector<48x16xbf16>
    %244 = vector.extract_strided_slice %239 {offsets = [0, 128], sizes = [48, 16], strides = [1, 1]} : vector<48x192xf32> to vector<48x16xf32>
    %245 = arith.truncf %244 : vector<48x16xf32> to vector<48x16xbf16>
    %cst_106 = arith.constant dense<0.000000e+00> : vector<48x48xf32>
    %246 = tpu.matmul %241, %243, %cst_106 {dimension_numbers = #tpu.dot_dimension_numbers<[1], [1], [0], [0], [0, 0, 1, 0], [], []>} : vector<48x16xbf16>, vector<48x16xbf16>, vector<48x48xf32> -> vector<48x48xf32>
    %247 = arith.addf %246, %23 : vector<48x48xf32>
    %cst_107 = arith.constant dense<0xFF800000> : vector<48xf32>
    %248 = vector.multi_reduction <maximumf>, %247, %cst_107 [1] : vector<48x48xf32> to vector<48xf32>
    %249 = vector.shape_cast %248 : vector<48xf32> to vector<48x1xf32>
    %250 = vector.broadcast %249 : vector<48x1xf32> to vector<48x48xf32>
    %251 = arith.subf %247, %250 : vector<48x48xf32>
    %252 = math.exp %251 : vector<48x48xf32>
    %cst_108 = arith.constant dense<0.000000e+00> : vector<48xf32>
    %253 = vector.multi_reduction <add>, %252, %cst_108 [1] : vector<48x48xf32> to vector<48xf32>
    %254 = vector.shape_cast %253 : vector<48xf32> to vector<48x1xf32>
    %255 = tpu.reciprocal %254 {approx = true} : vector<48x1xf32> -> vector<48x1xf32>
    %256 = vector.broadcast %255 : vector<48x1xf32> to vector<48x48xf32>
    %257 = arith.mulf %252, %256 : vector<48x48xf32>
    %258 = arith.truncf %257 : vector<48x48xf32> to vector<48x48xbf16>
    %cst_109 = arith.constant dense<0.000000e+00> : vector<48x16xf32>
    %259 = tpu.matmul %258, %245, %cst_109 {dimension_numbers = #tpu.dot_dimension_numbers<[1], [0], [0], [1], [0, 0, 1, 1], [], []>} : vector<48x48xbf16>, vector<48x16xbf16>, vector<48x16xf32> -> vector<48x16xf32>
    %260 = vector.extract_strided_slice %239 {offsets = [0, 16], sizes = [48, 16], strides = [1, 1]} : vector<48x192xf32> to vector<48x16xf32>
    %261 = arith.truncf %260 : vector<48x16xf32> to vector<48x16xbf16>
    %262 = vector.extract_strided_slice %239 {offsets = [0, 80], sizes = [48, 16], strides = [1, 1]} : vector<48x192xf32> to vector<48x16xf32>
    %263 = arith.truncf %262 : vector<48x16xf32> to vector<48x16xbf16>
    %264 = vector.extract_strided_slice %239 {offsets = [0, 144], sizes = [48, 16], strides = [1, 1]} : vector<48x192xf32> to vector<48x16xf32>
    %265 = arith.truncf %264 : vector<48x16xf32> to vector<48x16xbf16>
    %cst_110 = arith.constant dense<0.000000e+00> : vector<48x48xf32>
    %266 = tpu.matmul %261, %263, %cst_110 {dimension_numbers = #tpu.dot_dimension_numbers<[1], [1], [0], [0], [0, 0, 1, 0], [], []>} : vector<48x16xbf16>, vector<48x16xbf16>, vector<48x48xf32> -> vector<48x48xf32>
    %267 = arith.addf %266, %23 : vector<48x48xf32>
    %cst_111 = arith.constant dense<0xFF800000> : vector<48xf32>
    %268 = vector.multi_reduction <maximumf>, %267, %cst_111 [1] : vector<48x48xf32> to vector<48xf32>
    %269 = vector.shape_cast %268 : vector<48xf32> to vector<48x1xf32>
    %270 = vector.broadcast %269 : vector<48x1xf32> to vector<48x48xf32>
    %271 = arith.subf %267, %270 : vector<48x48xf32>
    %272 = math.exp %271 : vector<48x48xf32>
    %cst_112 = arith.constant dense<0.000000e+00> : vector<48xf32>
    %273 = vector.multi_reduction <add>, %272, %cst_112 [1] : vector<48x48xf32> to vector<48xf32>
    %274 = vector.shape_cast %273 : vector<48xf32> to vector<48x1xf32>
    %275 = tpu.reciprocal %274 {approx = true} : vector<48x1xf32> -> vector<48x1xf32>
    %276 = vector.broadcast %275 : vector<48x1xf32> to vector<48x48xf32>
    %277 = arith.mulf %272, %276 : vector<48x48xf32>
    %278 = arith.truncf %277 : vector<48x48xf32> to vector<48x48xbf16>
    %cst_113 = arith.constant dense<0.000000e+00> : vector<48x16xf32>
    %279 = tpu.matmul %278, %265, %cst_113 {dimension_numbers = #tpu.dot_dimension_numbers<[1], [0], [0], [1], [0, 0, 1, 1], [], []>} : vector<48x48xbf16>, vector<48x16xbf16>, vector<48x16xf32> -> vector<48x16xf32>
    %280 = vector.extract_strided_slice %239 {offsets = [0, 32], sizes = [48, 16], strides = [1, 1]} : vector<48x192xf32> to vector<48x16xf32>
    %281 = arith.truncf %280 : vector<48x16xf32> to vector<48x16xbf16>
    %282 = vector.extract_strided_slice %239 {offsets = [0, 96], sizes = [48, 16], strides = [1, 1]} : vector<48x192xf32> to vector<48x16xf32>
    %283 = arith.truncf %282 : vector<48x16xf32> to vector<48x16xbf16>
    %284 = vector.extract_strided_slice %239 {offsets = [0, 160], sizes = [48, 16], strides = [1, 1]} : vector<48x192xf32> to vector<48x16xf32>
    %285 = arith.truncf %284 : vector<48x16xf32> to vector<48x16xbf16>
    %cst_114 = arith.constant dense<0.000000e+00> : vector<48x48xf32>
    %286 = tpu.matmul %281, %283, %cst_114 {dimension_numbers = #tpu.dot_dimension_numbers<[1], [1], [0], [0], [0, 0, 1, 0], [], []>} : vector<48x16xbf16>, vector<48x16xbf16>, vector<48x48xf32> -> vector<48x48xf32>
    %287 = arith.addf %286, %23 : vector<48x48xf32>
    %cst_115 = arith.constant dense<0xFF800000> : vector<48xf32>
    %288 = vector.multi_reduction <maximumf>, %287, %cst_115 [1] : vector<48x48xf32> to vector<48xf32>
    %289 = vector.shape_cast %288 : vector<48xf32> to vector<48x1xf32>
    %290 = vector.broadcast %289 : vector<48x1xf32> to vector<48x48xf32>
    %291 = arith.subf %287, %290 : vector<48x48xf32>
    %292 = math.exp %291 : vector<48x48xf32>
    %cst_116 = arith.constant dense<0.000000e+00> : vector<48xf32>
    %293 = vector.multi_reduction <add>, %292, %cst_116 [1] : vector<48x48xf32> to vector<48xf32>
    %294 = vector.shape_cast %293 : vector<48xf32> to vector<48x1xf32>
    %295 = tpu.reciprocal %294 {approx = true} : vector<48x1xf32> -> vector<48x1xf32>
    %296 = vector.broadcast %295 : vector<48x1xf32> to vector<48x48xf32>
    %297 = arith.mulf %292, %296 : vector<48x48xf32>
    %298 = arith.truncf %297 : vector<48x48xf32> to vector<48x48xbf16>
    %cst_117 = arith.constant dense<0.000000e+00> : vector<48x16xf32>
    %299 = tpu.matmul %298, %285, %cst_117 {dimension_numbers = #tpu.dot_dimension_numbers<[1], [0], [0], [1], [0, 0, 1, 1], [], []>} : vector<48x48xbf16>, vector<48x16xbf16>, vector<48x16xf32> -> vector<48x16xf32>
    %300 = vector.extract_strided_slice %239 {offsets = [0, 48], sizes = [48, 16], strides = [1, 1]} : vector<48x192xf32> to vector<48x16xf32>
    %301 = arith.truncf %300 : vector<48x16xf32> to vector<48x16xbf16>
    %302 = vector.extract_strided_slice %239 {offsets = [0, 112], sizes = [48, 16], strides = [1, 1]} : vector<48x192xf32> to vector<48x16xf32>
    %303 = arith.truncf %302 : vector<48x16xf32> to vector<48x16xbf16>
    %304 = vector.extract_strided_slice %239 {offsets = [0, 176], sizes = [48, 16], strides = [1, 1]} : vector<48x192xf32> to vector<48x16xf32>
    %305 = arith.truncf %304 : vector<48x16xf32> to vector<48x16xbf16>
    %cst_118 = arith.constant dense<0.000000e+00> : vector<48x48xf32>
    %306 = tpu.matmul %301, %303, %cst_118 {dimension_numbers = #tpu.dot_dimension_numbers<[1], [1], [0], [0], [0, 0, 1, 0], [], []>} : vector<48x16xbf16>, vector<48x16xbf16>, vector<48x48xf32> -> vector<48x48xf32>
    %307 = arith.addf %306, %23 : vector<48x48xf32>
    %cst_119 = arith.constant dense<0xFF800000> : vector<48xf32>
    %308 = vector.multi_reduction <maximumf>, %307, %cst_119 [1] : vector<48x48xf32> to vector<48xf32>
    %309 = vector.shape_cast %308 : vector<48xf32> to vector<48x1xf32>
    %310 = vector.broadcast %309 : vector<48x1xf32> to vector<48x48xf32>
    %311 = arith.subf %307, %310 : vector<48x48xf32>
    %312 = math.exp %311 : vector<48x48xf32>
    %cst_120 = arith.constant dense<0.000000e+00> : vector<48xf32>
    %313 = vector.multi_reduction <add>, %312, %cst_120 [1] : vector<48x48xf32> to vector<48xf32>
    %314 = vector.shape_cast %313 : vector<48xf32> to vector<48x1xf32>
    %315 = tpu.reciprocal %314 {approx = true} : vector<48x1xf32> -> vector<48x1xf32>
    %316 = vector.broadcast %315 : vector<48x1xf32> to vector<48x48xf32>
    %317 = arith.mulf %312, %316 : vector<48x48xf32>
    %318 = arith.truncf %317 : vector<48x48xf32> to vector<48x48xbf16>
    %cst_121 = arith.constant dense<0.000000e+00> : vector<48x16xf32>
    %319 = tpu.matmul %318, %305, %cst_121 {dimension_numbers = #tpu.dot_dimension_numbers<[1], [0], [0], [1], [0, 0, 1, 1], [], []>} : vector<48x48xbf16>, vector<48x16xbf16>, vector<48x16xf32> -> vector<48x16xf32>
    %320 = tpu.concatenate %259, %279, %299, %319 in 1 : vector<48x16xf32>, vector<48x16xf32>, vector<48x16xf32>, vector<48x16xf32> -> vector<48x64xf32>
    %321 = arith.truncf %320 : vector<48x64xf32> to vector<48x64xbf16>
    %c1_122 = arith.constant 1 : index
    %c0_123 = arith.constant 0 : index
    %c0_124 = arith.constant 0 : index
    %322 = vector.load %arg11[%c1_122, %c0_123, %c0_124] : memref<2x64x64xbf16, #tpu.memory_space<vmem>>, vector<1x64x64xbf16>
    %323 = vector.shape_cast %322 : vector<1x64x64xbf16> to vector<64x64xbf16>
    %cst_125 = arith.constant dense<0.000000e+00> : vector<48x64xf32>
    %324 = tpu.matmul %321, %323, %cst_125 {dimension_numbers = #tpu.dot_dimension_numbers<[1], [0], [0], [1], [0, 0, 1, 1], [], []>} : vector<48x64xbf16>, vector<64x64xbf16>, vector<48x64xf32> -> vector<48x64xf32>
    %c1_126 = arith.constant 1 : index
    %c0_127 = arith.constant 0 : index
    %c0_128 = arith.constant 0 : index
    %325 = vector.load %arg12[%c1_126, %c0_127, %c0_128] : memref<2x1x64xf32, #tpu.memory_space<vmem>>, vector<1x1x64xf32>
    %326 = vector.shape_cast %325 : vector<1x1x64xf32> to vector<1x64xf32>
    %327 = vector.broadcast %326 : vector<1x64xf32> to vector<48x64xf32>
    %328 = arith.addf %324, %327 : vector<48x64xf32>
    %329 = arith.addf %205, %328 : vector<48x64xf32>
    %c1_129 = arith.constant 1 : index
    %c0_130 = arith.constant 0 : index
    %c0_131 = arith.constant 0 : index
    %330 = vector.load %arg13[%c1_129, %c0_130, %c0_131] : memref<2x1x64xf32, #tpu.memory_space<vmem>>, vector<1x1x64xf32>
    %331 = vector.shape_cast %330 : vector<1x1x64xf32> to vector<1x64xf32>
    %c1_132 = arith.constant 1 : index
    %c0_133 = arith.constant 0 : index
    %c0_134 = arith.constant 0 : index
    %332 = vector.load %arg14[%c1_132, %c0_133, %c0_134] : memref<2x1x64xf32, #tpu.memory_space<vmem>>, vector<1x1x64xf32>
    %333 = vector.shape_cast %332 : vector<1x1x64xf32> to vector<1x64xf32>
    %cst_135 = arith.constant dense<0.000000e+00> : vector<48xf32>
    %334 = vector.multi_reduction <add>, %329, %cst_135 [1] : vector<48x64xf32> to vector<48xf32>
    %335 = vector.shape_cast %334 : vector<48xf32> to vector<48x1xf32>
    %cst_136 = arith.constant 6.400000e+01 : f32
    %336 = vector.broadcast %cst_136 : f32 to vector<48x1xf32>
    %337 = arith.divf %335, %336 : vector<48x1xf32>
    %338 = vector.broadcast %337 : vector<48x1xf32> to vector<48x64xf32>
    %339 = arith.subf %329, %338 : vector<48x64xf32>
    %340 = arith.mulf %339, %339 : vector<48x64xf32>
    %cst_137 = arith.constant dense<0.000000e+00> : vector<48xf32>
    %341 = vector.multi_reduction <add>, %340, %cst_137 [1] : vector<48x64xf32> to vector<48xf32>
    %342 = vector.shape_cast %341 : vector<48xf32> to vector<48x1xf32>
    %cst_138 = arith.constant 6.400000e+01 : f32
    %343 = vector.broadcast %cst_138 : f32 to vector<48x1xf32>
    %344 = arith.divf %342, %343 : vector<48x1xf32>
    %345 = vector.broadcast %337 : vector<48x1xf32> to vector<48x64xf32>
    %346 = arith.subf %329, %345 : vector<48x64xf32>
    %cst_139 = arith.constant 9.99999974E-6 : f32
    %347 = vector.broadcast %cst_139 : f32 to vector<48x1xf32>
    %348 = arith.addf %344, %347 : vector<48x1xf32>
    %349 = math.rsqrt %348 : vector<48x1xf32>
    %350 = vector.broadcast %349 : vector<48x1xf32> to vector<48x64xf32>
    %351 = arith.mulf %346, %350 : vector<48x64xf32>
    %352 = vector.broadcast %331 : vector<1x64xf32> to vector<48x64xf32>
    %353 = arith.mulf %351, %352 : vector<48x64xf32>
    %354 = vector.broadcast %333 : vector<1x64xf32> to vector<48x64xf32>
    %355 = arith.addf %353, %354 : vector<48x64xf32>
    %356 = arith.truncf %355 : vector<48x64xf32> to vector<48x64xbf16>
    %c1_140 = arith.constant 1 : index
    %c0_141 = arith.constant 0 : index
    %c0_142 = arith.constant 0 : index
    %357 = vector.load %arg15[%c1_140, %c0_141, %c0_142] : memref<2x64x256xbf16, #tpu.memory_space<vmem>>, vector<1x64x256xbf16>
    %358 = vector.shape_cast %357 : vector<1x64x256xbf16> to vector<64x256xbf16>
    %cst_143 = arith.constant dense<0.000000e+00> : vector<48x256xf32>
    %359 = tpu.matmul %356, %358, %cst_143 {dimension_numbers = #tpu.dot_dimension_numbers<[1], [0], [0], [1], [0, 0, 1, 1], [], []>} : vector<48x64xbf16>, vector<64x256xbf16>, vector<48x256xf32> -> vector<48x256xf32>
    %c1_144 = arith.constant 1 : index
    %c0_145 = arith.constant 0 : index
    %c0_146 = arith.constant 0 : index
    %360 = vector.load %arg16[%c1_144, %c0_145, %c0_146] : memref<2x1x256xf32, #tpu.memory_space<vmem>>, vector<1x1x256xf32>
    %361 = vector.shape_cast %360 : vector<1x1x256xf32> to vector<1x256xf32>
    %362 = vector.broadcast %361 : vector<1x256xf32> to vector<48x256xf32>
    %363 = arith.addf %359, %362 : vector<48x256xf32>
    %cst_147 = arith.constant 5.000000e-01 : f32
    %364 = vector.broadcast %cst_147 : f32 to vector<48x256xf32>
    %365 = arith.mulf %364, %363 : vector<48x256xf32>
    %cst_148 = arith.constant 4.471500e-02 : f32
    %366 = vector.broadcast %cst_148 : f32 to vector<48x256xf32>
    %367 = arith.mulf %366, %363 : vector<48x256xf32>
    %368 = arith.mulf %367, %363 : vector<48x256xf32>
    %369 = arith.mulf %368, %363 : vector<48x256xf32>
    %370 = arith.addf %363, %369 : vector<48x256xf32>
    %cst_149 = arith.constant 0.797884583 : f32
    %371 = vector.broadcast %cst_149 : f32 to vector<48x256xf32>
    %372 = arith.mulf %371, %370 : vector<48x256xf32>
    %373 = math.tanh %372 : vector<48x256xf32>
    %cst_150 = arith.constant 1.000000e+00 : f32
    %374 = vector.broadcast %cst_150 : f32 to vector<48x256xf32>
    %375 = arith.addf %374, %373 : vector<48x256xf32>
    %376 = arith.mulf %365, %375 : vector<48x256xf32>
    %377 = arith.truncf %376 : vector<48x256xf32> to vector<48x256xbf16>
    %c1_151 = arith.constant 1 : index
    %c0_152 = arith.constant 0 : index
    %c0_153 = arith.constant 0 : index
    %378 = vector.load %arg17[%c1_151, %c0_152, %c0_153] : memref<2x256x64xbf16, #tpu.memory_space<vmem>>, vector<1x256x64xbf16>
    %379 = vector.shape_cast %378 : vector<1x256x64xbf16> to vector<256x64xbf16>
    %cst_154 = arith.constant dense<0.000000e+00> : vector<48x64xf32>
    %380 = tpu.matmul %377, %379, %cst_154 {dimension_numbers = #tpu.dot_dimension_numbers<[1], [0], [0], [1], [0, 0, 1, 1], [], []>} : vector<48x256xbf16>, vector<256x64xbf16>, vector<48x64xf32> -> vector<48x64xf32>
    %c1_155 = arith.constant 1 : index
    %c0_156 = arith.constant 0 : index
    %c0_157 = arith.constant 0 : index
    %381 = vector.load %arg18[%c1_155, %c0_156, %c0_157] : memref<2x1x64xf32, #tpu.memory_space<vmem>>, vector<1x1x64xf32>
    %382 = vector.shape_cast %381 : vector<1x1x64xf32> to vector<1x64xf32>
    %383 = vector.broadcast %382 : vector<1x64xf32> to vector<48x64xf32>
    %384 = arith.addf %380, %383 : vector<48x64xf32>
    %385 = arith.addf %329, %384 : vector<48x64xf32>
    %c0_158 = arith.constant 0 : index
    %c0_159 = arith.constant 0 : index
    %c0_160 = arith.constant 0 : index
    %386 = vector.load %arg19[%c0_158, %c0_159, %c0_160] : memref<1x48x64xf32, #tpu.memory_space<vmem>>, vector<1x48x64xf32>
    %387 = vector.shape_cast %386 : vector<1x48x64xf32> to vector<48x64xf32>
    %388 = vector.shape_cast %385 : vector<48x64xf32> to vector<1x48x64xf32>
    tpu.vector_store %arg19[%c0_158, %c0_159, %c0_160], %388 {strides = array<i32>} : memref<1x48x64xf32, #tpu.memory_space<vmem>>, vector<1x48x64xf32>,
    return
  }
  func.func @transform_0(%arg0: i32) -> (i32, i32, i32) {
    %c0_i32 = arith.constant 0 : i32
    %c0_i32_0 = arith.constant 0 : i32
    %c0_i32_1 = arith.constant 0 : i32
    return %arg0, %c0_i32, %c0_i32_0 : i32, i32, i32
  }
  func.func @transform_1(%arg0: i32) -> (i32, i32, i32) {
    %c0_i32 = arith.constant 0 : i32
    %c0_i32_0 = arith.constant 0 : i32
    %c0_i32_1 = arith.constant 0 : i32
    return %arg0, %c0_i32, %c0_i32_0 : i32, i32, i32
  }
  func.func @transform_2(%arg0: i32) -> (i32, i32, i32) {
    %c0_i32 = arith.constant 0 : i32
    %c0_i32_0 = arith.constant 0 : i32
    %c0_i32_1 = arith.constant 0 : i32
    return %arg0, %c0_i32, %c0_i32_0 : i32, i32, i32
  }
  func.func @transform_3(%arg0: i32) -> (i32, i32, i32) {
    %c0_i32 = arith.constant 0 : i32
    %c0_i32_0 = arith.constant 0 : i32
    %c0_i32_1 = arith.constant 0 : i32
    return %arg0, %c0_i32, %c0_i32_0 : i32, i32, i32
  }
  func.func @transform_4(%arg0: i32) -> (i32, i32, i32) {
    %c0_i32 = arith.constant 0 : i32
    %c0_i32_0 = arith.constant 0 : i32
    %c0_i32_1 = arith.constant 0 : i32
    return %arg0, %c0_i32, %c0_i32_0 : i32, i32, i32
  }
  func.func @transform_5(%arg0: i32) -> (i32, i32, i32) {
    %c0_i32 = arith.constant 0 : i32
    %c0_i32_0 = arith.constant 0 : i32
    %c0_i32_1 = arith.constant 0 : i32
    return %arg0, %c0_i32, %c0_i32_0 : i32, i32, i32
  }
  func.func @transform_6(%arg0: i32) -> (i32, i32, i32) {
    %c0_i32 = arith.constant 0 : i32
    %c0_i32_0 = arith.constant 0 : i32
    %c0_i32_1 = arith.constant 0 : i32
    %c0_i32_2 = arith.constant 0 : i32
    return %c0_i32, %c0_i32_0, %c0_i32_1 : i32, i32, i32
  }
  func.func @transform_7(%arg0: i32) -> (i32, i32, i32) {
    %c0_i32 = arith.constant 0 : i32
    %c0_i32_0 = arith.constant 0 : i32
    %c0_i32_1 = arith.constant 0 : i32
    %c0_i32_2 = arith.constant 0 : i32
    return %c0_i32, %c0_i32_0, %c0_i32_1 : i32, i32, i32
  }
  func.func @transform_8(%arg0: i32) -> (i32, i32, i32) {
    %c0_i32 = arith.constant 0 : i32
    %c0_i32_0 = arith.constant 0 : i32
    %c0_i32_1 = arith.constant 0 : i32
    %c0_i32_2 = arith.constant 0 : i32
    return %c0_i32, %c0_i32_0, %c0_i32_1 : i32, i32, i32
  }
  func.func @transform_9(%arg0: i32) -> (i32, i32, i32) {
    %c0_i32 = arith.constant 0 : i32
    %c0_i32_0 = arith.constant 0 : i32
    %c0_i32_1 = arith.constant 0 : i32
    %c0_i32_2 = arith.constant 0 : i32
    return %c0_i32, %c0_i32_0, %c0_i32_1 : i32, i32, i32
  }
  func.func @transform_10(%arg0: i32) -> (i32, i32, i32) {
    %c0_i32 = arith.constant 0 : i32
    %c0_i32_0 = arith.constant 0 : i32
    %c0_i32_1 = arith.constant 0 : i32
    %c0_i32_2 = arith.constant 0 : i32
    return %c0_i32, %c0_i32_0, %c0_i32_1 : i32, i32, i32
  }
  func.func @transform_11(%arg0: i32) -> (i32, i32, i32) {
    %c0_i32 = arith.constant 0 : i32
    %c0_i32_0 = arith.constant 0 : i32
    %c0_i32_1 = arith.constant 0 : i32
    %c0_i32_2 = arith.constant 0 : i32
    return %c0_i32, %c0_i32_0, %c0_i32_1 : i32, i32, i32
  }
  func.func @transform_12(%arg0: i32) -> (i32, i32, i32) {
    %c0_i32 = arith.constant 0 : i32
    %c0_i32_0 = arith.constant 0 : i32
    %c0_i32_1 = arith.constant 0 : i32
    %c0_i32_2 = arith.constant 0 : i32
    return %c0_i32, %c0_i32_0, %c0_i32_1 : i32, i32, i32
  }
  func.func @transform_13(%arg0: i32) -> (i32, i32, i32) {
    %c0_i32 = arith.constant 0 : i32
    %c0_i32_0 = arith.constant 0 : i32
    %c0_i32_1 = arith.constant 0 : i32
    %c0_i32_2 = arith.constant 0 : i32
    return %c0_i32, %c0_i32_0, %c0_i32_1 : i32, i32, i32
  }
  func.func @transform_14(%arg0: i32) -> (i32, i32, i32) {
    %c0_i32 = arith.constant 0 : i32
    %c0_i32_0 = arith.constant 0 : i32
    %c0_i32_1 = arith.constant 0 : i32
    %c0_i32_2 = arith.constant 0 : i32
    return %c0_i32, %c0_i32_0, %c0_i32_1 : i32, i32, i32
  }
  func.func @transform_15(%arg0: i32) -> (i32, i32, i32) {
    %c0_i32 = arith.constant 0 : i32
    %c0_i32_0 = arith.constant 0 : i32
    %c0_i32_1 = arith.constant 0 : i32
    %c0_i32_2 = arith.constant 0 : i32
    return %c0_i32, %c0_i32_0, %c0_i32_1 : i32, i32, i32
  }
  func.func @transform_16(%arg0: i32) -> (i32, i32, i32) {
    %c0_i32 = arith.constant 0 : i32
    %c0_i32_0 = arith.constant 0 : i32
    %c0_i32_1 = arith.constant 0 : i32
    %c0_i32_2 = arith.constant 0 : i32
    return %c0_i32, %c0_i32_0, %c0_i32_1 : i32, i32, i32
  }
  func.func @transform_17(%arg0: i32) -> (i32, i32, i32) {
    %c0_i32 = arith.constant 0 : i32
    %c0_i32_0 = arith.constant 0 : i32
    %c0_i32_1 = arith.constant 0 : i32
    %c0_i32_2 = arith.constant 0 : i32
    return %c0_i32, %c0_i32_0, %c0_i32_1 : i32, i32, i32
  }
  func.func @transform_18(%arg0: i32) -> (i32, i32, i32) {
    %c0_i32 = arith.constant 0 : i32
    %c0_i32_0 = arith.constant 0 : i32
    %c0_i32_1 = arith.constant 0 : i32
    return %arg0, %c0_i32, %c0_i32_0 : i32, i32, i32
  }
}

</mosaic_0001>

<bundles_post_ra>
// kernel: gpt2_stack_batched.1
= control target key start
LH: loop header
LB: loop body
LE: loop exit
PB: predicated region body
PF: predicated region fallthrough
CT: control target
= control target key end

     0   :  { %s7310_s0 = inlined_call_operand.vmem [shape: f32[2,48,64], index: 0, kind: input, shape index: {}]   ;;  %s7311_s1 = inlined_call_operand.vmem [shape: f32[2,48,1], index: 1, kind: input, shape index: {}]   ;;  %s7312_s2 = inlined_call_operand.vmem [shape: f32[2,48,1], index: 2, kind: input, shape index: {}]   ;;  %s7313_s3 = inlined_call_operand.vmem [shape: f32[2,1,48], index: 3, kind: input, shape index: {}]   ;;  %s7314_s4 = inlined_call_operand.vmem [shape: f32[2,1,48], index: 4, kind: input, shape index: {}]   ;;  %s7315_s5 = inlined_call_operand.vmem [shape: f32[2,1,48], index: 5, kind: input, shape index: {}]   ;;  %s7316_s6 = inlined_call_operand.vmem [shape: f32[2,1,64], index: 6, kind: input, shape index: {}]   ;;  %s7317_s7 = inlined_call_operand.vmem [shape: f32[2,1,64], index: 7, kind: input, shape index: {}]   ;;  %s7318_s8 = inlined_call_operand.vmem [shape: bf16[2,64,192], index: 8, kind: input, shape index: {}]   ;;  %s7319_s9 = inlined_call_operand.vmem [shape: f32[2,1,192], index: 9, kind: input, shape index: {}]   ;;  %s7320_s10 = inlined_call_operand.vmem [shape: bf16[2,64,64], index: 10, kind: input, shape index: {}]   ;;  %s7321_s11 = inlined_call_operand.vmem [shape: f32[2,1,64], index: 11, kind: input, shape index: {}]   ;;  %s7322_s12 = inlined_call_operand.vmem [shape: f32[2,1,64], index: 12, kind: input, shape index: {}]   ;;  %s7323_s13 = inlined_call_operand.vmem [shape: f32[2,1,64], index: 13, kind: input, shape index: {}]   ;;  %s7324_s14 = inlined_call_operand.vmem [shape: bf16[2,64,256], index: 14, kind: input, shape index: {}]   ;;  %s7325_s15 = inlined_call_operand.vmem [shape: f32[2,1,256], index: 15, kind: input, shape index: {}]   ;;  %s7326_s16 = inlined_call_operand.vmem [shape: bf16[2,256,64], index: 16, kind: input, shape index: {}]   ;;  %s7327_s17 = inlined_call_operand.vmem [shape: f32[2,1,64], index: 17, kind: input, shape index: {}]   ;;  %s7328_s18 = inlined_call_operand.hbm [shape: f32[2,48,64], index: 18, kind: output, shape index: {}]  }
   0x1   :  { %7346 = sst [smem:[#allocation10_spill]] %s7310_s0 }
   0x2   :  { %7347 = sst [smem:[#allocation11_spill]] %s7311_s1 }
   0x3   :  { %7348 = sst [smem:[#allocation12_spill]] %s7312_s2 }
   0x4   :  { %7349 = sst [smem:[#allocation13_spill]] %s7313_s3 }
   0x5   :  { %7350 = sst [smem:[#allocation14_spill]] %s7314_s4 }
   0x6   :  { %23 = vsyncpa [#allocation3], 0 }
   0x7   :  { %25 = vsyncpa [#allocation3 + $0x1], 0  ;;  %s5397_s27 = smov 0   ;;  %s5399_s28 = smov 0  }
   0x8   :  { %s5401_s29 = smov 0   ;;  %s5403_s30 = smov 0  }
   0x9 LB: > { %7351 = sst [smem:[#allocation5_spill]] %s5276_s27  ;;  %s5418_s0 = sadd.s32 4294967295, %s5288_s30   ;;  %s5288_s30 = sphi %s5403_s30, %s7380_s30   ;;  %s5284_s29 = sphi %s5401_s29, %s7382_s29   ;;  %s5280_s28 = sphi %s5399_s28, %s7384_s28   ;;  %s5276_s27 = sphi %s5397_s27, %s7383_s27  }
   0xa   : > { %7352 = sst [smem:[#allocation6_spill]] %s5284_s29  ;;  %s4250_s19 = sadd.s32 4294967294, %s5288_s30  }
   0xb   : > { %s5422_s1 = sadd.s32 1, %s5288_s30   ;;  %s446_s20 = sadd.s32 1, %s5284_s29 }
   0xc   : > { %7353 = sst [smem:[#allocation7_spill]] %s5422_s1  ;;  %s443_s21 = ssub.s32 %s5288_s30, %s5422_s1 }
   0xd   : > { %p456_p0 = scmp.ne.s32.totalorder %s5284_s29, %s5280_s28  ;;  %p444_p1 = scmp.eq.s32.totalorder %s443_s21, 0 }
   0xe   : > { %p457_p2 = scmp.eq.s32.totalorder %s5418_s0, 1  ;;  %p462_p3 = scmp.ne.s32.totalorder %s5280_s28, %s5276_s27 }
   0xf   : > { %p463_p4 = scmp.eq.s32.totalorder %s4250_s19, 1  ;;  %p4253_p7 = scmp.ge.s32.totalorder %s5288_s30, 1 }
  0x10   : > { %s5433_s22 = scalar_select %p444_p1, %s5284_s29, %s446_s20  }
  0x11   : > { %p5435_p5 = por %p457_p2, %p456_p0  ;;  %p5439_p6 = por %p463_p4, %p462_p3 }
  0x12   : > { %7354 = sst [smem:[#allocation8_spill]] %s5433_s22  ;;  %p559_p8 = scmp.lt.s32.totalorder %s5288_s30, 3 }
  0x13   : > { %s7356_s23 = scalar_select %p5439_p6, 1, 0 }
  0x14   : > { %p560_p9 = pnand %p4253_p7, %p559_p8 }
  0x15   : > { %7357 = sst [smem:[#allocation9_spill]] %s7356_s23  ;;  %p632_p10 = scmp.lt.s32.totalorder (!%p560_p9), %s5418_s0, 1 }
  0x16   : > { %563 = sbr.rel (%p560_p9) target bundleno = 4784 (0x12b0), region = 92  ;;  %s7358_s20 = sld [smem:[#allocation10_spill]] (!%p560_p9) }
  0x17   : > { %s7334_s1 = smov (!%p560_p9), 64   ;;  %s7365_s3 = sld [smem:[#allocation13_spill]] (!%p560_p9) }
  0x18   : > { %s7366_s27 = sld [smem:[#allocation12_spill]] (!%p560_p9)  ;;  %s7338_s26 = smov (!%p560_p9), 80  }
  0x19   : > { %s7368_s4 = sld [smem:[#allocation14_spill]] (!%p560_p9) }
  0x1b   : > { %s5447_s24 = scalar_select %p632_p10, %s5418_s0, 1  ;;  %vm780_vm0 = vcmask 523264   ;;  %v5290_v12 = vmov 64.0   ;;  %v4283_v49 = vld [vmem:[%s7318_s8 + $0x30] sm:$0xf] }
  0x1c   : > { %4930 = vrcp.f32 %v5290_v12  ;;  %v4697_v50 = vld [vmem:[%s7318_s8 + $0x34] sm:$0xf0]  ;;  %v4275_v52 = vld [vmem:[%s7318_s8 + $0x20] sm:$0xf]  ;;  %v4695_v53 = vld [vmem:[%s7318_s8 + $0x24] sm:$0xf0] }
  0x1d   : > { %s5450_s25 = smul.u32 48, %s5447_s24  ;;  %v4284_v51 = vor.u32 %v4697_v50, %v4283_v49  ;;  %v4276_v54 = vor.u32 %v4695_v53, %v4275_v52  ;;  %v4267_v55 = vld [vmem:[%s7318_s8 + $0x10] sm:$0xf]  ;;  %v4693_v56 = vld [vmem:[%s7318_s8 + $0x14] sm:$0xf0]  ;;  %s655_s23 = scalar_lea.vmem %s7315_s5, %s5447_s24 }
  0x1e   : > { %v4268_v59 = vor.u32 %v4693_v56, %v4267_v55  ;;  %v4259_v63 = vld [vmem:[%s7318_s8] sm:$0xf]  ;;  %v4692_v52 = vld [vmem:[%s7318_s8 + $0x14] sm:$0xf]  ;;  %v4269_v53 = vld [vmem:[%s7318_s8 + $0x18] sm:$0xf0] }
  0x1f   : > { %s5456_s21 = scalar_lea.vmem %s7358_s20, %s5450_s25  ;;  %4762 = vmatpush.bf16.msra.mxu1 %v4284_v51  ;;  %1008 = vmatpush.bf16.msra.mxu0 %v4284_v51  ;;  %s5673_s29 = scalar_lea.vmem %s7366_s27, %s5450_s25 }
  0x20   : > { %v776_v0 = vld [vmem:[%s5456_s21 + $0x20] sm:$0xff]  ;;  %v774_v1 = vld [vmem:[%s5456_s21 + $0x10] sm:$0xff]  ;;  %v777_v6 = vld [vmem:[%s5456_s21 + $0x28] sm:$0xff]  ;;  %s652_s22 = scalar_lea.vmem %s7368_s4, %s5447_s24  ;;  %s7342_s20 = smov 16  }
  0x21   : > { %v772_v2 = vld [vmem:[%s5456_s21] sm:$0xff]  ;;  %v793_v3 = vsel %vm780_vm0, %v776_v0, 0.0  ;;  %v787_v4 = vsel %vm780_vm0, %v774_v1, 0.0  ;;  %v775_v7 = vld [vmem:[%s5456_s21 + $0x18] sm:$0xff]  ;;  %v773_v8 = vld [vmem:[%s5456_s21 + $0x8] sm:$0xff]  ;;  %v796_v9 = vsel %vm780_vm0, %v777_v6, 0.0 }
  0x22   : > { %v781_v5 = vsel %vm780_vm0, %v772_v2, 0.0  ;;  %794 = vadd.xlane.f32.xlu1 %v793_v3  ;;  %788 = vadd.xlane.f32.xlu0 %v787_v4  ;;  %v790_v10 = vsel %vm780_vm0, %v775_v7, 0.0  ;;  %v784_v11 = vsel %vm780_vm0, %v773_v8, 0.0  ;;  %v4931_v13 = vpop.eup %4930  ;;  %s7336_s27 = smov 96  }
  0x23   : > { %782 = vadd.xlane.f32.xlu2 %v781_v5  ;;  %v800_v14 = vmul.f32 64.0, %v4931_v13  ;;  %vm804_vm1 = vweird.f32 %v4931_v13  ;;  %4763 = vmatpush.bf16.msra.mxu1 %v4276_v54 }
  0x24   : > { %1009 = vmatpush.bf16.msra.mxu0 %v4276_v54 }
  0x25   : > { %v801_v15 = vsub.f32 1.0, %v800_v14 }
  0x27   : > { %v802_v16 = vmul.f32 %v4931_v13, %v801_v15  ;;  %4764 = vmatpush.bf16.msra.mxu1 %v4268_v59 }
  0x28   : > { %1010 = vmatpush.bf16.msra.mxu0 %v4268_v59 }
  0x29   : > { %v803_v17 = vadd.f32 %v4931_v13, %v802_v16 }
  0x2a   : > { %797 = vadd.xlane.f32.xlu1 %v796_v9  ;;  %791 = vadd.xlane.f32.xlu0 %v790_v10 }
  0x2b   : > { %785 = vadd.xlane.f32.xlu2 %v784_v11  ;;  %v5470_v18 = vsel %vm804_vm1, %v4931_v13, %v803_v17 }
  0x95   : > { %v795_v19 = vpop.xlane.xlu1 %794  ;;  %v789_v20 = vpop.xlane.xlu0 %788 }
  0x96   : > { %v810_v21 = vmul.f32 %v5470_v18, %v795_v19  ;;  %v808_v22 = vmul.f32 %v5470_v18, %v789_v20  ;;  %v783_v23 = vpop.xlane.xlu2 %782 }
  0x97   : > { %v806_v32 = vmul.f32 %v5470_v18, %v783_v23 }
  0x98   : > { %v5474_v24 = vsub.f32 %v776_v0, %v810_v21  ;;  %v5476_v25 = vsub.f32 %v774_v1, %v808_v22  ;;  %v4691_v0 = vld [vmem:[%s7318_s8 + $0x4] sm:$0xf0] }
  0x99   : > { %v5494_v40 = vsub.f32 %v772_v2, %v806_v32  ;;  %v4260_v1 = vor.u32 %v4691_v0, %v4259_v63 }
  0x9a   : > { %v820_v26 = vmul.f32 %v5476_v25, %v5476_v25  ;;  %v822_v27 = vmul.f32 %v5474_v24, %v5474_v24 }
  0x9b   : > { %v818_v47 = vmul.f32 %v5494_v40, %v5494_v40  ;;  %4765 = vmatpush.bf16.msra.mxu1 %v4260_v1  ;;  %1011 = vmatpush.bf16.msra.mxu0 %v4260_v1 }
  0x9c   : > { %v830_v28 = vsel %vm780_vm0, %v820_v26, 0.0  ;;  %v836_v29 = vsel %vm780_vm0, %v822_v27, 0.0 }
  0x9d   : > { %v798_v30 = vpop.xlane.xlu1 %797  ;;  %831 = vadd.xlane.f32.xlu0 %v830_v28  ;;  %v792_v31 = vpop.xlane.xlu0 %791  ;;  %837 = vadd.xlane.f32.xlu2 %v836_v29  ;;  %v824_v48 = vsel %vm780_vm0, %v818_v47, 0.0  ;;  %v4277_v47 = vld [vmem:[%s7318_s8 + $0x28] sm:$0xf0] }
  0x9e   : > { %v811_v33 = vmul.f32 %v5470_v18, %v798_v30  ;;  %v809_v34 = vmul.f32 %v5470_v18, %v792_v31  ;;  %v786_v35 = vpop.xlane.xlu2 %785 }
  0x9f   : > { %v807_v36 = vmul.f32 %v5470_v18, %v786_v35 }
  0xa0   : > { %v5488_v37 = vsub.f32 %v777_v6, %v811_v33  ;;  %v5490_v38 = vsub.f32 %v775_v7, %v809_v34 }
  0xa1   : > { %v5492_v39 = vsub.f32 %v773_v8, %v807_v36  ;;  %v4696_v36 = vld [vmem:[%s7318_s8 + $0x34] sm:$0xf] }
  0xa2   : > { %v823_v41 = vmul.f32 %v5488_v37, %v5488_v37  ;;  %v821_v42 = vmul.f32 %v5490_v38, %v5490_v38 }
  0xa3   : > { %v819_v43 = vmul.f32 %v5492_v39, %v5492_v39 }
  0xa4   : > { %v839_v44 = vsel %vm780_vm0, %v823_v41, 0.0  ;;  %v833_v45 = vsel %vm780_vm0, %v821_v42, 0.0  ;;  %v4285_v41 = vld [vmem:[%s7318_s8 + $0x38] sm:$0xf0] }
  0xa5   : > { %840 = vadd.xlane.f32.xlu0 %v839_v44  ;;  %834 = vadd.xlane.f32.xlu1 %v833_v45  ;;  %v827_v46 = vsel %vm780_vm0, %v819_v43, 0.0  ;;  %v4288_v45 = vor.u32 %v4696_v36, %v4285_v41 }
  0xa6   : > { %828 = vadd.xlane.f32.xlu2 %v827_v46  ;;  %v4694_v46 = vld [vmem:[%s7318_s8 + $0x24] sm:$0xf] }
  0xa7   : > { %1032 = vmatpush.bf16.msrb.mxu1 %v4288_v45  ;;  %v4280_v51 = vor.u32 %v4694_v46, %v4277_v47 }
  0xab   : > { %1033 = vmatpush.bf16.msrb.mxu1 %v4280_v51 }
  0xad   : > { %825 = vadd.xlane.f32.xlu1 %v824_v48 }
 0x110   : > { %v832_v57 = vpop.xlane.xlu0 %831  ;;  %v838_v58 = vpop.xlane.xlu2 %837 }
 0x111   : > { %v844_v60 = vmul.f32 %v832_v57, %v5470_v18  ;;  %v846_v61 = vmul.f32 %v838_v58, %v5470_v18  ;;  %v4916_v57 = vld [vmem:[%s7316_s6] ss:$0 sm:$0xff] }
 0x113   : > { %v850_v62 = vadd.f32 1e-05, %v844_v60  ;;  %v5534_v2 = vadd.f32 1e-05, %v846_v61 }
 0x115   : > { %4932 = vrsqrt.f32 %v850_v62  ;;  %vm880_vm3 = vweird.f32 %v850_v62  ;;  %vm900_vm15 = vweird.f32 %v5534_v2 }
 0x116   : > { %4934 = vrsqrt.f32 %v5534_v2 }
 0x118   : > { %v835_v3 = vpop.xlane.xlu1 %834  ;;  %v841_v4 = vpop.xlane.xlu0 %840 }
 0x119   : > { %v845_v5 = vmul.f32 %v835_v3, %v5470_v18  ;;  %v847_v6 = vmul.f32 %v841_v4, %v5470_v18  ;;  %v829_v7 = vpop.xlane.xlu2 %828  ;;  %v4917_v3 = vld [vmem:[%s7317_s7] ss:$0 sm:$0xff] }
 0x11a   : > { %v843_v8 = vmul.f32 %v829_v7, %v5470_v18  ;;  %v4690_v7 = vld [vmem:[%s7318_s8 + $0x4] sm:$0xf] }
 0x11b   : > { %v4933_v9 = vpop.eup %4932  ;;  %v851_v10 = vadd.f32 1e-05, %v845_v5  ;;  %v5540_v11 = vadd.f32 1e-05, %v847_v6 }
 0x11c   : > { %v875_v12 = vmul.f32 %v4933_v9, %v850_v62  ;;  %v849_v13 = vadd.f32 1e-05, %v843_v8  ;;  %v5543_v15 = vpop.eup %4934  ;;  %vm881_vm2 = vweird.f32 %v4933_v9  ;;  %v4261_v8 = vld [vmem:[%s7318_s8 + $0x8] sm:$0xf0] }
 0x11d   : > { %4936 = vrsqrt.f32 %v851_v10  ;;  %v895_v22 = vmul.f32 %v5543_v15, %v5534_v2  ;;  %vm5558_vm4 = vmor %vm880_vm3, %vm881_vm2  ;;  %vm890_vm8 = vweird.f32 %v851_v10  ;;  %vm910_vm10 = vweird.f32 %v5540_v11 }
 0x11e   : > { %v876_v14 = vmul.f32 %v4933_v9, %v875_v12  ;;  %4938 = vrsqrt.f32 %v5540_v11  ;;  %vm870_vm6 = vweird.f32 %v849_v13  ;;  %vm901_vm1 = vweird.f32 %v5543_v15 }
 0x11f   : > { %4940 = vrsqrt.f32 %v849_v13  ;;  %v896_v34 = vmul.f32 %v5543_v15, %v895_v22 }
 0x120   : > { %v877_v16 = vmul.f32 0.5, %v876_v14  ;;  %v826_v17 = vpop.xlane.xlu1 %825 }
 0x121   : > { %v842_v19 = vmul.f32 %v826_v17, %v5470_v18  ;;  %v897_v55 = vmul.f32 0.5, %v896_v34 }
 0x122   : > { %v878_v20 = vsub.f32 1.5, %v877_v16  ;;  %v4264_v16 = vor.u32 %v4690_v7, %v4261_v8 }
 0x123   : > { %v4937_v21 = vpop.eup %4936  ;;  %v5548_v23 = vadd.f32 1e-05, %v842_v19  ;;  %v898_v4 = vsub.f32 1.5, %v897_v55 }
 0x124   : > { %v5550_v26 = vpop.eup %4938  ;;  %v879_v27 = vmul.f32 %v4933_v9, %v878_v20  ;;  %v885_v28 = vmul.f32 %v4937_v21, %v851_v10  ;;  %vm891_vm5 = vweird.f32 %v4937_v21 }
 0x125   : > { %v5552_v29 = vpop.eup %4940  ;;  %v905_v30 = vmul.f32 %v5550_v26, %v5540_v11  ;;  %4942 = vrsqrt.f32 %v5548_v23  ;;  %vm892_vm9 = vmor %vm890_vm8, %vm891_vm5  ;;  %vm911_vm12 = vweird.f32 %v5550_v26  ;;  %vm860_vm13 = vweird.f32 %v5548_v23 }
 0x126   : > { %v886_v31 = vmul.f32 %v4937_v21, %v885_v28  ;;  %v865_v32 = vmul.f32 %v5552_v29, %v849_v13  ;;  %v883_v42 = vsel %vm5558_vm4, %v4933_v9, %v879_v27  ;;  %vm871_vm7 = vweird.f32 %v5552_v29  ;;  %vm5621_vm2 = vmor %vm910_vm10, %vm911_vm12 }
 0x127   : > { %v906_v35 = vmul.f32 %v5550_v26, %v905_v30  ;;  %v916_v56 = vmul.f32 %v883_v42, %v5476_v25  ;;  %vm5596_vm11 = vmor %vm870_vm6, %vm871_vm7  ;;  %v4272_v25 = vor.u32 %v4692_v52, %v4269_v53  ;;  %v899_v2 = vmul.f32 %v5543_v15, %v898_v4 }
 0x128   : > { %v887_v43 = vmul.f32 0.5, %v886_v31  ;;  %v866_v44 = vmul.f32 %v5552_v29, %v865_v32  ;;  %vm902_vm4 = vmor %vm900_vm15, %vm901_vm1  ;;  %vm1067_vm5 = vcmask 130048   ;;  %v5292_v13 = vmov 0  }
 0x129   : > { %v907_v48 = vmul.f32 0.5, %v906_v35  ;;  %v925_v6 = vmul.f32 %v4916_v57, %v916_v56  ;;  %1034 = vmatpush.bf16.msrb.mxu1 %v4272_v25  ;;  %4825 = vset.pattern.permute.xlu1 %v5292_v13 }
 0x12a   : > { %v888_v49 = vsub.f32 1.5, %v887_v43  ;;  %v867_v50 = vmul.f32 0.5, %v866_v44  ;;  %4823 = vset.pattern.permute.xlu0 %v5292_v13  ;;  %4824 = vset.pattern.permute.xlu2 %v5292_v13 }
 0x12b   : > { %v4943_v54 = vpop.eup %4942  ;;  %v908_v63 = vsub.f32 1.5, %v907_v48  ;;  %v934_v17 = vadd.f32 %v4917_v3, %v925_v6 }
 0x12c   : > { %v889_v58 = vmul.f32 %v4937_v21, %v888_v49  ;;  %v868_v59 = vsub.f32 1.5, %v867_v50  ;;  %v855_v60 = vmul.f32 %v4943_v54, %v5548_v23  ;;  %vm861_vm14 = vweird.f32 %v4943_v54 }
 0x12d   : > { %v909_v12 = vmul.f32 %v5550_v26, %v908_v63  ;;  %vm862_vm3 = vmor %vm860_vm13, %vm861_vm14  ;;  %1035 = vmatpush.bf16.msrb.mxu1 %v4264_v16  ;;  %vm1110_vm14 = vcmask 392192  }
 0x12e   : > { %v893_v62 = vsel %vm892_vm9, %v4937_v21, %v889_v58  ;;  %v869_v0 = vmul.f32 %v5552_v29, %v868_v59  ;;  %v856_v1 = vmul.f32 %v4943_v54, %v855_v60 }
 0x12f   : > { %v917_v5 = vmul.f32 %v893_v62, %v5490_v38  ;;  %v913_v11 = vsel %vm5621_vm2, %v5550_v26, %v909_v12  ;;  %v665_v12 = vld [vmem:[%s5673_s29 + $0x10] sm:$0xff] }
 0x130   : > { %v873_v9 = vsel %vm5596_vm11, %v5552_v29, %v869_v0  ;;  %v857_v10 = vmul.f32 0.5, %v856_v1  ;;  %v903_v29 = vsel %vm902_vm4, %v5543_v15, %v899_v2  ;;  %v668_v2 = vld [vmem:[%s5673_s29 + $0x28] sm:$0xff] }
 0x131   : > { %v926_v38 = vmul.f32 %v4916_v57, %v917_v5  ;;  %v915_v20 = vmul.f32 %v873_v9, %v5492_v39  ;;  %v919_v39 = vmul.f32 %v913_v11, %v5488_v37  ;;  %v918_v33 = vmul.f32 %v903_v29, %v5474_v24  ;;  %v949_v24 = vld [vmem:[%s7319_s9] sm:$0x3] }
 0x132   : > { %v858_v14 = vsub.f32 1.5, %v857_v10  ;;  %v952_v61 = vperm.slane %v949_v24, 1  ;;  %v667_v11 = vld [vmem:[%s5673_s29 + $0x20] sm:$0xff] }
 0x133   : > { %v935_v19 = vadd.f32 %v4917_v3, %v926_v38  ;;  %v924_v28 = vmul.f32 %v4916_v57, %v915_v20  ;;  %v928_v35 = vmul.f32 %v4916_v57, %v919_v39  ;;  %v927_v26 = vmul.f32 %v4916_v57, %v918_v33  ;;  %v5717_v39 = vld [vmem:[%s652_s22] ss:$0 sm:$0xff]  ;;  %s7344_s22 = smov 112  }
 0x134   : > { %v859_v21 = vmul.f32 %v4943_v54, %v858_v14 }
 0x135   : > { %v939_v22 = vpack.c.bf16 %v935_v19, %v934_v17  ;;  %v933_v32 = vadd.f32 %v4917_v3, %v924_v28  ;;  %v937_v36 = vadd.f32 %v4917_v3, %v928_v35  ;;  %v936_v41 = vadd.f32 %v4917_v3, %v927_v26 }
 0x136   : > { %v863_v23 = vsel %vm862_vm3, %v4943_v54, %v859_v21 }
 0x137   : > { %4290 = vmatmul.msk.bf16.vlgmr.msra.gmra.mxu1 %vm780_vm0, %v939_v22  ;;  %v914_v27 = vmul.f32 %v863_v23, %v5494_v40  ;;  %v940_v42 = vpack.c.bf16 %v937_v36, %v936_v41  ;;  %v951_v40 = vperm.slane %v949_v24, 0  ;;  %v671_v23 = vld [vmem:[%s655_s23] sm:$0x1]  ;;  %v5293_v36 = vmov -1e+30   ;;  %s7340_s23 = smov 32  }
 0x138   : > { %vm756_vm6 = vcmp.gt.f32.partialorder %v671_v23, 0.5 }
 0x139   : > { %v923_v30 = vmul.f32 %v4916_v57, %v914_v27  ;;  %v757_v29 = vsel %vm756_vm6, 1, %v5292_v13 }
 0x13b   : > { %v932_v31 = vadd.f32 %v4917_v3, %v923_v30 }
 0x13d   : > { %v938_v34 = vpack.c.bf16 %v933_v32, %v932_v31  ;;  %v758_v32 = vperm.slane %v757_v29, 0  ;;  %v663_v29 = vld [vmem:[%s5673_s29] sm:$0xff] }
 0x13f   : > { %4289 = vmatmul.msk.bf16.vlgmr.msra.gmra.mxu0 %vm780_vm0, %v938_v34  ;;  %vm5721_vm9 = vcmp.eq.s32.totalorder %v758_v32, 1 }
 0x147   : > { %4291 = vmatmul.msk.bf16.gmra.mxu1 %vm780_vm0, %v940_v42 }
 0x157   : > { %4292 = vmatmul.msk.bf16.vlgmr.msrb.gmra.mxu1 %vm780_vm0, %v938_v34 }
 0x167   : > { %4293 = vmatmul.msk.bf16.gmra.mxu1 %vm780_vm0, %v939_v22  ;;  %v666_v22 = vld [vmem:[%s5673_s29 + $0x18] sm:$0xff] }
 0x177   : > { %4294 = vmatmul.msk.bf16.gmra.mxu1 %vm780_vm0, %v940_v42 }
 0x1b4   : > { %v1018_v37 = vpop.f32.mrf.mxu1 }
 0x1b5   : > { %v1019_v44 = vadd.f32 %v1018_v37, %v951_v40 }
 0x1bc   : > { %v1013_v15 = vpop.f32.mrf.mxu0  ;;  %v1020_v43 = vpop.f32.mrf.mxu1 }
 0x1bd   : > { %v1021_v45 = vadd.f32 %v1020_v43, %v951_v40  ;;  %v1014_v49 = vadd.f32 %v1013_v15, %v951_v40 }
 0x1bf   : > { %v5643_v46 = vpack.c.bf16 %v1021_v45, %v1019_v44 }
 0x1c1   : > { %1063 = vrot.lane.b32.xlu1 %v5643_v46, %s7334_s1 }
 0x1c4   : > { %v1015_v47 = vpop.f32.mrf.mxu0  ;;  %v1023_v48 = vpop.f32.mrf.mxu1 }
 0x1c5   : > { %v1016_v50 = vadd.f32 %v1015_v47, %v951_v40  ;;  %v1024_v53 = vadd.f32 %v1023_v48, %v951_v40 }
 0x1c7   : > { %v5647_v51 = vpack.c.bf16 %v1016_v50, %v1014_v49 }
 0x1c9   : > { %1061 = vrot.lane.b32.xlu2 %v5647_v51, %s7334_s1  ;;  %726 = vperm.xlu1 %4825, %v665_v12  }
 0x1cc   : > { %v1025_v52 = vpop.f32.mrf.mxu1 }
 0x1cd   : > { %v1026_v54 = vadd.f32 %v1025_v52, %v951_v40 }
 0x1cf   : > { %v5651_v55 = vpack.c.bf16 %v1026_v54, %v1024_v53 }
 0x1d1   : > { %1065 = vrot.lane.b32.xlu0 %v5651_v55, %s7334_s1  ;;  %s7367_s1 = sld [smem:[#allocation11_spill]] }
 0x1d4   : > { %v1037_v56 = vpop.f32.mrf.mxu1 }
 0x1d5   : > { %v1038_v6 = vadd.f32 %v1037_v56, %v952_v61 }
 0x1d7   : > { %s5679_s19 = scalar_lea.vmem %s7367_s1, %s5450_s25  ;;  %s7369_s1 = scalar_lea.vmem %s7365_s3, %s5447_s24 }
 0x1d8   : > { %v659_v14 = vld [vmem:[%s5679_s19 + $0x10] sm:$0xff]  ;;  %v661_v17 = vld [vmem:[%s5679_s19 + $0x20] sm:$0xff]  ;;  %v660_v20 = vld [vmem:[%s5679_s19 + $0x18] sm:$0xff]  ;;  %s5294_s24 = smov 48   ;;  %s7373_s25 = smov 112  }
 0x1d9   : > { %684 = vperm.xlu0 %4823, %v659_v14   ;;  %694 = vperm.xlu1 %4825, %v661_v17   ;;  %v662_v21 = vld [vmem:[%s5679_s19 + $0x28] sm:$0xff]  ;;  %v5715_v30 = vld [vmem:[%s7369_s1] ss:$0 sm:$0xff]  ;;  %s7374_s1 = smov 16  }
 0x1da   : > { %689 = vperm.xlu2 %4824, %v660_v20   ;;  %v657_v14 = vld [vmem:[%s5679_s19] sm:$0xff] }
 0x1dc   : > { %v1039_v57 = vpop.f32.mrf.mxu1 }
 0x1dd   : > { %v1040_v4 = vadd.f32 %v1039_v57, %v952_v61 }
 0x1df   : > { %v5665_v7 = vpack.c.bf16 %v1040_v4, %v1038_v6 }
 0x1e1   : > { %741 = vperm.xlu1 %4825, %v668_v2   ;;  %699 = vperm.xlu0 %4823, %v662_v21   ;;  %v658_v2 = vld [vmem:[%s5679_s19 + $0x8] sm:$0xff]  ;;  %s7375_s19 = smov 32  }
 0x1e2   : > { %731 = vperm.xlu2 %4824, %v666_v22  }
 0x1e4   : > { %v1042_v58 = vpop.f32.mrf.mxu1 }
 0x1e5   : > { %v1043_v3 = vadd.f32 %v1042_v58, %v952_v61 }
 0x1ea   : > { %736 = vperm.xlu2 %4824, %v667_v11  }
 0x1ec   : > { %v1044_v59 = vpop.f32.mrf.mxu1 }
 0x1ed   : > { %v1045_v0 = vadd.f32 %v1044_v59, %v952_v61 }
 0x1ef   : > { %v5662_v5 = vpack.c.bf16 %v1045_v0, %v1043_v3 }
 0x1f4   : > { %v1047_v60 = vpop.f32.mrf.mxu1 }
 0x1f5   : > { %v1048_v62 = vadd.f32 %v1047_v60, %v952_v61 }
 0x1fc   : > { %v1049_v25 = vpop.f32.mrf.mxu1 }
 0x1fd   : > { %v1050_v63 = vadd.f32 %v1049_v25, %v952_v61 }
 0x1ff   : > { %v5659_v1 = vpack.c.bf16 %v1050_v63, %v1048_v62 }
 0x201   : > { %4766 = vmatpush.bf16.msra.mxu3 %v5659_v1 }
 0x205   : > { %4767 = vmatpush.bf16.msra.mxu3 %v5662_v5 }
 0x209   : > { %4768 = vmatpush.bf16.msra.mxu3 %v5665_v7 }
 0x223   : > { %v1062_v16 = vpop.permute.xlu2 %1061 }
 0x224   : > { %v1078_v19 = vsel %vm1067_vm5, %v1062_v16, 0  ;;  %v664_v16 = vld [vmem:[%s5673_s29 + $0x8] sm:$0xff] }
 0x233   : > { %v1064_v10 = vpop.permute.xlu1 %1063 }
 0x234   : > { %v1081_v38 = vsel %vm1067_vm5, %v1064_v10, 0  ;;  %v690_v27 = vpop.permute.xlu2 %689 }
 0x235   : > { %vm708_vm12 = vcmp.eq.f32.partialorder %v690_v27, %v5715_v30 }
 0x23b   : > { %v727_v33 = vpop.permute.xlu1 %726 }
 0x23c   : > { %vm746_vm7 = vcmp.le.f32.partialorder %v5717_v39, %v727_v33  ;;  %v732_v26 = vpop.permute.xlu2 %731 }
 0x23d   : > { %vm747_vm13 = vcmp.le.f32.partialorder %v5717_v39, %v732_v26 }
 0x23e   : > { %vm753_vm15 = vmand %vm708_vm12, %vm747_vm13 }
 0x23f   : > { %vm763_vm1 = vmand %vm753_vm15, %vm5721_vm9 }
 0x240   : > { %v5741_v43 = vsel %vm763_vm1, 0.0, %v5293_v36 }
 0x243   : > { %v1066_v8 = vpop.permute.xlu0 %1065 }
 0x244   : > { %v1084_v9 = vsel %vm1067_vm5, %v1066_v8, 0  ;;  %v737_v15 = vpop.permute.xlu2 %736 }
 0x245   : > { %1091 = vmatpush.bf16.xpose.msra.mxu2 %v1084_v9  ;;  %vm748_vm3 = vcmp.le.f32.partialorder %v5717_v39, %v737_v15 }
 0x24b   : > { %v685_v31 = vpop.permute.xlu0 %684  ;;  %v695_v24 = vpop.permute.xlu1 %694 }
 0x24c   : > { %vm707_vm8 = vcmp.eq.f32.partialorder %v685_v31, %v5715_v30  ;;  %vm709_vm2 = vcmp.eq.f32.partialorder %v695_v24, %v5715_v30 }
 0x24d   : > { %1092 = vmatpush.bf16.xpose.msra.mxu2 %v1081_v38  ;;  %vm752_vm10 = vmand %vm707_vm8, %vm746_vm7 }
 0x24e   : > { %vm762_vm11 = vmand %vm752_vm10, %vm5721_vm9 }
 0x24f   : > { %v5730_v41 = vsel %vm762_vm11, 0.0, %v5293_v36  ;;  %vm754_vm4 = vmand %vm709_vm2, %vm748_vm3 }
 0x250   : > { %vm764_vm6 = vmand %vm754_vm4, %vm5721_vm9 }
 0x251   : > { %v5750_v50 = vsel %vm764_vm6, 0.0, %v5293_v36 }
 0x253   : > { %v742_v47 = vpop.permute.xlu1 %741  ;;  %v700_v48 = vpop.permute.xlu0 %699 }
 0x254   : > { %vm749_vm7 = vcmp.le.f32.partialorder %v5717_v39, %v742_v47  ;;  %vm710_vm8 = vcmp.eq.f32.partialorder %v700_v48, %v5715_v30 }
 0x255   : > { %1093 = vmatpush.bf16.xpose.msra.mxu2 %v1078_v19  ;;  %vm755_vm10 = vmand %vm710_vm8, %vm749_vm7 }
 0x256   : > { %vm765_vm11 = vmand %vm755_vm10, %vm5721_vm9 }
 0x257   : > { %v5757_v56 = vsel %vm765_vm11, 0.0, %v5293_v36 }
 0x25c   : > { %4295 = vmatmul.msk.bf16.vlgmr.msra.gmra.mxu2 %vm1067_vm5, %v5647_v51 }
 0x25d   : > { %1194 = vmatpush.bf16.msrb.mxu2 %v5659_v1 }
 0x261   : > { %1195 = vmatpush.bf16.msrb.mxu2 %v5662_v5 }
 0x265   : > { %1196 = vmatpush.bf16.msrb.mxu2 %v5665_v7 }
 0x26c   : > { %4296 = vmatmul.msk.bf16.gmra.mxu2 %vm1067_vm5, %v5643_v46 }
 0x27c   : > { %4297 = vmatmul.msk.bf16.gmra.mxu2 %vm1067_vm5, %v5651_v55 }
 0x2df   : > { %v5708_v28 = vpop.f32.mrf.mxu2 }
 0x2e7   : > { %v5725_v35 = vpop.f32.mrf.mxu2 }
 0x2ef   : > { %v1100_v42 = vpop.f32.mrf.mxu2 }
 0x2f0   : > { %v1101_v37 = vadd.f32 %v1100_v42, %v5730_v41 }
 0x2f2   : > { %v1117_v40 = vsel %vm1110_vm14, %v1101_v37, -inf }
 0x2f3   : > { %1118 = vmax.xlane.f32.xlu0 %v1117_v40 }
 0x2f7   : > { %v1102_v44 = vpop.f32.mrf.mxu2 }
 0x2f8   : > { %v1103_v45 = vadd.f32 %v1102_v44, %v5741_v43 }
 0x2fa   : > { %v1120_v49 = vsel %vm1110_vm14, %v1103_v45, -inf }
 0x2fb   : > { %1121 = vmax.xlane.f32.xlu2 %v1120_v49 }
 0x2ff   : > { %v1105_v52 = vpop.f32.mrf.mxu2 }
 0x300   : > { %v1106_v53 = vadd.f32 %v1105_v52, %v5750_v50 }
 0x302   : > { %v1123_v54 = vsel %vm1110_vm14, %v1106_v53, -inf }
 0x303   : > { %1124 = vmax.xlane.f32.xlu1 %v1123_v54 }
 0x307   : > { %v1107_v57 = vpop.f32.mrf.mxu2 }
 0x308   : > { %v1108_v58 = vadd.f32 %v1107_v57, %v5757_v56 }
 0x30a   : > { %v1126_v59 = vsel %vm1110_vm14, %v1108_v58, -inf }
 0x30b   : > { %1127 = vmax.xlane.f32.xlu0 %v1126_v59 }
 0x31f   : > { %1221 = vrot.lane.b32.xlu0 %v5643_v46, %s5294_s24 }
 0x327   : > { %1213 = vrot.lane.b32.xlu0 %v5647_v51, %s7344_s22 }
 0x32f   : > { %1556 = vrot.lane.b32.xlu0 %v5651_v55, %s7342_s20 }
 0x337   : > { %1554 = vrot.lane.b32.xlu0 %v5643_v46, %s7342_s20 }
 0x33f   : > { %1381 = vrot.lane.b32.xlu0 %v5647_v51, %s7336_s27 }
 0x366   : > { %v1119_v60 = vpop.xlane.xlu0 %1118 }
 0x367   : > { %v1131_v61 = vsub.f32 %v1101_v37, %v1119_v60 }
 0x369   : > { %v1139_v25 = vmul.f32 1.442695, %v1131_v61 }
 0x36b   : > { %4944 = vpow2.f32 %v1139_v25 }
 0x36e   : > { %v1122_v62 = vpop.xlane.xlu2 %1121 }
 0x36f   : > { %v1132_v63 = vsub.f32 %v1103_v45, %v1122_v62 }
 0x371   : > { %v4945_v0 = vpop.eup %4944  ;;  %v1141_v3 = vmul.f32 1.442695, %v1132_v63 }
 0x372   : > { %v1153_v4 = vsel %vm1110_vm14, %v4945_v0, 0.0 }
 0x373   : > { %4946 = vpow2.f32 %v1141_v3  ;;  %1154 = vadd.xlane.f32.xlu2 %v1153_v4 }
 0x376   : > { %v1125_v6 = vpop.xlane.xlu1 %1124 }
 0x377   : > { %v1133_v8 = vsub.f32 %v1106_v53, %v1125_v6 }
 0x379   : > { %v4947_v9 = vpop.eup %4946  ;;  %v1143_v10 = vmul.f32 1.442695, %v1133_v8 }
 0x37a   : > { %v1156_v38 = vsel %vm1110_vm14, %v4947_v9, 0.0 }
 0x37b   : > { %4948 = vpow2.f32 %v1143_v10  ;;  %1157 = vadd.xlane.f32.xlu1 %v1156_v38 }
 0x37e   : > { %v1128_v17 = vpop.xlane.xlu0 %1127 }
 0x37f   : > { %v1134_v19 = vsub.f32 %v1108_v58, %v1128_v17 }
 0x381   : > { %v5773_v12 = vpop.eup %4948  ;;  %v1145_v20 = vmul.f32 1.442695, %v1134_v19 }
 0x382   : > { %v1159_v13 = vsel %vm1110_vm14, %v5773_v12, 0.0 }
 0x383   : > { %1160 = vadd.xlane.f32.xlu0 %v1159_v13  ;;  %4950 = vpow2.f32 %v1145_v20 }
 0x389   : > { %v5802_v21 = vpop.eup %4950 }
 0x38a   : > { %v1162_v22 = vsel %vm1110_vm14, %v5802_v21, 0.0 }
 0x38b   : > { %1219 = vrot.lane.b32.xlu2 %v5647_v51, %s5294_s24 }
 0x391   : > { %v1222_v11 = vpop.permute.xlu0 %1221 }
 0x392   : > { %v1238_v47 = vsel %vm1067_vm5, %v1222_v11, 0 }
 0x393   : > { %1391 = vrot.lane.b32.xlu2 %v5651_v55, %s7340_s23 }
 0x394   : > { %1223 = vrot.lane.b32.xlu1 %v5651_v55, %s5294_s24 }
 0x397   : > { %1548 = vrot.lane.b32.xlu0 %v5643_v46, %s7338_s26 }
 0x399   : > { %v5811_v31 = vpop.permute.xlu0 %1213 }
 0x39b   : > { %1217 = vrot.lane.b32.xlu2 %v5651_v55, %s7344_s22 }
 0x39c   : > { %1215 = vrot.lane.b32.xlu1 %v5643_v46, %s7344_s22 }
 0x39f   : > { %674 = vperm.xlu0 %4823, %v657_v14  }
 0x3a3   : > { %1552 = vrot.lane.b32.xlu2 %v5647_v51, %s7342_s20 }
 0x3a4   : > { %1389 = vrot.lane.b32.xlu1 %v5643_v46, %s7340_s23 }
 0x3a7   : > { %721 = vperm.xlu0 %4823, %v664_v16  }
 0x3ac   : > { %1387 = vrot.lane.b32.xlu1 %v5647_v51, %s7340_s23 }
 0x3b4   : > { %1546 = vrot.lane.b32.xlu1 %v5647_v51, %s7338_s26 }
 0x3bc   : > { %1385 = vrot.lane.b32.xlu1 %v5651_v55, %s7336_s27 }
 0x3c4   : > { %679 = vperm.xlu1 %4825, %v658_v2  }
 0x3cc   : > { %1163 = vadd.xlane.f32.xlu2 %v1162_v22 }
 0x3e4   : > { %1383 = vrot.lane.b32.xlu2 %v5643_v46, %s7336_s27 }
 0x3e6   : > { %v1155_v51 = vpop.xlane.xlu2 %1154 }
 0x3e7   : > { %4952 = vrcp.f32 %v1155_v51 }
 0x3ec   : > { %1550 = vrot.lane.b32.xlu2 %v5651_v55, %s7338_s26  ;;  %v1557_v55 = vpop.permute.xlu0 %1556 }
 0x3ed   : > { %v4953_v32 = vpop.eup %4952  ;;  %v1574_v54 = vsel %vm1067_vm5, %v1557_v55, 0 }
 0x3ee   : > { %v1158_v23 = vpop.xlane.xlu1 %1157  ;;  %v1220_v27 = vpop.permute.xlu2 %1219  ;;  %v1173_v42 = vmul.f32 %v4953_v32, %v4945_v0 }
 0x3ef   : > { %4954 = vrcp.f32 %v1158_v23  ;;  %v1235_v52 = vsel %vm1067_vm5, %v1220_v27, 0 }
 0x3f4   : > { %716 = vperm.xlu2 %4824, %v663_v29   ;;  %v1555_v40 = vpop.permute.xlu0 %1554 }
 0x3f5   : > { %v4955_v33 = vpop.eup %4954  ;;  %v1571_v25 = vsel %vm1067_vm5, %v1555_v40, 0 }
 0x3f6   : > { %v1392_v26 = vpop.permute.xlu2 %1391  ;;  %v1174_v37 = vmul.f32 %v4955_v33, %v4947_v9 }
 0x3f7   : > { %v1409_v46 = vsel %vm1067_vm5, %v1392_v26, 0 }
 0x3f8   : > { %1416 = vmatpush.bf16.xpose.msra.mxu1 %v1409_v46  ;;  %v1178_v24 = vpack.c.bf16 %v1174_v37, %v1173_v42 }
 0x3fa   : > { %4299 = vmatmul.msk.bf16.vlgmr.msra.gmra.mxu3 %vm1110_vm14, %v1178_v24 }
 0x3fc   : > { %v1382_v48 = vpop.permute.xlu0 %1381 }
 0x3fe   : > { %v1218_v58 = vpop.permute.xlu2 %1217 }
 0x404   : > { %v1161_v57 = vpop.xlane.xlu0 %1160 }
 0x405   : > { %4956 = vrcp.f32 %v1161_v57 }
 0x406   : > { %v1224_v15 = vpop.permute.xlu1 %1223  ;;  %v1553_v62 = vpop.permute.xlu2 %1552 }
 0x407   : > { %v1241_v44 = vsel %vm1067_vm5, %v1224_v15, 0  ;;  %v1568_v0 = vsel %vm1067_vm5, %v1553_v62, 0 }
 0x408   : > { %1248 = vmatpush.bf16.xpose.msrb.mxu3 %v1241_v44 }
 0x40b   : > { %v4957_v14 = vpop.eup %4956 }
 0x40c   : > { %v1549_v61 = vpop.permute.xlu0 %1548  ;;  %v1175_v19 = vmul.f32 %v4957_v14, %v5773_v12 }
 0x40e   : > { %v1216_v45 = vpop.permute.xlu1 %1215 }
 0x410   : > { %1249 = vmatpush.bf16.xpose.msrb.mxu3 %v1238_v47 }
 0x414   : > { %v675_v3 = vpop.permute.xlu0 %674 }
 0x415   : > { %vm705_vm2 = vcmp.eq.f32.partialorder %v675_v3, %v5715_v30 }
 0x416   : > { %v1390_v49 = vpop.permute.xlu1 %1389 }
 0x417   : > { %v1406_v53 = vsel %vm1067_vm5, %v1390_v49, 0 }
 0x418   : > { %1250 = vmatpush.bf16.xpose.msrb.mxu3 %v1235_v52  ;;  %1417 = vmatpush.bf16.xpose.msra.mxu1 %v1406_v53 }
 0x41c   : > { %v722_v6 = vpop.permute.xlu0 %721 }
 0x41d   : > { %vm745_vm12 = vcmp.le.f32.partialorder %v5717_v39, %v722_v6 }
 0x41e   : > { %v1388_v59 = vpop.permute.xlu1 %1387 }
 0x41f   : > { %v1403_v60 = vsel %vm1067_vm5, %v1388_v59, 0 }
 0x420   : > { %1581 = vmatpush.bf16.xpose.msra.mxu3 %v1574_v54  ;;  %1418 = vmatpush.bf16.xpose.msra.mxu1 %v1403_v60 }
 0x426   : > { %v1547_v63 = vpop.permute.xlu1 %1546 }
 0x427   : > { %4307 = vmatmul.msk.bf16.vlgmr.msra.gmra.mxu1 %vm1067_vm5, %v1382_v48 }
 0x428   : > { %1582 = vmatpush.bf16.xpose.msra.mxu3 %v1571_v25 }
 0x42e   : > { %v1386_v4 = vpop.permute.xlu1 %1385 }
 0x430   : > { %1583 = vmatpush.bf16.xpose.msra.mxu3 %v1568_v0 }
 0x436   : > { %v680_v8 = vpop.permute.xlu1 %679 }
 0x437   : > { %vm706_vm13 = vcmp.eq.f32.partialorder %v680_v8, %v5715_v30 }
 0x438   : > { %vm751_vm15 = vmand %vm706_vm13, %vm745_vm12 }
 0x439   : > { %vm761_vm1 = vmand %vm751_vm15, %vm5721_vm9 }
 0x43a   : > { %v5829_v9 = vsel %vm761_vm1, 0.0, %v5293_v36 }
 0x43b   : > { %v5833_v10 = vadd.f32 %v5725_v35, %v5829_v9 }
 0x43d   : > { %v1114_v38 = vsel %vm1110_vm14, %v5833_v10, -inf }
 0x43e   : > { %1115 = vmax.xlane.f32.xlu0 %v1114_v38 }
 0x43f   : > { %v1164_v13 = vpop.xlane.xlu2 %1163 }
 0x440   : > { %4958 = vrcp.f32 %v1164_v13 }
 0x446   : > { %v4959_v16 = vpop.eup %4958 }
 0x447   : > { %v1384_v17 = vpop.permute.xlu2 %1383  ;;  %v1176_v20 = vmul.f32 %v4959_v16, %v5802_v21 }
 0x448   : > { %4308 = vmatmul.msk.bf16.gmra.mxu1 %vm1067_vm5, %v1384_v17 }
 0x449   : > { %v1179_v2 = vpack.c.bf16 %v1176_v20, %v1175_v19 }
 0x44b   : > { %4300 = vmatmul.msk.bf16.gmra.mxu3 %vm1110_vm14, %v1179_v2 }
 0x44f   : > { %v1551_v35 = vpop.permute.xlu2 %1550 }
 0x457   : > { %v717_v22 = vpop.permute.xlu2 %716 }
 0x458   : > { %vm744_vm3 = vcmp.le.f32.partialorder %v5717_v39, %v717_v22  ;;  %4309 = vmatmul.msk.bf16.gmra.mxu1 %vm1067_vm5, %v1386_v4 }
 0x459   : > { %vm750_vm4 = vmand %vm705_vm2, %vm744_vm3 }
 0x45a   : > { %vm760_vm6 = vmand %vm750_vm4, %vm5721_vm9  ;;  %vm1789_vm9 = vcmask 261120  }
 0x45b   : > { %v5847_v12 = vsel %vm760_vm6, 0.0, %v5293_v36  ;;  %4301 = vmatmul.msk.bf16.vlgmr.msrb.gmra.mxu3 %vm1067_vm5, %v5811_v31 }
 0x45c   : > { %v1096_v21 = vadd.f32 %v5708_v28, %v5847_v12 }
 0x45e   : > { %v1111_v51 = vsel %vm1110_vm14, %v1096_v21, -inf }
 0x45f   : > { %1112 = vmax.xlane.f32.xlu2 %v1111_v51 }
 0x46b   : > { %4302 = vmatmul.msk.bf16.gmra.mxu3 %vm1067_vm5, %v1216_v45 }
 0x47b   : > { %4303 = vmatmul.msk.bf16.gmra.mxu3 %vm1067_vm5, %v1218_v58 }
 0x47d   : > { %v5869_v23 = vpop.f32.mrf.mxu3 }
 0x485   : > { %v5875_v29 = vpop.f32.mrf.mxu3 }
 0x48b   : > { %4313 = vmatmul.msk.bf16.vlgmr.msra.gmra.mxu3 %vm1067_vm5, %v1547_v63 }
 0x49b   : > { %4314 = vmatmul.msk.bf16.gmra.mxu3 %vm1067_vm5, %v1549_v61 }
 0x4a4   : > { %v1420_v30 = vpop.f32.mrf.mxu1 }
 0x4a5   : > { %v5859_v39 = vadd.f32 %v1420_v30, %v5847_v12 }
 0x4a7   : > { %v1435_v34 = vsel %vm1110_vm14, %v5859_v39, -inf }
 0x4a8   : > { %1436 = vmax.xlane.f32.xlu0 %v1435_v34 }
 0x4ab   : > { %4315 = vmatmul.msk.bf16.gmra.mxu3 %vm1067_vm5, %v1551_v35 }
 0x4ac   : > { %v1422_v28 = vpop.f32.mrf.mxu1 }
 0x4ad   : > { %v5865_v36 = vadd.f32 %v1422_v28, %v5829_v9 }
 0x4af   : > { %v1438_v11 = vsel %vm1110_vm14, %v5865_v36, -inf }
 0x4b0   : > { %1439 = vmax.xlane.f32.xlu1 %v1438_v11 }
 0x4b1   : > { %v1116_v47 = vpop.xlane.xlu0 %1115 }
 0x4b2   : > { %v1130_v53 = vsub.f32 %v5833_v10, %v1116_v47 }
 0x4b4   : > { %v1137_v57 = vmul.f32 1.442695, %v1130_v53 }
 0x4bc   : > { %1343 = vrot.lane.b32.xlu0 %v5659_v1, %s7344_s22 }
 0x4c4   : > { %1339 = vrot.lane.b32.xlu0 %v5665_v7, %s7344_s22 }
 0x4c5   : > { %v1425_v27 = vpop.f32.mrf.mxu1 }
 0x4c6   : > { %v5878_v31 = vadd.f32 %v1425_v27, %v5730_v41 }
 0x4c8   : > { %v1441_v32 = vsel %vm1110_vm14, %v5878_v31, -inf }
 0x4c9   : > { %1341 = vrot.lane.b32.xlu1 %v5662_v5, %s7344_s22  ;;  %1442 = vmax.xlane.f32.xlu2 %v1441_v32 }
 0x4cd   : > { %v1427_v33 = vpop.f32.mrf.mxu1 }
 0x4ce   : > { %v5885_v26 = vadd.f32 %v1427_v33, %v5741_v43  ;;  %v5887_v42 = vpop.f32.mrf.mxu3 }
 0x4d0   : > { %v1444_v37 = vsel %vm1110_vm14, %v5885_v26, -inf }
 0x4d1   : > { %1508 = vrot.lane.b32.xlu1 %v5659_v1, %s7336_s27  ;;  %1445 = vmax.xlane.f32.xlu2 %v1444_v37 }
 0x4d2   : > { %v1113_v46 = vpop.xlane.xlu2 %1112 }
 0x4d3   : > { %v1129_v15 = vsub.f32 %v1096_v21, %v1113_v46 }
 0x4d5   : > { %v1430_v24 = vpop.f32.mrf.mxu1  ;;  %v1135_v45 = vmul.f32 1.442695, %v1129_v15 }
 0x4d6   : > { %v5894_v55 = vadd.f32 %v1430_v24, %v5750_v50  ;;  %v5896_v40 = vpop.f32.mrf.mxu3 }
 0x4d7   : > { %4960 = vpow2.f32 %v1135_v45 }
 0x4d8   : > { %v1447_v44 = vsel %vm1110_vm14, %v5894_v55, -inf  ;;  %4962 = vpow2.f32 %v1137_v57 }
 0x4d9   : > { %1448 = vmax.xlane.f32.xlu2 %v1447_v44 }
 0x4dd   : > { %v1432_v48 = vpop.f32.mrf.mxu1  ;;  %v5906_v58 = vpop.eup %4960 }
 0x4de   : > { %v5901_v49 = vadd.f32 %v1432_v48, %v5757_v56  ;;  %v1252_v52 = vpop.f32.mrf.mxu3  ;;  %v1147_v60 = vsel %vm1110_vm14, %v5906_v58, 0.0  ;;  %v5910_v61 = vpop.eup %4962 }
 0x4df   : > { %v1150_v62 = vsel %vm1110_vm14, %v5910_v61, 0.0  ;;  %v5915_v63 = vadd.f32 %v1252_v52, %v5847_v12 }
 0x4e0   : > { %v1450_v54 = vsel %vm1110_vm14, %v5901_v49, -inf }
 0x4e1   : > { %1451 = vmax.xlane.f32.xlu2 %v1450_v54  ;;  %v1267_v3 = vsel %vm1110_vm14, %v5915_v63, -inf }
 0x4e6   : > { %v1254_v59 = vpop.f32.mrf.mxu3 }
 0x4e7   : > { %v1255_v15 = vadd.f32 %v1254_v59, %v5829_v9 }
 0x4e9   : > { %1148 = vadd.xlane.f32.xlu2 %v1147_v60  ;;  %v1270_v44 = vsel %vm1110_vm14, %v1255_v15, -inf }
 0x4ee   : > { %v1257_v25 = vpop.f32.mrf.mxu3 }
 0x4ef   : > { %v5947_v11 = vadd.f32 %v1257_v25, %v5730_v41 }
 0x4f1   : > { %1151 = vadd.xlane.f32.xlu2 %v1150_v62  ;;  %v1273_v37 = vsel %vm1110_vm14, %v5947_v11, -inf }
 0x4f6   : > { %v1259_v0 = vpop.f32.mrf.mxu3 }
 0x4f7   : > { %v5920_v4 = vadd.f32 %v1259_v0, %v5741_v43 }
 0x4f9   : > { %v1276_v8 = vsel %vm1110_vm14, %v5920_v4, -inf }
 0x4fb   : > { %1268 = vmax.xlane.f32.xlu1 %v1267_v3 }
 0x4fe   : > { %v1262_v6 = vpop.f32.mrf.mxu3 }
 0x4ff   : > { %v5925_v10 = vadd.f32 %v1262_v6, %v5750_v50 }
 0x501   : > { %v1279_v13 = vsel %vm1110_vm14, %v5925_v10, -inf }
 0x503   : > { %1277 = vmax.xlane.f32.xlu1 %v1276_v8 }
 0x506   : > { %v5927_v38 = vpop.f32.mrf.mxu3 }
 0x50b   : > { %1280 = vmax.xlane.f32.xlu1 %v1279_v13 }
 0x50e   : > { %v5931_v14 = vpop.f32.mrf.mxu3 }
 0x516   : > { %v1587_v16 = vpop.f32.mrf.mxu3 }
 0x517   : > { %v5975_v62 = vadd.f32 %v1587_v16, %v5829_v9 }
 0x519   : > { %v1603_v8 = vsel %vm1110_vm14, %v5975_v62, -inf }
 0x51b   : > { %v1437_v17 = vpop.xlane.xlu0 %1436 }
 0x51c   : > { %v1453_v19 = vsub.f32 %v5859_v39, %v1437_v17 }
 0x51e   : > { %v1459_v20 = vmul.f32 1.442695, %v1453_v19  ;;  %v5934_v2 = vpop.f32.mrf.mxu3 }
 0x520   : > { %4964 = vpow2.f32 %v1459_v20 }
 0x523   : > { %v1440_v35 = vpop.xlane.xlu1 %1439 }
 0x524   : > { %v1454_v22 = vsub.f32 %v5865_v36, %v1440_v35 }
 0x526   : > { %v5937_v21 = vpop.eup %4964  ;;  %v1461_v51 = vmul.f32 1.442695, %v1454_v22  ;;  %v1592_v30 = vpop.f32.mrf.mxu3 }
 0x527   : > { %v5940_v34 = vadd.f32 %v1592_v30, %v5741_v43  ;;  %v1471_v28 = vsel %vm1110_vm14, %v5937_v21, 0.0  ;;  %v6006_v30 = vadd.f32 %v5934_v2, %v5730_v41 }
 0x528   : > { %4966 = vpow2.f32 %v1461_v51  ;;  %1472 = vadd.xlane.f32.xlu0 %v1471_v28  ;;  %v6000_v51 = vadd.f32 %v5931_v14, %v5847_v12 }
 0x529   : > { %v1609_v39 = vsel %vm1110_vm14, %v5940_v34, -inf  ;;  %v1606_v28 = vsel %vm1110_vm14, %v6006_v30, -inf }
 0x52a   : > { %1610 = vmax.xlane.f32.xlu1 %v1609_v39 }
 0x52e   : > { %v5949_v36 = vpop.eup %4966  ;;  %v1595_v27 = vpop.f32.mrf.mxu3 }
 0x52f   : > { %v1344_v32 = vpop.permute.xlu0 %1343  ;;  %v5952_v33 = vadd.f32 %v1595_v27, %v5750_v50  ;;  %v1474_v46 = vsel %vm1110_vm14, %v5949_v36, 0.0 }
 0x530   : > { %1362 = vmatpush.bf16.msrb.mxu0 %v1344_v32  ;;  %1274 = vmax.xlane.f32.xlu0 %v1273_v37 }
 0x531   : > { %1475 = vadd.xlane.f32.xlu2 %v1474_v46  ;;  %v1612_v24 = vsel %vm1110_vm14, %v5952_v33, -inf }
 0x532   : > { %1613 = vmax.xlane.f32.xlu1 %v1612_v24 }
 0x536   : > { %v1597_v13 = vpop.f32.mrf.mxu3 }
 0x537   : > { %v1340_v48 = vpop.permute.xlu0 %1339  ;;  %v5984_v20 = vadd.f32 %v1597_v13, %v5757_v56 }
 0x539   : > { %1271 = vmax.xlane.f32.xlu2 %v1270_v44 }
 0x53b   : > { %v1342_v45 = vpop.permute.xlu1 %1341 }
 0x53c   : > { %1363 = vmatpush.bf16.msrb.mxu0 %v1342_v45  ;;  %v5962_v47 = vpop.xlane.xlu2 %1442 }
 0x540   : > { %1364 = vmatpush.bf16.msrb.mxu0 %v1340_v48 }
 0x543   : > { %v1509_v52 = vpop.permute.xlu1 %1508 }
 0x544   : > { %1527 = vmatpush.bf16.msra.mxu2 %v1509_v52  ;;  %1506 = vrot.lane.b32.xlu0 %v5662_v5, %s7336_s27  ;;  %v5966_v53 = vpop.xlane.xlu2 %1445 }
 0x54c   : > { %v5968_v54 = vpop.xlane.xlu2 %1448 }
 0x551   : > { %1673 = vrot.lane.b32.xlu2 %v5659_v1, %s7338_s26 }
 0x554   : > { %v5972_v57 = vpop.xlane.xlu2 %1451 }
 0x55c   : > { %v1149_v59 = vpop.xlane.xlu2 %1148 }
 0x55d   : > { %4968 = vrcp.f32 %v1149_v59 }
 0x563   : > { %v4969_v25 = vpop.eup %4968 }
 0x564   : > { %v1152_v60 = vpop.xlane.xlu2 %1151  ;;  %v1171_v3 = vmul.f32 %v4969_v25, %v5906_v58  ;;  %v5988_v58 = vadd.f32 %v5927_v38, %v5757_v56  ;;  %v1600_v38 = vsel %vm1110_vm14, %v6000_v51, -inf }
 0x565   : > { %4970 = vrcp.f32 %v1152_v60 }
 0x566   : > { %v1282_v35 = vsel %vm1110_vm14, %v5988_v58, -inf }
 0x56b   : > { %v4971_v0 = vpop.eup %4970 }
 0x56c   : > { %v1172_v6 = vmul.f32 %v4971_v0, %v5910_v61  ;;  %v1615_v61 = vsel %vm1110_vm14, %v5984_v20, -inf }
 0x56e   : > { %1604 = vmax.xlane.f32.xlu0 %v1603_v8  ;;  %v1269_v1 = vpop.xlane.xlu1 %1268  ;;  %v1177_v17 = vpack.c.bf16 %v1172_v6, %v1171_v3 }
 0x56f   : > { %v1285_v19 = vsub.f32 %v5915_v63, %v1269_v1  ;;  %v1455_v1 = vsub.f32 %v5878_v31, %v5962_v47 }
 0x570   : > { %4298 = vmatmul.msk.bf16.vlgmr.msrb.gmra.mxu2 %vm1110_vm14, %v1177_v17 }
 0x571   : > { %v1291_v16 = vmul.f32 1.442695, %v1285_v19  ;;  %v1463_v17 = vmul.f32 1.442695, %v1455_v1  ;;  %v1456_v1 = vsub.f32 %v5885_v26, %v5966_v53 }
 0x573   : > { %4972 = vpow2.f32 %v1291_v16 }
 0x576   : > { %1616 = vmax.xlane.f32.xlu0 %v1615_v61  ;;  %v1278_v46 = vpop.xlane.xlu1 %1277 }
 0x577   : > { %v1288_v2 = vsub.f32 %v5920_v4, %v1278_v46 }
 0x579   : > { %v5994_v22 = vpop.eup %4972  ;;  %v1297_v59 = vmul.f32 1.442695, %v1288_v2 }
 0x57a   : > { %1283 = vmax.xlane.f32.xlu2 %v1282_v35  ;;  %v1303_v63 = vsel %vm1110_vm14, %v5994_v22, 0.0 }
 0x57b   : > { %1304 = vadd.xlane.f32.xlu1 %v1303_v63 }
 0x57e   : > { %v1281_v60 = vpop.xlane.xlu1 %1280 }
 0x57f   : > { %v1289_v0 = vsub.f32 %v5925_v10, %v1281_v60 }
 0x581   : > { %v1299_v3 = vmul.f32 1.442695, %v1289_v0 }
 0x582   : > { %1601 = vmax.xlane.f32.xlu2 %v1600_v38  ;;  %v1458_v38 = vsub.f32 %v5901_v49, %v5972_v57 }
 0x584   : > { %v1469_v47 = vmul.f32 1.442695, %v1458_v38 }
 0x58a   : > { %1607 = vmax.xlane.f32.xlu2 %v1606_v28 }
 0x59b   : > { %v6010_v39 = vpop.xlane.xlu0 %1472 }
 0x59d   : > { %v1611_v19 = vpop.xlane.xlu1 %1610 }
 0x59e   : > { %v1621_v16 = vsub.f32 %v5940_v34, %v1611_v19  ;;  %v1465_v19 = vmul.f32 1.442695, %v1456_v1 }
 0x5a0   : > { %v1630_v35 = vmul.f32 1.442695, %v1621_v16 }
 0x5a3   : > { %v1275_v27 = vpop.xlane.xlu0 %1274 }
 0x5a4   : > { %v6012_v32 = vpop.xlane.xlu2 %1475  ;;  %v1287_v14 = vsub.f32 %v5947_v11, %v1275_v27 }
 0x5a6   : > { %v1295_v37 = vmul.f32 1.442695, %v1287_v14 }
 0x5a8   : > { %4974 = vpow2.f32 %v1295_v37 }
 0x5ac   : > { %v1272_v24 = vpop.xlane.xlu2 %1271 }
 0x5ad   : > { %v1286_v44 = vsub.f32 %v1255_v15, %v1272_v24 }
 0x5ae   : > { %v6015_v45 = vpop.eup %4974 }
 0x5af   : > { %v1293_v48 = vmul.f32 1.442695, %v1286_v44  ;;  %v1309_v52 = vsel %vm1110_vm14, %v6015_v45, 0.0 }
 0x5b0   : > { %1310 = vadd.xlane.f32.xlu0 %v1309_v52 }
 0x5b1   : > { %4976 = vpow2.f32 %v1293_v48 }
 0x5b2   : > { %4978 = vpow2.f32 %v1297_v59 }
 0x5b3   : > { %4980 = vpow2.f32 %v1299_v3  ;;  %v1614_v3 = vpop.xlane.xlu1 %1613 }
 0x5b4   : > { %v1674_v25 = vpop.permute.xlu2 %1673  ;;  %4982 = vpow2.f32 %v1463_v17 }
 0x5b5   : > { %1692 = vmatpush.bf16.msra.mxu0 %v1674_v25  ;;  %4984 = vpow2.f32 %v1630_v35  ;;  %v1457_v35 = vsub.f32 %v5894_v55, %v5968_v54 }
 0x5b6   : > { %v1507_v15 = vpop.permute.xlu0 %1506 }
 0x5b7   : > { %v6020_v11 = vpop.eup %4976  ;;  %1528 = vmatpush.bf16.msra.mxu2 %v1507_v15 }
 0x5b8   : > { %v1306_v4 = vsel %vm1110_vm14, %v6020_v11, 0.0  ;;  %v6025_v6 = vpop.eup %4978 }
 0x5b9   : > { %1307 = vadd.xlane.f32.xlu2 %v1306_v4  ;;  %v1312_v8 = vsel %vm1110_vm14, %v6025_v6, 0.0  ;;  %v6029_v13 = vpop.eup %4980 }
 0x5ba   : > { %v1315_v10 = vsel %vm1110_vm14, %v6029_v13, 0.0  ;;  %v6038_v63 = vpop.eup %4982 }
 0x5bb   : > { %v1477_v14 = vsel %vm1110_vm14, %v6038_v63, 0.0  ;;  %v6045_v34 = vpop.eup %4984 }
 0x5bc   : > { %v1645_v57 = vsel %vm1110_vm14, %v6045_v34, 0.0 }
 0x5c1   : > { %1313 = vadd.xlane.f32.xlu2 %v1312_v8 }
 0x5c4   : > { %1504 = vrot.lane.b32.xlu0 %v5665_v7, %s7336_s27  ;;  %s7376_s27 = smov 80  }
 0x5c9   : > { %1316 = vadd.xlane.f32.xlu2 %v1315_v10 }
 0x5e1   : > { %v1605_v61 = vpop.xlane.xlu0 %1604 }
 0x5e2   : > { %v1619_v44 = vsub.f32 %v5975_v62, %v1605_v61 }
 0x5e9   : > { %v1617_v37 = vpop.xlane.xlu0 %1616 }
 0x5ea   : > { %v1623_v46 = vsub.f32 %v5984_v20, %v1617_v37  ;;  %v1626_v20 = vmul.f32 1.442695, %v1619_v44 }
 0x5ec   : > { %v1634_v48 = vmul.f32 1.442695, %v1623_v46 }
 0x5ed   : > { %v1284_v28 = vpop.xlane.xlu2 %1283 }
 0x5ee   : > { %v1290_v27 = vsub.f32 %v5988_v58, %v1284_v28  ;;  %1478 = vadd.xlane.f32.xlu0 %v1477_v14  ;;  %v1305_v10 = vpop.xlane.xlu1 %1304 }
 0x5f0   : > { %v1301_v31 = vmul.f32 1.442695, %v1290_v27 }
 0x5f2   : > { %4986 = vpow2.f32 %v1301_v31 }
 0x5f3   : > { %4988 = vpow2.f32 %v1469_v47 }
 0x5f5   : > { %v1602_v24 = vpop.xlane.xlu2 %1601 }
 0x5f6   : > { %v1618_v49 = vsub.f32 %v6000_v51, %v1602_v24  ;;  %1646 = vadd.xlane.f32.xlu0 %v1645_v57 }
 0x5f8   : > { %v6051_v58 = vpop.eup %4986  ;;  %v1624_v2 = vmul.f32 1.442695, %v1618_v49 }
 0x5f9   : > { %v1318_v52 = vsel %vm1110_vm14, %v6051_v58, 0.0  ;;  %v6056_v59 = vpop.eup %4988 }
 0x5fa   : > { %4990 = vpow2.f32 %v1624_v2  ;;  %1319 = vadd.xlane.f32.xlu1 %v1318_v52  ;;  %v1486_v51 = vsel %vm1110_vm14, %v6056_v59, 0.0 }
 0x5fb   : > { %4992 = vpow2.f32 %v1634_v48 }
 0x5fc   : > { %4994 = vpow2.f32 %v1626_v20 }
 0x5fd   : > { %v1608_v8 = vpop.xlane.xlu2 %1607  ;;  %4996 = vrcp.f32 %v1305_v10 }
 0x5fe   : > { %1487 = vadd.xlane.f32.xlu0 %v1486_v51  ;;  %4998 = vrcp.f32 %v6012_v32  ;;  %v1467_v32 = vmul.f32 1.442695, %v1457_v35  ;;  %v1620_v54 = vsub.f32 %v6006_v30, %v1608_v8 }
 0x600   : > { %v6060_v60 = vpop.eup %4990 }
 0x601   : > { %v1636_v62 = vsel %vm1110_vm14, %v6060_v60, 0.0  ;;  %v6064_v25 = vpop.eup %4992 }
 0x602   : > { %1637 = vadd.xlane.f32.xlu2 %v1636_v62  ;;  %v6066_v0 = vpop.eup %4994  ;;  %v1651_v15 = vsel %vm1110_vm14, %v6064_v25, 0.0 }
 0x603   : > { %v1639_v4 = vsel %vm1110_vm14, %v6066_v0, 0.0  ;;  %v4997_v61 = vpop.eup %4996 }
 0x604   : > { %v1327_v28 = vmul.f32 %v4997_v61, %v5994_v22  ;;  %v1622_v22 = vsub.f32 %v5952_v33, %v1614_v3 }
 0x606   : > { %1652 = vadd.xlane.f32.xlu0 %v1651_v15  ;;  %v1632_v37 = vmul.f32 1.442695, %v1622_v22 }
 0x60a   : > { %1640 = vadd.xlane.f32.xlu2 %v1639_v4 }
 0x613   : > { %1671 = vrot.lane.b32.xlu1 %v5662_v5, %s7338_s26  ;;  %v4999_v5 = vpop.eup %4998 }
 0x614   : > { %v1496_v53 = vmul.f32 %v4999_v5, %v5949_v36 }
 0x622   : > { %1669 = vrot.lane.b32.xlu2 %v5665_v7, %s7338_s26  ;;  %s7377_s26 = smov 96  }
 0x623   : > { %v1311_v16 = vpop.xlane.xlu0 %1310 }
 0x62c   : > { %v1308_v17 = vpop.xlane.xlu2 %1307 }
 0x62d   : > { %5000 = vrcp.f32 %v1308_v17 }
 0x62e   : > { %5002 = vrcp.f32 %v6010_v39 }
 0x62f   : > { %5004 = vpow2.f32 %v1465_v19 }
 0x633   : > { %v5001_v7 = vpop.eup %5000 }
 0x634   : > { %v5003_v38 = vpop.eup %5002  ;;  %v1328_v26 = vmul.f32 %v5001_v7, %v6020_v11  ;;  %v1314_v27 = vpop.xlane.xlu2 %1313 }
 0x635   : > { %v1495_v39 = vmul.f32 %v5003_v38, %v5937_v21  ;;  %v6087_v47 = vpop.eup %5004  ;;  %5006 = vrcp.f32 %v1314_v27  ;;  %v1628_v21 = vmul.f32 1.442695, %v1620_v54 }
 0x636   : > { %v1333_v14 = vpack.c.bf16 %v1328_v26, %v1327_v28  ;;  %v1505_v31 = vpop.permute.xlu0 %1504  ;;  %5008 = vpow2.f32 %v1467_v32  ;;  %v1480_v36 = vsel %vm1110_vm14, %v6087_v47, 0.0 }
 0x637   : > { %1529 = vmatpush.bf16.msra.mxu2 %v1505_v31  ;;  %v1501_v55 = vpack.c.bf16 %v1496_v53, %v1495_v39  ;;  %5010 = vrcp.f32 %v1311_v16 }
 0x638   : > { %4304 = vmatmul.msk.bf16.vlgmr.msrb.gmra.mxu0 %vm1110_vm14, %v1333_v14  ;;  %5012 = vpow2.f32 %v1628_v21 }
 0x639   : > { %5014 = vpow2.f32 %v1632_v37 }
 0x63a   : > { %4310 = vmatmul.msk.bf16.vlgmr.msra.gmra.mxu2 %vm1110_vm14, %v1501_v55 }
 0x63b   : > { %v5007_v11 = vpop.eup %5006 }
 0x63c   : > { %v6094_v46 = vpop.eup %5008  ;;  %v1330_v30 = vmul.f32 %v5007_v11, %v6025_v6  ;;  %v1317_v6 = vpop.xlane.xlu2 %1316 }
 0x63d   : > { %1481 = vadd.xlane.f32.xlu1 %v1480_v36  ;;  %v5011_v24 = vpop.eup %5010  ;;  %v1483_v33 = vsel %vm1110_vm14, %v6094_v46, 0.0  ;;  %5016 = vrcp.f32 %v1317_v6 }
 0x63e   : > { %v1329_v49 = vmul.f32 %v5011_v24, %v6015_v45  ;;  %v5013_v44 = vpop.eup %5012 }
 0x63f   : > { %v6101_v2 = vpop.eup %5014  ;;  %v1642_v48 = vsel %vm1110_vm14, %v5013_v44, 0.0 }
 0x640   : > { %v1334_v57 = vpack.c.bf16 %v1330_v30, %v1329_v49  ;;  %v1648_v52 = vsel %vm1110_vm14, %v6101_v2, 0.0 }
 0x643   : > { %v5017_v51 = vpop.eup %5016 }
 0x644   : > { %v1331_v15 = vmul.f32 %v5017_v51, %v6029_v13 }
 0x645   : > { %1484 = vadd.xlane.f32.xlu1 %v1483_v33 }
 0x648   : > { %4305 = vmatmul.msk.bf16.gmra.mxu0 %vm1110_vm14, %v1334_v57 }
 0x64b   : > { %1643 = vadd.xlane.f32.xlu2 %v1642_v48 }
 0x64d   : > { %1649 = vadd.xlane.f32.xlu1 %v1648_v52 }
 0x661   : > { %v1479_v13 = vpop.xlane.xlu0 %1478 }
 0x669   : > { %v1647_v7 = vpop.xlane.xlu0 %1646 }
 0x66d   : > { %v1320_v20 = vpop.xlane.xlu1 %1319 }
 0x66e   : > { %5018 = vrcp.f32 %v1320_v20 }
 0x671   : > { %v1488_v14 = vpop.xlane.xlu0 %1487 }
 0x674   : > { %v5019_v45 = vpop.eup %5018 }
 0x675   : > { %v1638_v62 = vpop.xlane.xlu2 %1637  ;;  %v1332_v4 = vmul.f32 %v5019_v45, %v6051_v58  ;;  %v6112_v58 = vpop.f32.mrf.mxu2 }
 0x677   : > { %v1335_v3 = vpack.c.bf16 %v1332_v4, %v1331_v15 }
 0x679   : > { %4306 = vmatmul.msk.bf16.gmra.mxu0 %vm1110_vm14, %v1335_v3  ;;  %v1653_v52 = vpop.xlane.xlu0 %1652 }
 0x67d   : > { %v1641_v8 = vpop.xlane.xlu2 %1640  ;;  %v6114_v26 = vpop.f32.mrf.mxu2 }
 0x67e   : > { %5020 = vrcp.f32 %v1641_v8 }
 0x67f   : > { %5022 = vrcp.f32 %v1638_v62 }
 0x680   : > { %5024 = vrcp.f32 %v1479_v13 }
 0x684   : > { %v5021_v10 = vpop.eup %5020 }
 0x685   : > { %v1672_v1 = vpop.permute.xlu1 %1671  ;;  %v5023_v17 = vpop.eup %5022  ;;  %v1661_v19 = vmul.f32 %v5021_v10, %v6066_v0 }
 0x686   : > { %1693 = vmatpush.bf16.msra.mxu0 %v1672_v1  ;;  %v1660_v16 = vmul.f32 %v5023_v17, %v6060_v60  ;;  %v1670_v61 = vpop.permute.xlu2 %1669  ;;  %v5025_v38 = vpop.eup %5024 }
 0x687   : > { %v1497_v0 = vmul.f32 %v5025_v38, %v6038_v63 }
 0x688   : > { %v1666_v5 = vpack.c.bf16 %v1661_v19, %v1660_v16 }
 0x68a   : > { %1694 = vmatpush.bf16.msra.mxu0 %v1670_v61  ;;  %v4699_v61 = vld [vmem:[%s7320_s10 + $0x8] sm:$0xff] }
 0x68d   : > { %4316 = vmatmul.msk.bf16.vlgmr.msra.gmra.mxu0 %vm1110_vm14, %v1666_v5 }
 0x6b0   : > { %v1482_v35 = vpop.xlane.xlu1 %1481 }
 0x6b1   : > { %5026 = vrcp.f32 %v1482_v35 }
 0x6b2   : > { %5028 = vrcp.f32 %v1647_v7 }
 0x6b5   : > { %v1366_v28 = vpop.f32.mrf.mxu0 }
 0x6b7   : > { %v5027_v53 = vpop.eup %5026 }
 0x6b8   : > { %v1498_v60 = vmul.f32 %v5027_v53, %v6087_v47  ;;  %v1485_v32 = vpop.xlane.xlu1 %1484  ;;  %v5029_v22 = vpop.eup %5028 }
 0x6b9   : > { %5030 = vrcp.f32 %v1485_v32  ;;  %v1663_v24 = vmul.f32 %v5029_v22, %v6045_v34 }
 0x6ba   : > { %v1502_v27 = vpack.c.bf16 %v1498_v60, %v1497_v0  ;;  %5032 = vrcp.f32 %v1488_v14  ;;  %v4698_v60 = vld [vmem:[%s7320_s10] sm:$0xff] }
 0x6bc   : > { %4311 = vmatmul.msk.bf16.gmra.mxu2 %vm1110_vm14, %v1502_v27 }
 0x6bd   : > { %v1368_v39 = vpop.f32.mrf.mxu0  ;;  %v1531_v55 = vpop.f32.mrf.mxu2 }
 0x6be   : > { %v4826_v31 = vpack.i.bf16 %v1368_v39, %v1366_v28  ;;  %v1644_v54 = vpop.xlane.xlu2 %1643 }
 0x6bf   : > { %5034 = vrcp.f32 %v1644_v54  ;;  %v5031_v36 = vpop.eup %5030 }
 0x6c0   : > { %4827 = vrot.lane.b32.xlu2 %v4826_v31, %s7342_s20  ;;  %v5033_v63 = vpop.eup %5032  ;;  %v1499_v30 = vmul.f32 %v5031_v36, %v6094_v46  ;;  %v1650_v49 = vpop.xlane.xlu1 %1649 }
 0x6c1   : > { %v1500_v48 = vmul.f32 %v5033_v63, %v6056_v59  ;;  %5036 = vrcp.f32 %v1650_v49 }
 0x6c2   : > { %5038 = vrcp.f32 %v1653_v52 }
 0x6c3   : > { %v1503_v6 = vpack.c.bf16 %v1500_v48, %v1499_v30 }
 0x6c5   : > { %v5035_v21 = vpop.eup %5034  ;;  %v1371_v47 = vpop.f32.mrf.mxu0 }
 0x6c6   : > { %v1533_v11 = vpop.f32.mrf.mxu2  ;;  %v1662_v37 = vmul.f32 %v5035_v21, %v5013_v44 }
 0x6c7   : > { %v4831_v33 = vpack.i.bf16 %v1533_v11, %v1531_v55  ;;  %v5037_v34 = vpop.eup %5036 }
 0x6c8   : > { %v1667_v57 = vpack.c.bf16 %v1663_v24, %v1662_v37  ;;  %v5039_v46 = vpop.eup %5038  ;;  %v1664_v51 = vmul.f32 %v5037_v34, %v6101_v2  ;;  %v4701_v2 = vld [vmem:[%s7320_s10 + $0x18] sm:$0xff] }
 0x6c9   : > { %4832 = vrot.lane.b32.xlu1 %v4831_v33, %s7340_s23  ;;  %v1665_v59 = vmul.f32 %v5039_v46, %v6064_v25  ;;  %1854 = vmatpush.bf16.msrb.mxu1 %v4701_v2  ;;  %v4700_v25 = vld [vmem:[%s7320_s10 + $0x10] sm:$0xff] }
 0x6ca   : > { %4317 = vmatmul.msk.bf16.gmra.mxu0 %vm1110_vm14, %v1667_v57 }
 0x6cb   : > { %v1668_v45 = vpack.c.bf16 %v1665_v59, %v1664_v51 }
 0x6cc   : > { %4312 = vmatmul.msk.bf16.gmra.mxu2 %vm1110_vm14, %v1503_v6 }
 0x6cd   : > { %v1373_v44 = vpop.f32.mrf.mxu0  ;;  %1855 = vmatpush.bf16.msrb.mxu1 %v4700_v25 }
 0x6ce   : > { %v4841_v20 = vpack.i.bf16 %v1373_v44, %v1371_v47 }
 0x6d0   : > { %4842 = vrot.lane.b32.xlu2 %v4841_v20, %s7342_s20 }
 0x6d1   : > { %1856 = vmatpush.bf16.msrb.mxu1 %v4699_v61 }
 0x6d5   : > { %1857 = vmatpush.bf16.msrb.mxu1 %v4698_v60  ;;  %v5221_v60 = vld [vmem:[%s5456_s21 + $0x8] sm:$0xff] }
 0x6da   : > { %4318 = vmatmul.msk.bf16.gmra.mxu0 %vm1110_vm14, %v1668_v45 }
 0x6f6   : > { %v1376_v62 = vpop.f32.mrf.mxu0 }
 0x6fe   : > { %v1378_v15 = vpop.f32.mrf.mxu0 }
 0x6ff   : > { %v4856_v4 = vpack.i.bf16 %v1378_v15, %v1376_v62 }
 0x701   : > { %4857 = vrot.lane.b32.xlu2 %v4856_v4, %s7342_s20 }
 0x70a   : > { %v1696_v3 = vpop.f32.mrf.mxu0 }
 0x712   : > { %v1698_v8 = vpop.f32.mrf.mxu0 }
 0x713   : > { %v4836_v10 = vpack.i.bf16 %v1698_v8, %v1696_v3 }
 0x715   : > { %4837 = vrot.lane.b32.xlu0 %v4836_v10, %s5294_s24 }
 0x71a   : > { %v4828_v32 = vpop.permute.xlu2 %4827 }
 0x71b   : > { %v4830_v14 = vunpack.i.h.bf16 %v4828_v32  ;;  %v4829_v39 = vunpack.i.l.bf16 %v4828_v32 }
 0x71d   : > { %v1784_v22 = vsel %vm1067_vm5, %v6114_v26, %v4830_v14  ;;  %v1783_v36 = vsel %vm1067_vm5, %v6112_v58, %v4829_v39 }
 0x72a   : > { %v4843_v33 = vpop.permute.xlu2 %4842 }
 0x72b   : > { %v4845_v57 = vunpack.i.h.bf16 %v4843_v33  ;;  %v4844_v26 = vunpack.i.l.bf16 %v4843_v33 }
 0x72d   : > { %v1786_v6 = vsel %vm1067_vm5, %v5875_v29, %v4845_v57  ;;  %v1785_v44 = vsel %vm1067_vm5, %v5869_v23, %v4844_v26  ;;  %v5225_v26 = vld [vmem:[%s5456_s21 + $0x28] sm:$0xff] }
 0x73b   : > { %v4833_v27 = vpop.permute.xlu1 %4832 }
 0x73c   : > { %v4835_v31 = vunpack.i.h.bf16 %v4833_v27  ;;  %v4834_v55 = vunpack.i.l.bf16 %v4833_v27 }
 0x73e   : > { %v1790_v47 = vsel %vm1789_vm9, %v1783_v36, %v4834_v55  ;;  %v1791_v11 = vsel %vm1789_vm9, %v1784_v22, %v4835_v31  ;;  %v5222_v31 = vld [vmem:[%s5456_s21 + $0x10] sm:$0xff] }
 0x73f   : > { %v1536_v1 = vpop.f32.mrf.mxu2 }
 0x747   : > { %v1538_v17 = vpop.f32.mrf.mxu2  ;;  %v1701_v19 = vpop.f32.mrf.mxu0 }
 0x748   : > { %v4846_v16 = vpack.i.bf16 %v1538_v17, %v1536_v1 }
 0x74a   : > { %4847 = vrot.lane.b32.xlu0 %v4846_v16, %s7340_s23 }
 0x74f   : > { %v1541_v5 = vpop.f32.mrf.mxu2  ;;  %v1703_v13 = vpop.f32.mrf.mxu0 }
 0x750   : > { %v4851_v35 = vpack.i.bf16 %v1703_v13, %v1701_v19 }
 0x752   : > { %4852 = vrot.lane.b32.xlu1 %v4851_v35, %s5294_s24 }
 0x757   : > { %v1543_v7 = vpop.f32.mrf.mxu2  ;;  %v1706_v38 = vpop.f32.mrf.mxu0 }
 0x758   : > { %v4861_v28 = vpack.i.bf16 %v1543_v7, %v1541_v5  ;;  %v5220_v7 = vld [vmem:[%s5456_s21] sm:$0xff] }
 0x75a   : > { %4862 = vrot.lane.b32.xlu0 %v4861_v28, %s7340_s23 }
 0x75b   : > { %v4858_v15 = vpop.permute.xlu2 %4857 }
 0x75c   : > { %v4860_v3 = vunpack.i.h.bf16 %v4858_v15  ;;  %v4859_v29 = vunpack.i.l.bf16 %v4858_v15 }
 0x75e   : > { %v1788_v1 = vsel %vm1067_vm5, %v5896_v40, %v4860_v3  ;;  %v1787_v2 = vsel %vm1067_vm5, %v5887_v42, %v4859_v29  ;;  %v4920_v40 = vld [vmem:[%s7321_s11] ss:$0 sm:$0xff] }
 0x75f   : > { %v1708_v53 = vpop.f32.mrf.mxu0 }
 0x760   : > { %v4866_v0 = vpack.i.bf16 %v1708_v53, %v1706_v38 }
 0x762   : > { %4867 = vrot.lane.b32.xlu1 %v4866_v0, %s5294_s24 }
 0x787   : > { %v4838_v54 = vpop.permute.xlu0 %4837 }
 0x788   : > { %v4840_v63 = vunpack.i.h.bf16 %v4838_v54  ;;  %v4839_v21 = vunpack.i.l.bf16 %v4838_v54 }
 0x78a   : > { %v1796_v37 = vsel %vm1110_vm14, %v1790_v47, %v4839_v21  ;;  %v1797_v24 = vsel %vm1110_vm14, %v1791_v11, %v4840_v63  ;;  %v5223_v63 = vld [vmem:[%s5456_s21 + $0x18] sm:$0xff] }
 0x78b   : > { %v1802_v30 = vpack.c.bf16 %v1797_v24, %v1796_v37  ;;  %v5224_v24 = vld [vmem:[%s5456_s21 + $0x20] sm:$0xff]  ;;  %s7372_s21 = smov 64  }
 0x78d   : > { %4335 = vmatmul.msk.bf16.vlgmr.msrb.gmra.mxu1 %vm780_vm0, %v1802_v30 }
 0x7bc   : > { %v4848_v49 = vpop.permute.xlu0 %4847 }
 0x7bd   : > { %v4850_v48 = vunpack.i.h.bf16 %v4848_v49  ;;  %v4849_v52 = vunpack.i.l.bf16 %v4848_v49 }
 0x7bf   : > { %v1792_v46 = vsel %vm1789_vm9, %v1785_v44, %v4849_v52  ;;  %v1793_v51 = vsel %vm1789_vm9, %v1786_v6, %v4850_v48 }
 0x7c4   : > { %v4853_v58 = vpop.permute.xlu1 %4852 }
 0x7c5   : > { %v4855_v20 = vunpack.i.h.bf16 %v4853_v58  ;;  %v4854_v34 = vunpack.i.l.bf16 %v4853_v58 }
 0x7c7   : > { %v1798_v59 = vsel %vm1110_vm14, %v1792_v46, %v4854_v34  ;;  %v1799_v45 = vsel %vm1110_vm14, %v1793_v51, %v4855_v20 }
 0x7c8   : > { %v1803_v62 = vpack.c.bf16 %v1799_v45, %v1798_v59 }
 0x7ca   : > { %4336 = vmatmul.msk.bf16.gmra.mxu1 %vm780_vm0, %v1803_v62 }
 0x7cc   : > { %v4863_v4 = vpop.permute.xlu0 %4862 }
 0x7cd   : > { %v4865_v8 = vunpack.i.h.bf16 %v4863_v4  ;;  %v4864_v23 = vunpack.i.l.bf16 %v4863_v4 }
 0x7cf   : > { %v1794_v19 = vsel %vm1789_vm9, %v1787_v2, %v4864_v23  ;;  %v1795_v16 = vsel %vm1789_vm9, %v1788_v1, %v4865_v8 }
 0x7d4   : > { %v4868_v10 = vpop.permute.xlu1 %4867 }
 0x7d5   : > { %v4870_v25 = vunpack.i.h.bf16 %v4868_v10  ;;  %v4869_v17 = vunpack.i.l.bf16 %v4868_v10 }
 0x7d7   : > { %v1800_v61 = vsel %vm1110_vm14, %v1794_v19, %v4869_v17  ;;  %v1801_v5 = vsel %vm1110_vm14, %v1795_v16, %v4870_v25 }
 0x7d8   : > { %v1804_v13 = vpack.c.bf16 %v1801_v5, %v1800_v61 }
 0x7da   : > { %4337 = vmatmul.msk.bf16.gmra.mxu1 %vm780_vm0, %v1804_v13 }
 0x80a   : > { %v1859_v42 = vpop.f32.mrf.mxu1 }
 0x80b   : > { %v1860_v35 = vadd.f32 %v4920_v40, %v1859_v42 }
 0x80d   : > { %v6179_v38 = vadd.f32 %v5220_v7, %v1860_v35 }
 0x80f   : > { %v1882_v28 = vsel %vm780_vm0, %v6179_v38, 0.0 }
 0x810   : > { %1883 = vadd.xlane.f32.xlu2 %v1882_v28  ;;  %v4364_v28 = vld [vmem:[%s7324_s14 + $0x30] sm:$0xf] }
 0x812   : > { %v1861_v53 = vpop.f32.mrf.mxu1 }
 0x813   : > { %v1862_v0 = vadd.f32 %v4920_v40, %v1861_v53  ;;  %v4709_v53 = vld [vmem:[%s7324_s14 + $0x34] sm:$0xf0] }
 0x815   : > { %v6184_v32 = vadd.f32 %v5221_v60, %v1862_v0  ;;  %v4708_v0 = vld [vmem:[%s7324_s14 + $0x34] sm:$0xf]  ;;  %v4365_v60 = vor.u32 %v4709_v53, %v4364_v28  ;;  %v6309_v53 = vld [vmem:[%s7323_s13] ss:$0 sm:$0xff] }
 0x817   : > { %v1885_v27 = vsel %vm780_vm0, %v6184_v32, 0.0  ;;  %2102 = vmatpush.bf16.msrb.mxu2 %v4365_v60 }
 0x818   : > { %1886 = vadd.xlane.f32.xlu0 %v1885_v27  ;;  %v4366_v27 = vld [vmem:[%s7324_s14 + $0x38] sm:$0xf0] }
 0x847   : > { %v1864_v14 = vpop.f32.mrf.mxu1 }
 0x848   : > { %v1865_v39 = vadd.f32 %v4920_v40, %v1864_v14  ;;  %v4369_v14 = vor.u32 %v4708_v0, %v4366_v27 }
 0x84a   : > { %v6189_v55 = vadd.f32 %v5222_v31, %v1865_v39  ;;  %2126 = vmatpush.bf16.msrb.mxu3 %v4369_v14  ;;  %v4356_v39 = vld [vmem:[%s7324_s14 + $0x20] sm:$0xf]  ;;  %v4707_v31 = vld [vmem:[%s7324_s14 + $0x24] sm:$0xf0] }
 0x84c   : > { %v1888_v54 = vsel %vm780_vm0, %v6189_v55, 0.0 }
 0x84d   : > { %1889 = vadd.xlane.f32.xlu1 %v1888_v54  ;;  %v4706_v54 = vld [vmem:[%s7324_s14 + $0x24] sm:$0xf] }
 0x84f   : > { %v1866_v22 = vpop.f32.mrf.mxu1 }
 0x850   : > { %v1867_v36 = vadd.f32 %v4920_v40, %v1866_v22  ;;  %v4357_v22 = vor.u32 %v4707_v31, %v4356_v39 }
 0x852   : > { %v6194_v21 = vadd.f32 %v5223_v63, %v1867_v36  ;;  %v4358_v36 = vld [vmem:[%s7324_s14 + $0x28] sm:$0xf0]  ;;  %2103 = vmatpush.bf16.msrb.mxu2 %v4357_v22 }
 0x853   : > { %v4361_v63 = vor.u32 %v4706_v54, %v4358_v36 }
 0x854   : > { %v1891_v47 = vsel %vm780_vm0, %v6194_v21, 0.0 }
 0x855   : > { %1892 = vadd.xlane.f32.xlu2 %v1891_v47  ;;  %2127 = vmatpush.bf16.msrb.mxu3 %v4361_v63  ;;  %v4348_v47 = vld [vmem:[%s7324_s14 + $0x10] sm:$0xf] }
 0x857   : > { %v1869_v11 = vpop.f32.mrf.mxu1 }
 0x858   : > { %v1870_v37 = vadd.f32 %v4920_v40, %v1869_v11  ;;  %v4705_v11 = vld [vmem:[%s7324_s14 + $0x14] sm:$0xf0] }
 0x85a   : > { %v6199_v30 = vadd.f32 %v5224_v24, %v1870_v37  ;;  %v4704_v37 = vld [vmem:[%s7324_s14 + $0x14] sm:$0xf] }
 0x85c   : > { %v1894_v33 = vsel %vm780_vm0, %v6199_v30, 0.0 }
 0x85d   : > { %1895 = vadd.xlane.f32.xlu0 %v1894_v33  ;;  %v4349_v33 = vor.u32 %v4705_v11, %v4348_v47 }
 0x85f   : > { %v1871_v49 = vpop.f32.mrf.mxu1  ;;  %2104 = vmatpush.bf16.msrb.mxu2 %v4349_v33 }
 0x860   : > { %v1872_v57 = vadd.f32 %v4920_v40, %v1871_v49  ;;  %v4350_v49 = vld [vmem:[%s7324_s14 + $0x18] sm:$0xf0] }
 0x862   : > { %v6204_v48 = vadd.f32 %v5225_v26, %v1872_v57  ;;  %v4353_v26 = vor.u32 %v4704_v37, %v4350_v49 }
 0x864   : > { %v1897_v52 = vsel %vm780_vm0, %v6204_v48, 0.0  ;;  %2128 = vmatpush.bf16.msrb.mxu3 %v4353_v26 }
 0x865   : > { %1898 = vadd.xlane.f32.xlu1 %v1897_v52 }
 0x883   : > { %v1884_v58 = vpop.xlane.xlu2 %1883 }
 0x884   : > { %v1900_v6 = vmul.f32 %v1884_v58, %v5470_v18  ;;  %v4340_v58 = vld [vmem:[%s7324_s14] sm:$0xf] }
 0x886   : > { %v6210_v44 = vsub.f32 %v6179_v38, %v1900_v6  ;;  %v4703_v6 = vld [vmem:[%s7324_s14 + $0x4] sm:$0xf0] }
 0x888   : > { %v1912_v20 = vmul.f32 %v6210_v44, %v6210_v44 }
 0x88a   : > { %v1918_v34 = vsel %vm780_vm0, %v1912_v20, 0.0  ;;  %v4341_v20 = vor.u32 %v4703_v6, %v4340_v58 }
 0x88b   : > { %v1887_v46 = vpop.xlane.xlu0 %1886  ;;  %1919 = vadd.xlane.f32.xlu2 %v1918_v34  ;;  %v4702_v34 = vld [vmem:[%s7324_s14 + $0x4] sm:$0xf] }
 0x88c   : > { %v1901_v51 = vmul.f32 %v1887_v46, %v5470_v18  ;;  %v4342_v46 = vld [vmem:[%s7324_s14 + $0x8] sm:$0xf0]  ;;  %2105 = vmatpush.bf16.msrb.mxu2 %v4341_v20 }
 0x88e   : > { %v6217_v59 = vsub.f32 %v6184_v32, %v1901_v51  ;;  %v4345_v51 = vor.u32 %v4702_v34, %v4342_v46 }
 0x890   : > { %v1913_v45 = vmul.f32 %v6217_v59, %v6217_v59  ;;  %2129 = vmatpush.bf16.msrb.mxu3 %v4345_v51 }
 0x892   : > { %v1921_v62 = vsel %vm780_vm0, %v1913_v45, 0.0 }
 0x893   : > { %1922 = vadd.xlane.f32.xlu0 %v1921_v62 }
 0x8c0   : > { %v1890_v15 = vpop.xlane.xlu1 %1889 }
 0x8c1   : > { %v1902_v4 = vmul.f32 %v1890_v15, %v5470_v18 }
 0x8c3   : > { %v6224_v3 = vsub.f32 %v6189_v55, %v1902_v4 }
 0x8c5   : > { %v1914_v29 = vmul.f32 %v6224_v3, %v6224_v3 }
 0x8c7   : > { %v1924_v8 = vsel %vm780_vm0, %v1914_v29, 0.0 }
 0x8c8   : > { %1925 = vadd.xlane.f32.xlu1 %v1924_v8  ;;  %v1893_v23 = vpop.xlane.xlu2 %1892 }
 0x8c9   : > { %v1903_v10 = vmul.f32 %v1893_v23, %v5470_v18 }
 0x8cb   : > { %v6231_v1 = vsub.f32 %v6194_v21, %v1903_v10 }
 0x8cd   : > { %v1915_v2 = vmul.f32 %v6231_v1, %v6231_v1 }
 0x8cf   : > { %v1927_v25 = vsel %vm780_vm0, %v1915_v2, 0.0 }
 0x8d0   : > { %v1896_v17 = vpop.xlane.xlu0 %1895  ;;  %1928 = vadd.xlane.f32.xlu2 %v1927_v25 }
 0x8d1   : > { %v1904_v19 = vmul.f32 %v1896_v17, %v5470_v18 }
 0x8d3   : > { %v6238_v16 = vsub.f32 %v6199_v30, %v1904_v19 }
 0x8d5   : > { %v1916_v61 = vmul.f32 %v6238_v16, %v6238_v16 }
 0x8d7   : > { %v1930_v5 = vsel %vm780_vm0, %v1916_v61, 0.0 }
 0x8d8   : > { %v1899_v13 = vpop.xlane.xlu1 %1898  ;;  %1931 = vadd.xlane.f32.xlu0 %v1930_v5 }
 0x8d9   : > { %v1905_v40 = vmul.f32 %v1899_v13, %v5470_v18 }
 0x8db   : > { %v6245_v42 = vsub.f32 %v6204_v48, %v1905_v40  ;;  %v6303_v40 = vld [vmem:[%s7322_s12] ss:$0 sm:$0xff] }
 0x8dd   : > { %v1917_v35 = vmul.f32 %v6245_v42, %v6245_v42 }
 0x8df   : > { %v1933_v7 = vsel %vm780_vm0, %v1917_v35, 0.0 }
 0x8e0   : > { %1934 = vadd.xlane.f32.xlu1 %v1933_v7 }
 0x8fe   : > { %v1920_v24 = vpop.xlane.xlu2 %1919 }
 0x8ff   : > { %v1936_v57 = vmul.f32 %v1920_v24, %v5470_v18 }
 0x901   : > { %v1942_v52 = vadd.f32 1e-05, %v1936_v57 }
 0x903   : > { %5040 = vrsqrt.f32 %v1942_v52  ;;  %vm1954_vm8 = vweird.f32 %v1942_v52 }
 0x906   : > { %v1923_v45 = vpop.xlane.xlu0 %1922 }
 0x907   : > { %v1937_v62 = vmul.f32 %v1923_v45, %v5470_v18 }
 0x909   : > { %v5041_v15 = vpop.eup %5040  ;;  %v1943_v4 = vadd.f32 1e-05, %v1937_v62 }
 0x90a   : > { %v1949_v29 = vmul.f32 %v5041_v15, %v1942_v52  ;;  %vm1955_vm7 = vweird.f32 %v5041_v15 }
 0x90b   : > { %5042 = vrsqrt.f32 %v1943_v4  ;;  %vm1956_vm10 = vmor %vm1954_vm8, %vm1955_vm7  ;;  %vm1964_vm12 = vweird.f32 %v1943_v4 }
 0x90c   : > { %v1950_v8 = vmul.f32 %v5041_v15, %v1949_v29 }
 0x90e   : > { %v1951_v23 = vmul.f32 0.5, %v1950_v8 }
 0x910   : > { %v1952_v10 = vsub.f32 1.5, %v1951_v23 }
 0x911   : > { %v5043_v2 = vpop.eup %5042 }
 0x912   : > { %v1953_v25 = vmul.f32 %v5041_v15, %v1952_v10  ;;  %v1959_v17 = vmul.f32 %v5043_v2, %v1943_v4  ;;  %vm1965_vm11 = vweird.f32 %v5043_v2 }
 0x913   : > { %vm1966_vm13 = vmor %vm1964_vm12, %vm1965_vm11 }
 0x914   : > { %v1960_v19 = vmul.f32 %v5043_v2, %v1959_v17  ;;  %v1957_v61 = vsel %vm1956_vm10, %v5041_v15, %v1953_v25 }
 0x915   : > { %v2008_v35 = vmul.f32 %v1957_v61, %v6210_v44 }
 0x916   : > { %v1961_v5 = vmul.f32 0.5, %v1960_v19 }
 0x917   : > { %v2017_v0 = vmul.f32 %v6303_v40, %v2008_v35 }
 0x918   : > { %v1962_v13 = vsub.f32 1.5, %v1961_v5 }
 0x919   : > { %v2026_v14 = vadd.f32 %v6309_v53, %v2017_v0 }
 0x91a   : > { %v1963_v7 = vmul.f32 %v5043_v2, %v1962_v13 }
 0x91c   : > { %v1967_v28 = vsel %vm1966_vm13, %v5043_v2, %v1963_v7 }
 0x91d   : > { %v2009_v60 = vmul.f32 %v1967_v28, %v6217_v59 }
 0x91f   : > { %v2018_v27 = vmul.f32 %v6303_v40, %v2009_v60 }
 0x921   : > { %v2027_v39 = vadd.f32 %v6309_v53, %v2018_v27 }
 0x923   : > { %v2032_v44 = vpack.c.bf16 %v2027_v39, %v2026_v14 }
 0x925   : > { %4370 = vmatmul.msk.bf16.vlgmr.msrb.gmra.mxu2 %vm780_vm0, %v2032_v44  ;;  %4373 = vmatmul.msk.bf16.vlgmr.msrb.gmra.mxu3 %vm780_vm0, %v2032_v44 }
 0x93b   : > { %v1926_v31 = vpop.xlane.xlu1 %1925 }
 0x93c   : > { %v1938_v54 = vmul.f32 %v1926_v31, %v5470_v18 }
 0x93e   : > { %v1944_v22 = vadd.f32 1e-05, %v1938_v54 }
 0x940   : > { %5044 = vrsqrt.f32 %v1944_v22  ;;  %vm1974_vm1 = vweird.f32 %v1944_v22 }
 0x943   : > { %v1929_v36 = vpop.xlane.xlu2 %1928 }
 0x944   : > { %v1939_v63 = vmul.f32 %v1929_v36, %v5470_v18 }
 0x946   : > { %v5045_v59 = vpop.eup %5044  ;;  %v1945_v47 = vadd.f32 1e-05, %v1939_v63 }
 0x947   : > { %v1969_v11 = vmul.f32 %v5045_v59, %v1944_v22  ;;  %vm1975_vm15 = vweird.f32 %v5045_v59 }
 0x948   : > { %5046 = vrsqrt.f32 %v1945_v47  ;;  %vm1976_vm2 = vmor %vm1974_vm1, %vm1975_vm15  ;;  %vm1984_vm4 = vweird.f32 %v1945_v47 }
 0x949   : > { %v1970_v37 = vmul.f32 %v5045_v59, %v1969_v11  ;;  %v4715_v11 = vld [vmem:[%s7326_s16 + $0x28] sm:$0xff] }
 0x94b   : > { %v1971_v24 = vmul.f32 0.5, %v1970_v37  ;;  %v1932_v33 = vpop.xlane.xlu0 %1931  ;;  %v4723_v37 = vld [vmem:[%s7326_s16 + $0x68] sm:$0xff] }
 0x94c   : > { %v1940_v49 = vmul.f32 %v1932_v33, %v5470_v18  ;;  %v4722_v33 = vld [vmem:[%s7326_s16 + $0x60] sm:$0xff] }
 0x94d   : > { %v1972_v57 = vsub.f32 1.5, %v1971_v24  ;;  %v4714_v24 = vld [vmem:[%s7326_s16 + $0x20] sm:$0xff] }
 0x94e   : > { %v5047_v26 = vpop.eup %5046  ;;  %v1946_v52 = vadd.f32 1e-05, %v1940_v49  ;;  %v4713_v49 = vld [vmem:[%s7326_s16 + $0x18] sm:$0xff] }
 0x94f   : > { %v1973_v58 = vmul.f32 %v5045_v59, %v1972_v57  ;;  %v1979_v6 = vmul.f32 %v5047_v26, %v1945_v47  ;;  %vm1985_vm3 = vweird.f32 %v5047_v26  ;;  %v4721_v57 = vld [vmem:[%s7326_s16 + $0x58] sm:$0xff] }
 0x950   : > { %5048 = vrsqrt.f32 %v1946_v52  ;;  %vm1986_vm6 = vmor %vm1984_vm4, %vm1985_vm3  ;;  %vm1994_vm8 = vweird.f32 %v1946_v52 }
 0x951   : > { %v1980_v20 = vmul.f32 %v5047_v26, %v1979_v6  ;;  %v1977_v34 = vsel %vm1976_vm2, %v5045_v59, %v1973_v58  ;;  %v4711_v58 = vld [vmem:[%s7326_s16 + $0x8] sm:$0xff] }
 0x952   : > { %v2010_v4 = vmul.f32 %v1977_v34, %v6224_v3  ;;  %v4719_v6 = vld [vmem:[%s7326_s16 + $0x48] sm:$0xff] }
 0x953   : > { %v1981_v46 = vmul.f32 0.5, %v1980_v20  ;;  %v1935_v51 = vpop.xlane.xlu1 %1934  ;;  %v2043_v20 = vld [vmem:[%s7325_s15] sm:$0x3] }
 0x954   : > { %v1941_v45 = vmul.f32 %v1935_v51, %v5470_v18  ;;  %v2019_v17 = vmul.f32 %v6303_v40, %v2010_v4  ;;  %v6383_v34 = vperm.slane %v2043_v20, 0  ;;  %v4710_v51 = vld [vmem:[%s7326_s16] sm:$0xff] }
 0x955   : > { %v1982_v62 = vsub.f32 1.5, %v1981_v46  ;;  %v6385_v46 = vperm.slane %v2043_v20, 1 }
 0x956   : > { %v5049_v15 = vpop.eup %5048  ;;  %v1947_v29 = vadd.f32 1e-05, %v1941_v45  ;;  %v2028_v35 = vadd.f32 %v6309_v53, %v2019_v17  ;;  %v4718_v45 = vld [vmem:[%s7326_s16 + $0x40] sm:$0xff] }
 0x957   : > { %v1983_v8 = vmul.f32 %v5047_v26, %v1982_v62  ;;  %v1989_v23 = vmul.f32 %v5049_v15, %v1946_v52  ;;  %vm1995_vm7 = vweird.f32 %v5049_v15  ;;  %v4720_v52 = vld [vmem:[%s7326_s16 + $0x50] sm:$0xff] }
 0x958   : > { %5050 = vrsqrt.f32 %v1947_v29  ;;  %vm1996_vm10 = vmor %vm1994_vm8, %vm1995_vm7  ;;  %vm2004_vm12 = vweird.f32 %v1947_v29 }
 0x959   : > { %v1987_v10 = vsel %vm1986_vm6, %v5047_v26, %v1983_v8  ;;  %v1990_v2 = vmul.f32 %v5049_v15, %v1989_v23  ;;  %v4712_v26 = vld [vmem:[%s7326_s16 + $0x10] sm:$0xff] }
 0x95a   : > { %v2011_v25 = vmul.f32 %v1987_v10, %v6231_v1 }
 0x95b   : > { %v1991_v19 = vmul.f32 0.5, %v1990_v2 }
 0x95c   : > { %v2020_v61 = vmul.f32 %v6303_v40, %v2011_v25 }
 0x95d   : > { %v1992_v5 = vsub.f32 1.5, %v1991_v19 }
 0x95e   : > { %v5051_v13 = vpop.eup %5050  ;;  %v2029_v3 = vadd.f32 %v6309_v53, %v2020_v61 }
 0x95f   : > { %v1993_v7 = vmul.f32 %v5049_v15, %v1992_v5  ;;  %v1999_v28 = vmul.f32 %v5051_v13, %v1947_v29  ;;  %vm2005_vm11 = vweird.f32 %v5051_v13 }
 0x960   : > { %v2033_v0 = vpack.c.bf16 %v2029_v3, %v2028_v35  ;;  %vm2006_vm13 = vmor %vm2004_vm12, %vm2005_vm11 }
 0x961   : > { %v2000_v60 = vmul.f32 %v5051_v13, %v1999_v28  ;;  %v1997_v1 = vsel %vm1996_vm10, %v5049_v15, %v1993_v7 }
 0x962   : > { %4371 = vmatmul.msk.bf16.gmra.mxu2 %vm780_vm0, %v2033_v0  ;;  %4374 = vmatmul.msk.bf16.gmra.mxu3 %vm780_vm0, %v2033_v0  ;;  %v2012_v39 = vmul.f32 %v1997_v1, %v6238_v16  ;;  %v4717_v16 = vld [vmem:[%s7326_s16 + $0x38] sm:$0xff] }
 0x963   : > { %v2001_v27 = vmul.f32 0.5, %v2000_v60  ;;  %2392 = vmatpush.bf16.msrb.mxu0 %v4717_v16 }
 0x964   : > { %v2021_v22 = vmul.f32 %v6303_v40, %v2012_v39 }
 0x965   : > { %v2002_v14 = vsub.f32 1.5, %v2001_v27 }
 0x966   : > { %v2030_v63 = vadd.f32 %v6309_v53, %v2021_v22 }
 0x967   : > { %v2003_v44 = vmul.f32 %v5051_v13, %v2002_v14 }
 0x969   : > { %v2007_v31 = vsel %vm2006_vm13, %v5051_v13, %v2003_v44 }
 0x96a   : > { %v2013_v54 = vmul.f32 %v2007_v31, %v6245_v42  ;;  %v4725_v42 = vld [vmem:[%s7326_s16 + $0x78] sm:$0xff] }
 0x96b   : > { %2416 = vmatpush.bf16.msra.mxu1 %v4725_v42 }
 0x96c   : > { %v2022_v36 = vmul.f32 %v6303_v40, %v2013_v54  ;;  %v4716_v40 = vld [vmem:[%s7326_s16 + $0x30] sm:$0xff] }
 0x96d   : > { %2393 = vmatpush.bf16.msrb.mxu0 %v4716_v40 }
 0x96e   : > { %v2031_v59 = vadd.f32 %v6309_v53, %v2022_v36  ;;  %v4724_v53 = vld [vmem:[%s7326_s16 + $0x70] sm:$0xff] }
 0x96f   : > { %2417 = vmatpush.bf16.msra.mxu1 %v4724_v53 }
 0x970   : > { %v2034_v47 = vpack.c.bf16 %v2031_v59, %v2030_v63 }
 0x971   : > { %2394 = vmatpush.bf16.msrb.mxu0 %v4715_v11 }
 0x972   : > { %4372 = vmatmul.msk.bf16.gmra.mxu2 %vm780_vm0, %v2034_v47  ;;  %4375 = vmatmul.msk.bf16.gmra.mxu3 %vm780_vm0, %v2034_v47 }
 0x973   : > { %2418 = vmatpush.bf16.msra.mxu1 %v4723_v37 }
 0x975   : > { %2395 = vmatpush.bf16.msrb.mxu0 %v4714_v24 }
 0x977   : > { %2419 = vmatpush.bf16.msra.mxu1 %v4722_v33 }
 0x979   : > { %2396 = vmatpush.bf16.msrb.mxu0 %v4713_v49 }
 0x97b   : > { %2420 = vmatpush.bf16.msra.mxu1 %v4721_v57 }
 0x97d   : > { %2397 = vmatpush.bf16.msrb.mxu0 %v4712_v26 }
 0x97f   : > { %2421 = vmatpush.bf16.msra.mxu1 %v4720_v52 }
 0x981   : > { %2398 = vmatpush.bf16.msrb.mxu0 %v4711_v58 }
 0x983   : > { %2422 = vmatpush.bf16.msra.mxu1 %v4719_v6 }
 0x985   : > { %2399 = vmatpush.bf16.msrb.mxu0 %v4710_v51 }
 0x987   : > { %2423 = vmatpush.bf16.msra.mxu1 %v4718_v45 }
 0x9a8   : > { %v2107_v62 = vpop.f32.mrf.mxu2  ;;  %v2131_v15 = vpop.f32.mrf.mxu3 }
 0x9a9   : > { %v2108_v4 = vadd.f32 %v2107_v62, %v6383_v34  ;;  %v2132_v29 = vadd.f32 %v2131_v15, %v6385_v46 }
 0x9ab   : > { %v2158_v8 = vmul.f32 0.044715, %v2108_v4  ;;  %v2159_v23 = vmul.f32 0.044715, %v2132_v29  ;;  %v2146_v40 = vmul.f32 0.5, %v2108_v4  ;;  %v2147_v37 = vmul.f32 0.5, %v2132_v29 }
 0x9ad   : > { %v2170_v10 = vmul.f32 %v2158_v8, %v2108_v4  ;;  %v2171_v2 = vmul.f32 %v2159_v23, %v2132_v29 }
 0x9af   : > { %v2182_v25 = vmul.f32 %v2170_v10, %v2108_v4  ;;  %v2183_v17 = vmul.f32 %v2171_v2, %v2132_v29 }
 0x9b0   : > { %v2109_v19 = vpop.f32.mrf.mxu2  ;;  %v2133_v61 = vpop.f32.mrf.mxu3 }
 0x9b1   : > { %v2194_v5 = vadd.f32 %v2182_v25, %v2108_v4  ;;  %v2110_v13 = vadd.f32 %v2109_v19, %v6383_v34  ;;  %v2134_v35 = vadd.f32 %v2133_v61, %v6385_v46  ;;  %v2195_v3 = vadd.f32 %v2183_v17, %v2132_v29 }
 0x9b3   : > { %v2160_v7 = vmul.f32 0.044715, %v2110_v13  ;;  %v2161_v28 = vmul.f32 0.044715, %v2134_v35  ;;  %v2206_v0 = vmul.f32 0.7978846, %v2194_v5 }
 0x9b4   : > { %v2207_v1 = vmul.f32 0.7978846, %v2195_v3  ;;  %v2148_v53 = vmul.f32 0.5, %v2110_v13  ;;  %v2149_v24 = vmul.f32 0.5, %v2134_v35 }
 0x9b5   : > { %v2172_v60 = vmul.f32 %v2160_v7, %v2110_v13  ;;  %v2173_v27 = vmul.f32 %v2161_v28, %v2134_v35  ;;  %5052 = vtanh.f32 %v2206_v0 }
 0x9b6   : > { %5054 = vtanh.f32 %v2207_v1 }
 0x9b7   : > { %v2184_v14 = vmul.f32 %v2172_v60, %v2110_v13  ;;  %v2185_v39 = vmul.f32 %v2173_v27, %v2134_v35 }
 0x9b9   : > { %v2196_v44 = vadd.f32 %v2184_v14, %v2110_v13  ;;  %v2197_v31 = vadd.f32 %v2185_v39, %v2134_v35 }
 0x9bb   : > { %v2208_v54 = vmul.f32 0.7978846, %v2196_v44  ;;  %v2209_v22 = vmul.f32 0.7978846, %v2197_v31  ;;  %v5053_v36 = vpop.eup %5052 }
 0x9bc   : > { %v5055_v63 = vpop.eup %5054  ;;  %v2230_v59 = vadd.f32 1.0, %v5053_v36 }
 0x9bd   : > { %5056 = vtanh.f32 %v2208_v54  ;;  %v2231_v16 = vadd.f32 1.0, %v5055_v63 }
 0x9be   : > { %5058 = vtanh.f32 %v2209_v22  ;;  %v2242_v49 = vmul.f32 %v2230_v59, %v2146_v40 }
 0x9bf   : > { %v2243_v26 = vmul.f32 %v2231_v16, %v2147_v37 }
 0x9c3   : > { %v5057_v47 = vpop.eup %5056 }
 0x9c4   : > { %v5059_v42 = vpop.eup %5058  ;;  %v2232_v11 = vadd.f32 1.0, %v5057_v47 }
 0x9c5   : > { %v2233_v33 = vadd.f32 1.0, %v5059_v42 }
 0x9c6   : > { %v2244_v57 = vmul.f32 %v2232_v11, %v2148_v53 }
 0x9c7   : > { %v2245_v52 = vmul.f32 %v2233_v33, %v2149_v24 }
 0x9c8   : > { %v2254_v58 = vpack.c.bf16 %v2244_v57, %v2242_v49 }
 0x9c9   : > { %v2255_v6 = vpack.c.bf16 %v2245_v52, %v2243_v26 }
 0x9ca   : > { %2400 = vmatmul.bf16.vlgmr.msrb.gmra.mxu0 %v2254_v58 }
 0x9cb   : > { %2424 = vmatmul.bf16.vlgmr.msra.gmra.mxu1 %v2255_v6 }
 0x9e5   : > { %v2112_v20 = vpop.f32.mrf.mxu2  ;;  %v2136_v51 = vpop.f32.mrf.mxu3 }
 0x9e6   : > { %v2113_v45 = vadd.f32 %v2112_v20, %v6383_v34  ;;  %v2137_v62 = vadd.f32 %v2136_v51, %v6385_v46 }
 0x9e8   : > { %v2162_v15 = vmul.f32 0.044715, %v2113_v45  ;;  %v2163_v4 = vmul.f32 0.044715, %v2137_v62  ;;  %v2150_v20 = vmul.f32 0.5, %v2113_v45 }
 0x9ea   : > { %v2175_v8 = vmul.f32 %v2163_v4, %v2137_v62  ;;  %v2174_v29 = vmul.f32 %v2162_v15, %v2113_v45 }
 0x9ec   : > { %v2186_v23 = vmul.f32 %v2174_v29, %v2113_v45  ;;  %v2187_v10 = vmul.f32 %v2175_v8, %v2137_v62 }
 0x9ed   : > { %v2114_v2 = vpop.f32.mrf.mxu2  ;;  %v2138_v25 = vpop.f32.mrf.mxu3 }
 0x9ee   : > { %v2115_v17 = vadd.f32 %v2114_v2, %v6383_v34  ;;  %v2139_v19 = vadd.f32 %v2138_v25, %v6385_v46  ;;  %v2198_v61 = vadd.f32 %v2186_v23, %v2113_v45  ;;  %v2199_v5 = vadd.f32 %v2187_v10, %v2137_v62 }
 0x9ef   : > { %v2151_v23 = vmul.f32 0.5, %v2137_v62 }
 0x9f0   : > { %v2165_v13 = vmul.f32 0.044715, %v2139_v19  ;;  %v2164_v35 = vmul.f32 0.044715, %v2115_v17  ;;  %v2210_v3 = vmul.f32 0.7978846, %v2198_v61 }
 0x9f1   : > { %v2211_v0 = vmul.f32 0.7978846, %v2199_v5  ;;  %v2152_v8 = vmul.f32 0.5, %v2115_v17  ;;  %v2153_v10 = vmul.f32 0.5, %v2139_v19 }
 0x9f2   : > { %v2177_v7 = vmul.f32 %v2165_v13, %v2139_v19  ;;  %v2176_v28 = vmul.f32 %v2164_v35, %v2115_v17  ;;  %5060 = vtanh.f32 %v2210_v3 }
 0x9f3   : > { %5062 = vtanh.f32 %v2211_v0 }
 0x9f4   : > { %v2188_v60 = vmul.f32 %v2176_v28, %v2115_v17  ;;  %v2189_v1 = vmul.f32 %v2177_v7, %v2139_v19 }
 0x9f5   : > { %v2117_v27 = vpop.f32.mrf.mxu2  ;;  %v2141_v14 = vpop.f32.mrf.mxu3 }
 0x9f6   : > { %v2118_v39 = vadd.f32 %v2117_v27, %v6383_v34  ;;  %v6403_v44 = vadd.f32 %v2141_v14, %v6385_v46  ;;  %v2200_v31 = vadd.f32 %v2188_v60, %v2115_v17  ;;  %v2201_v54 = vadd.f32 %v2189_v1, %v2139_v19 }
 0x9f8   : > { %v2166_v22 = vmul.f32 0.044715, %v2118_v39  ;;  %v2167_v36 = vmul.f32 0.044715, %v6403_v44  ;;  %v2212_v63 = vmul.f32 0.7978846, %v2200_v31  ;;  %v5061_v42 = vpop.eup %5060 }
 0x9f9   : > { %v2213_v59 = vmul.f32 0.7978846, %v2201_v54  ;;  %v5063_v11 = vpop.eup %5062  ;;  %v2234_v26 = vadd.f32 1.0, %v5061_v42 }
 0x9fa   : > { %v2179_v47 = vmul.f32 %v2167_v36, %v6403_v44  ;;  %5064 = vtanh.f32 %v2212_v63  ;;  %v2178_v16 = vmul.f32 %v2166_v22, %v2118_v39  ;;  %v2235_v51 = vadd.f32 1.0, %v5063_v11 }
 0x9fb   : > { %5066 = vtanh.f32 %v2213_v59  ;;  %v2246_v5 = vmul.f32 %v2234_v26, %v2150_v20  ;;  %v2154_v36 = vmul.f32 0.5, %v2118_v39  ;;  %v4923_v26 = vld [vmem:[%s7327_s17] ss:$0 sm:$0xff] }
 0x9fc   : > { %v2190_v40 = vmul.f32 %v2178_v16, %v2118_v39  ;;  %v2191_v53 = vmul.f32 %v2179_v47, %v6403_v44  ;;  %v2247_v35 = vmul.f32 %v2235_v51, %v2151_v23  ;;  %v2155_v47 = vmul.f32 0.5, %v6403_v44 }
 0x9fd   : > { %v2119_v37 = vpop.f32.mrf.mxu2  ;;  %v2143_v24 = vpop.f32.mrf.mxu3 }
 0x9fe   : > { %v2120_v33 = vadd.f32 %v2119_v37, %v6383_v34  ;;  %v2144_v49 = vadd.f32 %v2143_v24, %v6385_v46  ;;  %v2202_v57 = vadd.f32 %v2190_v40, %v2118_v39  ;;  %v2203_v52 = vadd.f32 %v2191_v53, %v6403_v44 }
 0xa00   : > { %v5065_v58 = vpop.eup %5064  ;;  %v2169_v6 = vmul.f32 0.044715, %v2144_v49  ;;  %v2168_v15 = vmul.f32 0.044715, %v2120_v33  ;;  %v2214_v34 = vmul.f32 0.7978846, %v2202_v57 }
 0xa01   : > { %v5067_v4 = vpop.eup %5066  ;;  %v2236_v29 = vadd.f32 1.0, %v5065_v58  ;;  %v2215_v13 = vmul.f32 0.7978846, %v2203_v52  ;;  %v2156_v63 = vmul.f32 0.5, %v2120_v33  ;;  %v2157_v16 = vmul.f32 0.5, %v2144_v49 }
 0xa02   : > { %v2181_v2 = vmul.f32 %v2169_v6, %v2144_v49  ;;  %v2237_v25 = vadd.f32 1.0, %v5067_v4  ;;  %v2180_v61 = vmul.f32 %v2168_v15, %v2120_v33  ;;  %5068 = vtanh.f32 %v2214_v34 }
 0xa03   : > { %v2248_v46 = vmul.f32 %v2236_v29, %v2152_v8  ;;  %5070 = vtanh.f32 %v2215_v13 }
 0xa04   : > { %v2249_v3 = vmul.f32 %v2237_v25, %v2153_v10  ;;  %v2192_v7 = vmul.f32 %v2180_v61, %v2120_v33  ;;  %v2193_v28 = vmul.f32 %v2181_v2, %v2144_v49 }
 0xa05   : > { %v2256_v0 = vpack.c.bf16 %v2248_v46, %v2246_v5 }
 0xa06   : > { %v2257_v45 = vpack.c.bf16 %v2249_v3, %v2247_v35  ;;  %v2204_v60 = vadd.f32 %v2192_v7, %v2120_v33  ;;  %v2205_v1 = vadd.f32 %v2193_v28, %v2144_v49 }
 0xa07   : > { %2405 = vmatmul.bf16.gmra.mxu0 %v2256_v0 }
 0xa08   : > { %2429 = vmatmul.bf16.gmra.mxu1 %v2257_v45  ;;  %v2216_v62 = vmul.f32 0.7978846, %v2204_v60  ;;  %v2217_v17 = vmul.f32 0.7978846, %v2205_v1  ;;  %v5069_v19 = vpop.eup %5068 }
 0xa09   : > { %v5071_v27 = vpop.eup %5070  ;;  %v2238_v14 = vadd.f32 1.0, %v5069_v19 }
 0xa0a   : > { %5072 = vtanh.f32 %v2216_v62  ;;  %v2239_v54 = vadd.f32 1.0, %v5071_v27 }
 0xa0b   : > { %5074 = vtanh.f32 %v2217_v17  ;;  %v2250_v40 = vmul.f32 %v2238_v14, %v2154_v36 }
 0xa0c   : > { %v2251_v11 = vmul.f32 %v2239_v54, %v2155_v47 }
 0xa10   : > { %v5073_v31 = vpop.eup %5072 }
 0xa11   : > { %v5075_v22 = vpop.eup %5074  ;;  %v2240_v59 = vadd.f32 1.0, %v5073_v31 }
 0xa12   : > { %v2241_v42 = vadd.f32 1.0, %v5075_v22 }
 0xa13   : > { %v2252_v53 = vmul.f32 %v2240_v59, %v2156_v63 }
 0xa14   : > { %v2253_v37 = vmul.f32 %v2241_v42, %v2157_v16 }
 0xa15   : > { %v2258_v24 = vpack.c.bf16 %v2252_v53, %v2250_v40 }
 0xa16   : > { %v2259_v57 = vpack.c.bf16 %v2253_v37, %v2251_v11 }
 0xa17   : > { %2410 = vmatmul.bf16.gmra.mxu0 %v2258_v24 }
 0xa18   : > { %2434 = vmatmul.bf16.gmra.mxu1 %v2259_v57 }
 0xa47   : > { %v2401_v52 = vpop.f32.mrf.mxu0 }
 0xa48   : > { %v2402_v39 = vadd.f32 %v4923_v26, %v2401_v52  ;;  %v2425_v33 = vpop.f32.mrf.mxu1 }
 0xa4a   : > { %v2426_v58 = vadd.f32 %v2425_v33, %v2402_v39 }
 0xa4c   : > { %v6416_v44 = vadd.f32 %v2426_v58, %v6179_v38 }
 0xa4e   : > { %v2450_v49 = vsel %vm780_vm0, %v6416_v44, 0.0 }
 0xa4f   : > { %v2403_v6 = vpop.f32.mrf.mxu0  ;;  %2451 = vadd.xlane.f32.xlu2 %v2450_v49 }
 0xa50   : > { %v2404_v20 = vadd.f32 %v4923_v26, %v2403_v6  ;;  %v2427_v51 = vpop.f32.mrf.mxu1 }
 0xa52   : > { %v2428_v15 = vadd.f32 %v2427_v51, %v2404_v20 }
 0xa54   : > { %v6421_v4 = vadd.f32 %v2428_v15, %v6184_v32 }
 0xa56   : > { %v2453_v8 = vsel %vm780_vm0, %v6421_v4, 0.0 }
 0xa57   : > { %2454 = vadd.xlane.f32.xlu0 %v2453_v8  ;;  %v4477_v8 = vld [vmem:[%s7318_s8 + $0x70] sm:$0xf] }
 0xa84   : > { %v2406_v29 = vpop.f32.mrf.mxu0 }
 0xa85   : > { %v2407_v23 = vadd.f32 %v4923_v26, %v2406_v29  ;;  %v2430_v10 = vpop.f32.mrf.mxu1  ;;  %v4733_v29 = vld [vmem:[%s7318_s8 + $0x74] sm:$0xf0] }
 0xa87   : > { %v2431_v38 = vadd.f32 %v2430_v10, %v2407_v23  ;;  %v4732_v23 = vld [vmem:[%s7318_s8 + $0x74] sm:$0xf]  ;;  %v4478_v10 = vor.u32 %v4733_v29, %v4477_v8  ;;  %v6546_v29 = vld [vmem:[%s7317_s7 + $0x1] ss:$0 sm:$0xff] }
 0xa89   : > { %v6426_v2 = vadd.f32 %v2431_v38, %v6189_v55  ;;  %v4479_v38 = vld [vmem:[%s7318_s8 + $0x78] sm:$0xf0]  ;;  %2672 = vmatpush.bf16.msra.mxu2 %v4478_v10 }
 0xa8b   : > { %v2456_v25 = vsel %vm780_vm0, %v6426_v2, 0.0 }
 0xa8c   : > { %v2408_v61 = vpop.f32.mrf.mxu0  ;;  %2457 = vadd.xlane.f32.xlu1 %v2456_v25  ;;  %v4482_v25 = vor.u32 %v4732_v23, %v4479_v38 }
 0xa8d   : > { %v2409_v34 = vadd.f32 %v4923_v26, %v2408_v61  ;;  %v2432_v5 = vpop.f32.mrf.mxu1  ;;  %v4469_v61 = vld [vmem:[%s7318_s8 + $0x60] sm:$0xf] }
 0xa8e   : > { %2696 = vmatpush.bf16.msra.mxu3 %v4482_v25 }
 0xa8f   : > { %v2433_v32 = vadd.f32 %v2432_v5, %v2409_v34  ;;  %v4731_v34 = vld [vmem:[%s7318_s8 + $0x64] sm:$0xf0]  ;;  %v4730_v5 = vld [vmem:[%s7318_s8 + $0x64] sm:$0xf] }
 0xa91   : > { %v6431_v46 = vadd.f32 %v2433_v32, %v6194_v21  ;;  %v4470_v32 = vor.u32 %v4731_v34, %v4469_v61 }
 0xa93   : > { %v2459_v13 = vsel %vm780_vm0, %v6431_v46, 0.0  ;;  %2673 = vmatpush.bf16.msra.mxu2 %v4470_v32 }
 0xa94   : > { %v2411_v35 = vpop.f32.mrf.mxu0  ;;  %2460 = vadd.xlane.f32.xlu2 %v2459_v13  ;;  %v4471_v13 = vld [vmem:[%s7318_s8 + $0x68] sm:$0xf0] }
 0xa95   : > { %v2412_v3 = vadd.f32 %v4923_v26, %v2411_v35  ;;  %v2435_v7 = vpop.f32.mrf.mxu1  ;;  %v4474_v35 = vor.u32 %v4730_v5, %v4471_v13 }
 0xa97   : > { %v2436_v55 = vadd.f32 %v2435_v7, %v2412_v3  ;;  %2697 = vmatpush.bf16.msra.mxu3 %v4474_v35  ;;  %v4461_v3 = vld [vmem:[%s7318_s8 + $0x50] sm:$0xf]  ;;  %v4729_v7 = vld [vmem:[%s7318_s8 + $0x54] sm:$0xf0] }
 0xa99   : > { %v6436_v28 = vadd.f32 %v2436_v55, %v6199_v30  ;;  %v4728_v55 = vld [vmem:[%s7318_s8 + $0x54] sm:$0xf] }
 0xa9b   : > { %v2462_v0 = vsel %vm780_vm0, %v6436_v28, 0.0 }
 0xa9c   : > { %v2413_v45 = vpop.f32.mrf.mxu0  ;;  %2463 = vadd.xlane.f32.xlu0 %v2462_v0 }
 0xa9d   : > { %v2414_v60 = vadd.f32 %v4923_v26, %v2413_v45  ;;  %v2437_v1 = vpop.f32.mrf.mxu1  ;;  %v4462_v45 = vor.u32 %v4729_v7, %v4461_v3 }
 0xa9f   : > { %v2438_v21 = vadd.f32 %v2437_v1, %v2414_v60  ;;  %v4463_v60 = vld [vmem:[%s7318_s8 + $0x58] sm:$0xf0]  ;;  %2674 = vmatpush.bf16.msra.mxu2 %v4462_v45 }
 0xaa1   : > { %v6441_v62 = vadd.f32 %v2438_v21, %v6204_v48  ;;  %v4466_v21 = vor.u32 %v4728_v55, %v4463_v60 }
 0xaa3   : > { %v2465_v17 = vsel %vm780_vm0, %v6441_v62, 0.0  ;;  %2698 = vmatpush.bf16.msra.mxu3 %v4466_v21 }
 0xaa4   : > { %2466 = vadd.xlane.f32.xlu1 %v2465_v17 }
 0xac2   : > { %v2452_v19 = vpop.xlane.xlu2 %2451 }
 0xac3   : > { %v2468_v27 = vmul.f32 %v2452_v19, %v5470_v18  ;;  %v4453_v19 = vld [vmem:[%s7318_s8 + $0x40] sm:$0xf] }
 0xac5   : > { %v6447_v30 = vsub.f32 %v6416_v44, %v2468_v27  ;;  %v4727_v27 = vld [vmem:[%s7318_s8 + $0x44] sm:$0xf0] }
 0xac7   : > { %v2480_v14 = vmul.f32 %v6447_v30, %v6447_v30 }
 0xac9   : > { %v2486_v31 = vsel %vm780_vm0, %v2480_v14, 0.0  ;;  %v4454_v14 = vor.u32 %v4727_v27, %v4453_v19 }
 0xaca   : > { %v2455_v54 = vpop.xlane.xlu0 %2454  ;;  %2487 = vadd.xlane.f32.xlu2 %v2486_v31  ;;  %v4726_v31 = vld [vmem:[%s7318_s8 + $0x44] sm:$0xf] }
 0xacb   : > { %v2469_v48 = vmul.f32 %v2455_v54, %v5470_v18  ;;  %v4455_v54 = vld [vmem:[%s7318_s8 + $0x48] sm:$0xf0]  ;;  %2675 = vmatpush.bf16.msra.mxu2 %v4454_v14 }
 0xacd   : > { %v6454_v22 = vsub.f32 %v6421_v4, %v2469_v48  ;;  %v4458_v48 = vor.u32 %v4726_v31, %v4455_v54 }
 0xacf   : > { %v2481_v36 = vmul.f32 %v6454_v22, %v6454_v22  ;;  %2699 = vmatpush.bf16.msra.mxu3 %v4458_v48 }
 0xad1   : > { %v2489_v63 = vsel %vm780_vm0, %v2481_v36, 0.0 }
 0xad2   : > { %2490 = vadd.xlane.f32.xlu0 %v2489_v63 }
 0xaff   : > { %v2458_v59 = vpop.xlane.xlu1 %2457 }
 0xb00   : > { %v2470_v47 = vmul.f32 %v2458_v59, %v5470_v18 }
 0xb02   : > { %v6461_v16 = vsub.f32 %v6426_v2, %v2470_v47 }
 0xb04   : > { %v2482_v42 = vmul.f32 %v6461_v16, %v6461_v16 }
 0xb06   : > { %v2492_v40 = vsel %vm780_vm0, %v2482_v42, 0.0 }
 0xb07   : > { %2493 = vadd.xlane.f32.xlu1 %v2492_v40  ;;  %v2461_v53 = vpop.xlane.xlu2 %2460 }
 0xb08   : > { %v2471_v11 = vmul.f32 %v2461_v53, %v5470_v18 }
 0xb0a   : > { %v6468_v37 = vsub.f32 %v6431_v46, %v2471_v11 }
 0xb0c   : > { %v2483_v24 = vmul.f32 %v6468_v37, %v6468_v37 }
 0xb0e   : > { %v2495_v57 = vsel %vm780_vm0, %v2483_v24, 0.0 }
 0xb0f   : > { %v2464_v26 = vpop.xlane.xlu0 %2463  ;;  %2496 = vadd.xlane.f32.xlu2 %v2495_v57 }
 0xb10   : > { %v2472_v52 = vmul.f32 %v2464_v26, %v5470_v18 }
 0xb12   : > { %v6475_v39 = vsub.f32 %v6436_v28, %v2472_v52 }
 0xb14   : > { %v2484_v33 = vmul.f32 %v6475_v39, %v6475_v39 }
 0xb16   : > { %v2498_v58 = vsel %vm780_vm0, %v2484_v33, 0.0 }
 0xb17   : > { %2499 = vadd.xlane.f32.xlu0 %v2498_v58  ;;  %v2467_v49 = vpop.xlane.xlu1 %2466 }
 0xb18   : > { %v2473_v6 = vmul.f32 %v2467_v49, %v5470_v18 }
 0xb1a   : > { %v6482_v20 = vsub.f32 %v6441_v62, %v2473_v6  ;;  %v6540_v6 = vld [vmem:[%s7316_s6 + $0x1] ss:$0 sm:$0xff] }
 0xb1c   : > { %v2485_v51 = vmul.f32 %v6482_v20, %v6482_v20 }
 0xb1e   : > { %v2501_v15 = vsel %vm780_vm0, %v2485_v51, 0.0 }
 0xb1f   : > { %2502 = vadd.xlane.f32.xlu1 %v2501_v15 }
 0xb3d   : > { %v2488_v0 = vpop.xlane.xlu2 %2487 }
 0xb3e   : > { %v2504_v1 = vmul.f32 %v2488_v0, %v5470_v18 }
 0xb40   : > { %v2510_v17 = vadd.f32 1e-05, %v2504_v1 }
 0xb42   : > { %5076 = vrsqrt.f32 %v2510_v17  ;;  %vm2522_vm1 = vweird.f32 %v2510_v17 }
 0xb45   : > { %v2491_v36 = vpop.xlane.xlu0 %2490 }
 0xb46   : > { %v2505_v63 = vmul.f32 %v2491_v36, %v5470_v18 }
 0xb48   : > { %v5077_v59 = vpop.eup %5076  ;;  %v2511_v47 = vadd.f32 1e-05, %v2505_v63 }
 0xb49   : > { %v2517_v42 = vmul.f32 %v5077_v59, %v2510_v17  ;;  %vm2523_vm15 = vweird.f32 %v5077_v59 }
 0xb4a   : > { %5078 = vrsqrt.f32 %v2511_v47  ;;  %vm2524_vm2 = vmor %vm2522_vm1, %vm2523_vm15  ;;  %vm2532_vm4 = vweird.f32 %v2511_v47 }
 0xb4b   : > { %v2518_v40 = vmul.f32 %v5077_v59, %v2517_v42 }
 0xb4d   : > { %v2519_v53 = vmul.f32 0.5, %v2518_v40 }
 0xb4f   : > { %v2520_v11 = vsub.f32 1.5, %v2519_v53 }
 0xb50   : > { %v5079_v24 = vpop.eup %5078 }
 0xb51   : > { %v2521_v57 = vmul.f32 %v5077_v59, %v2520_v11  ;;  %v2527_v26 = vmul.f32 %v5079_v24, %v2511_v47  ;;  %vm2533_vm3 = vweird.f32 %v5079_v24 }
 0xb52   : > { %vm2534_vm6 = vmor %vm2532_vm4, %vm2533_vm3 }
 0xb53   : > { %v2528_v52 = vmul.f32 %v5079_v24, %v2527_v26  ;;  %v2525_v33 = vsel %vm2524_vm2, %v5077_v59, %v2521_v57 }
 0xb54   : > { %v2576_v51 = vmul.f32 %v2525_v33, %v6447_v30 }
 0xb55   : > { %v2529_v58 = vmul.f32 0.5, %v2528_v52 }
 0xb56   : > { %v2585_v23 = vmul.f32 %v6540_v6, %v2576_v51 }
 0xb57   : > { %v2530_v49 = vsub.f32 1.5, %v2529_v58 }
 0xb58   : > { %v2594_v25 = vadd.f32 %v6546_v29, %v2585_v23 }
 0xb59   : > { %v2531_v15 = vmul.f32 %v5079_v24, %v2530_v49 }
 0xb5b   : > { %v2535_v8 = vsel %vm2534_vm6, %v5079_v24, %v2531_v15 }
 0xb5c   : > { %v2577_v10 = vmul.f32 %v2535_v8, %v6454_v22 }
 0xb5e   : > { %v2586_v38 = vmul.f32 %v6540_v6, %v2577_v10 }
 0xb60   : > { %v2595_v61 = vadd.f32 %v6546_v29, %v2586_v38 }
 0xb62   : > { %v2600_v30 = vpack.c.bf16 %v2595_v61, %v2594_v25 }
 0xb64   : > { %4483 = vmatmul.msk.bf16.vlgmr.msra.gmra.mxu2 %vm780_vm0, %v2600_v30  ;;  %4486 = vmatmul.msk.bf16.vlgmr.msra.gmra.mxu3 %vm780_vm0, %v2600_v30 }
 0xb7a   : > { %v2494_v34 = vpop.xlane.xlu1 %2493 }
 0xb7b   : > { %v2506_v5 = vmul.f32 %v2494_v34, %v5470_v18 }
 0xb7d   : > { %v2512_v32 = vadd.f32 1e-05, %v2506_v5 }
 0xb7f   : > { %5080 = vrsqrt.f32 %v2512_v32  ;;  %vm2542_vm8 = vweird.f32 %v2512_v32 }
 0xb82   : > { %v2497_v13 = vpop.xlane.xlu2 %2496 }
 0xb83   : > { %v2507_v35 = vmul.f32 %v2497_v13, %v5470_v18 }
 0xb85   : > { %v5081_v22 = vpop.eup %5080  ;;  %v2513_v3 = vadd.f32 1e-05, %v2507_v35 }
 0xb86   : > { %v2537_v7 = vmul.f32 %v5081_v22, %v2512_v32  ;;  %vm2543_vm7 = vweird.f32 %v5081_v22 }
 0xb87   : > { %5082 = vrsqrt.f32 %v2513_v3  ;;  %vm2544_vm10 = vmor %vm2542_vm8, %vm2543_vm7  ;;  %vm2552_vm12 = vweird.f32 %v2513_v3 }
 0xb88   : > { %v2538_v55 = vmul.f32 %v5081_v22, %v2537_v7 }
 0xb8a   : > { %v2539_v0 = vmul.f32 0.5, %v2538_v55  ;;  %v2500_v45 = vpop.xlane.xlu0 %2499 }
 0xb8b   : > { %v2508_v60 = vmul.f32 %v2500_v45, %v5470_v18 }
 0xb8c   : > { %v2540_v1 = vsub.f32 1.5, %v2539_v0 }
 0xb8d   : > { %v5083_v21 = vpop.eup %5082  ;;  %v2514_v17 = vadd.f32 1e-05, %v2508_v60 }
 0xb8e   : > { %v2541_v19 = vmul.f32 %v5081_v22, %v2540_v1  ;;  %v2547_v27 = vmul.f32 %v5083_v21, %v2513_v3  ;;  %vm2553_vm11 = vweird.f32 %v5083_v21 }
 0xb8f   : > { %5084 = vrsqrt.f32 %v2514_v17  ;;  %vm2554_vm13 = vmor %vm2552_vm12, %vm2553_vm11  ;;  %vm2562_vm1 = vweird.f32 %v2514_v17 }
 0xb90   : > { %v2548_v14 = vmul.f32 %v5083_v21, %v2547_v27  ;;  %v2545_v31 = vsel %vm2544_vm10, %v5081_v22, %v2541_v19 }
 0xb91   : > { %v2578_v47 = vmul.f32 %v2545_v31, %v6461_v16 }
 0xb92   : > { %v2549_v54 = vmul.f32 0.5, %v2548_v14  ;;  %v2503_v48 = vpop.xlane.xlu1 %2502 }
 0xb93   : > { %v2509_v36 = vmul.f32 %v2503_v48, %v5470_v18  ;;  %v2587_v26 = vmul.f32 %v6540_v6, %v2578_v47 }
 0xb94   : > { %v2550_v63 = vsub.f32 1.5, %v2549_v54 }
 0xb95   : > { %v5085_v59 = vpop.eup %5084  ;;  %v2515_v42 = vadd.f32 1e-05, %v2509_v36  ;;  %v2596_v51 = vadd.f32 %v6546_v29, %v2587_v26 }
 0xb96   : > { %v2551_v40 = vmul.f32 %v5083_v21, %v2550_v63  ;;  %v2557_v53 = vmul.f32 %v5085_v59, %v2514_v17  ;;  %vm2563_vm15 = vweird.f32 %v5085_v59 }
 0xb97   : > { %5086 = vrsqrt.f32 %v2515_v42  ;;  %vm2564_vm2 = vmor %vm2562_vm1, %vm2563_vm15  ;;  %vm2572_vm4 = vweird.f32 %v2515_v42 }
 0xb98   : > { %v2555_v11 = vsel %vm2554_vm13, %v5083_v21, %v2551_v40  ;;  %v2558_v24 = vmul.f32 %v5085_v59, %v2557_v53 }
 0xb99   : > { %v2579_v57 = vmul.f32 %v2555_v11, %v6468_v37 }
 0xb9a   : > { %v2559_v52 = vmul.f32 0.5, %v2558_v24 }
 0xb9b   : > { %v2588_v33 = vmul.f32 %v6540_v6, %v2579_v57 }
 0xb9c   : > { %v2560_v58 = vsub.f32 1.5, %v2559_v52 }
 0xb9d   : > { %v5087_v49 = vpop.eup %5086  ;;  %v2597_v16 = vadd.f32 %v6546_v29, %v2588_v33 }
 0xb9e   : > { %v2561_v15 = vmul.f32 %v5085_v59, %v2560_v58  ;;  %v2567_v8 = vmul.f32 %v5087_v49, %v2515_v42  ;;  %vm2573_vm3 = vweird.f32 %v5087_v49 }
 0xb9f   : > { %v2601_v23 = vpack.c.bf16 %v2597_v16, %v2596_v51  ;;  %vm2574_vm6 = vmor %vm2572_vm4, %vm2573_vm3 }
 0xba0   : > { %v2568_v10 = vmul.f32 %v5087_v49, %v2567_v8  ;;  %v2565_v37 = vsel %vm2564_vm2, %v5085_v59, %v2561_v15 }
 0xba1   : > { %4484 = vmatmul.msk.bf16.gmra.mxu2 %vm780_vm0, %v2601_v23  ;;  %4487 = vmatmul.msk.bf16.gmra.mxu3 %vm780_vm0, %v2601_v23  ;;  %v2580_v61 = vmul.f32 %v2565_v37, %v6475_v39 }
 0xba2   : > { %v2569_v38 = vmul.f32 0.5, %v2568_v10 }
 0xba3   : > { %v2589_v32 = vmul.f32 %v6540_v6, %v2580_v61 }
 0xba4   : > { %v2570_v25 = vsub.f32 1.5, %v2569_v38 }
 0xba5   : > { %v2598_v35 = vadd.f32 %v6546_v29, %v2589_v32 }
 0xba6   : > { %v2571_v30 = vmul.f32 %v5087_v49, %v2570_v25 }
 0xba8   : > { %v2575_v34 = vsel %vm2574_vm6, %v5087_v49, %v2571_v30 }
 0xba9   : > { %v2581_v5 = vmul.f32 %v2575_v34, %v6482_v20  ;;  %v4450_v20 = vld [vmem:[%s7319_s9 + $0x2] sm:$0x3] }
 0xbaa   : > { %v2616_v36 = vperm.slane %v4450_v20, 1 }
 0xbab   : > { %v2590_v13 = vmul.f32 %v6540_v6, %v2581_v5  ;;  %v2615_v6 = vperm.slane %v4450_v20, 0 }
 0xbad   : > { %v2599_v22 = vadd.f32 %v6546_v29, %v2590_v13 }
 0xbaf   : > { %v2602_v3 = vpack.c.bf16 %v2599_v22, %v2598_v35 }
 0xbb1   : > { %4485 = vmatmul.msk.bf16.gmra.mxu2 %vm780_vm0, %v2602_v3  ;;  %4488 = vmatmul.msk.bf16.gmra.mxu3 %vm780_vm0, %v2602_v3 }
 0xbe7   : > { %v2677_v39 = vpop.f32.mrf.mxu2  ;;  %v2701_v7 = vpop.f32.mrf.mxu3 }
 0xbe8   : > { %v2678_v54 = vadd.f32 %v2677_v39, %v2615_v6  ;;  %v2702_v58 = vadd.f32 %v2701_v7, %v2616_v36 }
 0xbef   : > { %v2679_v55 = vpop.f32.mrf.mxu2  ;;  %v2703_v0 = vpop.f32.mrf.mxu3 }
 0xbf0   : > { %v2680_v27 = vadd.f32 %v2679_v55, %v2615_v6  ;;  %v2704_v52 = vadd.f32 %v2703_v0, %v2616_v36 }
 0xbf2   : > { %v6582_v48 = vpack.c.bf16 %v2680_v27, %v2678_v54  ;;  %v6600_v49 = vpack.c.bf16 %v2704_v52, %v2702_v58 }
 0xc24   : > { %v2682_v45 = vpop.f32.mrf.mxu2  ;;  %v2706_v60 = vpop.f32.mrf.mxu3 }
 0xc25   : > { %v2683_v17 = vadd.f32 %v2682_v45, %v2615_v6  ;;  %v2707_v26 = vadd.f32 %v2706_v60, %v2616_v36 }
 0xc2c   : > { %v2684_v1 = vpop.f32.mrf.mxu2  ;;  %v2708_v21 = vpop.f32.mrf.mxu3 }
 0xc2d   : > { %v2685_v29 = vadd.f32 %v2684_v1, %v2615_v6  ;;  %v2709_v11 = vadd.f32 %v2708_v21, %v2616_v36 }
 0xc2f   : > { %v6578_v19 = vpack.c.bf16 %v2685_v29, %v2683_v17  ;;  %v6597_v33 = vpack.c.bf16 %v2709_v11, %v2707_v26 }
 0xc31   : > { %2883 = vrot.lane.b32.xlu0 %v6578_v19, %s5294_s24 }
 0xc34   : > { %v2687_v14 = vpop.f32.mrf.mxu2  ;;  %v2711_v31 = vpop.f32.mrf.mxu3 }
 0xc35   : > { %v2688_v47 = vadd.f32 %v2687_v14, %v2615_v6  ;;  %v2712_v42 = vadd.f32 %v2711_v31, %v2616_v36 }
 0xc39   : > { %2881 = vrot.lane.b32.xlu0 %v6582_v48, %s5294_s24 }
 0xc3c   : > { %v2689_v63 = vpop.f32.mrf.mxu2  ;;  %v2713_v59 = vpop.f32.mrf.mxu3 }
 0xc3d   : > { %v2690_v40 = vadd.f32 %v2689_v63, %v2615_v6  ;;  %v2714_v53 = vadd.f32 %v2713_v59, %v2616_v36 }
 0xc3f   : > { %v6586_v24 = vpack.c.bf16 %v2690_v40, %v2688_v47  ;;  %v6588_v57 = vpack.c.bf16 %v2714_v53, %v2712_v42 }
 0xc41   : > { %2856 = vmatpush.bf16.msrb.mxu1 %v6588_v57  ;;  %2729 = vrot.lane.b32.xlu1 %v6586_v24, %s7372_s21 }
 0xc42   : > { %2885 = vrot.lane.b32.xlu2 %v6586_v24, %s5294_s24  ;;  %2725 = vrot.lane.b32.xlu0 %v6582_v48, %s7372_s21 }
 0xc45   : > { %2857 = vmatpush.bf16.msrb.mxu1 %v6597_v33 }
 0xc49   : > { %2858 = vmatpush.bf16.msrb.mxu1 %v6600_v49  ;;  %2875 = vrot.lane.b32.xlu1 %v6582_v48, %s7373_s25 }
 0xc4a   : > { %2727 = vrot.lane.b32.xlu2 %v6578_v19, %s7372_s21  ;;  %2879 = vrot.lane.b32.xlu0 %v6586_v24, %s7373_s25 }
 0xc51   : > { %3218 = vrot.lane.b32.xlu1 %v6586_v24, %s7374_s1 }
 0xc52   : > { %2877 = vrot.lane.b32.xlu2 %v6578_v19, %s7373_s25  ;;  %3214 = vrot.lane.b32.xlu0 %v6582_v48, %s7374_s1 }
 0xc59   : > { %3053 = vrot.lane.b32.xlu1 %v6586_v24, %s7375_s19 }
 0xc5a   : > { %3216 = vrot.lane.b32.xlu2 %v6578_v19, %s7374_s1  ;;  %3049 = vrot.lane.b32.xlu0 %v6582_v48, %s7375_s19 }
 0xc61   : > { %3208 = vrot.lane.b32.xlu1 %v6582_v48, %s7376_s27 }
 0xc62   : > { %3051 = vrot.lane.b32.xlu2 %v6578_v19, %s7375_s19  ;;  %3045 = vrot.lane.b32.xlu0 %v6578_v19, %s7377_s26 }
 0xc69   : > { %3210 = vrot.lane.b32.xlu1 %v6578_v19, %s7376_s27 }
 0xc6a   : > { %3043 = vrot.lane.b32.xlu2 %v6582_v48, %s7377_s26  ;;  %3001 = vrot.lane.b32.xlu0 %v6600_v49, %s7373_s25 }
 0xc71   : > { %3047 = vrot.lane.b32.xlu1 %v6586_v24, %s7377_s26 }
 0xc72   : > { %3212 = vrot.lane.b32.xlu2 %v6586_v24, %s7376_s27  ;;  %3335 = vrot.lane.b32.xlu0 %v6588_v57, %s7376_s27 }
 0xc79   : > { %3003 = vrot.lane.b32.xlu1 %v6597_v33, %s7373_s25 }
 0xc7a   : > { %3005 = vrot.lane.b32.xlu2 %v6588_v57, %s7373_s25  ;;  %s629_s25 = sand.u32 1, %s5280_s28  }
 0xc9c   : > { %v2886_v51 = vpop.permute.xlu2 %2885 }
 0xc9d   : > { %v2903_v16 = vsel %vm1067_vm5, %v2886_v51, 0 }
 0xc9e   : > { %2910 = vmatpush.bf16.xpose.msrb.mxu2 %v2903_v16 }
 0xca3   : > { %v2884_v15 = vpop.permute.xlu0 %2883 }
 0xca4   : > { %v2728_v8 = vpop.permute.xlu2 %2727  ;;  %v2900_v23 = vsel %vm1067_vm5, %v2884_v15, 0 }
 0xca5   : > { %v2744_v32 = vsel %vm1067_vm5, %v2728_v8, 0 }
 0xca6   : > { %2911 = vmatpush.bf16.xpose.msrb.mxu2 %v2900_v23 }
 0xcab   : > { %v2882_v10 = vpop.permute.xlu0 %2881 }
 0xcac   : > { %v2878_v37 = vpop.permute.xlu2 %2877  ;;  %v2897_v38 = vsel %vm1067_vm5, %v2882_v10, 0 }
 0xcae   : > { %2912 = vmatpush.bf16.xpose.msrb.mxu2 %v2897_v38 }
 0xcb3   : > { %v2730_v25 = vpop.permute.xlu1 %2729 }
 0xcb4   : > { %v2747_v61 = vsel %vm1067_vm5, %v2730_v25, 0  ;;  %v3217_v30 = vpop.permute.xlu2 %3216  ;;  %v2726_v34 = vpop.permute.xlu0 %2725 }
 0xcb5   : > { %2754 = vmatpush.bf16.xpose.msra.mxu0 %v2747_v61  ;;  %v2741_v3 = vsel %vm1067_vm5, %v2726_v34, 0  ;;  %v3233_v45 = vsel %vm1067_vm5, %v3217_v30, 0 }
 0xcbb   : > { %v2876_v5 = vpop.permute.xlu1 %2875 }
 0xcbc   : > { %v3052_v13 = vpop.permute.xlu2 %3051  ;;  %4495 = vmatmul.msk.bf16.vlgmr.msrb.gmra.mxu2 %vm1067_vm5, %v2876_v5  ;;  %v2880_v35 = vpop.permute.xlu0 %2879 }
 0xcbd   : > { %2755 = vmatpush.bf16.xpose.msra.mxu0 %v2744_v32  ;;  %v3068_v21 = vsel %vm1067_vm5, %v3052_v13, 0 }
 0xcc3   : > { %v3219_v22 = vpop.permute.xlu1 %3218 }
 0xcc4   : > { %v3236_v39 = vsel %vm1067_vm5, %v3219_v22, 0  ;;  %v3044_v7 = vpop.permute.xlu2 %3043  ;;  %v3215_v55 = vpop.permute.xlu0 %3214 }
 0xcc5   : > { %2756 = vmatpush.bf16.xpose.msra.mxu0 %v2741_v3  ;;  %3243 = vmatpush.bf16.xpose.msra.mxu2 %v3236_v39  ;;  %v3230_v29 = vsel %vm1067_vm5, %v3215_v55, 0 }
 0xccb   : > { %v3054_v0 = vpop.permute.xlu1 %3053 }
 0xccc   : > { %v3071_v60 = vsel %vm1067_vm5, %v3054_v0, 0  ;;  %v3213_v20 = vpop.permute.xlu2 %3212  ;;  %4489 = vmatmul.msk.bf16.vlgmr.msra.gmra.mxu0 %vm1067_vm5, %v6582_v48  ;;  %4496 = vmatmul.msk.bf16.gmra.mxu2 %vm1067_vm5, %v2878_v37  ;;  %v3050_v6 = vpop.permute.xlu0 %3049 }
 0xccd   : > { %3078 = vmatpush.bf16.xpose.msrb.mxu0 %v3071_v60  ;;  %3244 = vmatpush.bf16.xpose.msra.mxu2 %v3233_v45  ;;  %v3065_v14 = vsel %vm1067_vm5, %v3050_v6, 0 }
 0xcd3   : > { %v3209_v1 = vpop.permute.xlu1 %3208 }
 0xcd4   : > { %v3006_v17 = vpop.permute.xlu2 %3005  ;;  %v3046_v31 = vpop.permute.xlu0 %3045 }
 0xcd5   : > { %3024 = vmatpush.bf16.msrb.mxu3 %v3006_v17  ;;  %3079 = vmatpush.bf16.xpose.msrb.mxu0 %v3068_v21 }
 0xcd6   : > { %3245 = vmatpush.bf16.xpose.msra.mxu2 %v3230_v29 }
 0xcdb   : > { %v3211_v27 = vpop.permute.xlu1 %3210 }
 0xcdc   : > { %4490 = vmatmul.msk.bf16.gmra.mxu0 %vm1067_vm5, %v6578_v19  ;;  %4497 = vmatmul.msk.bf16.gmra.mxu2 %vm1067_vm5, %v2880_v35  ;;  %v3002_v48 = vpop.permute.xlu0 %3001 }
 0xcdd   : > { %3080 = vmatpush.bf16.xpose.msrb.mxu0 %v3065_v14 }
 0xce3   : > { %v3048_v54 = vpop.permute.xlu1 %3047 }
 0xce4   : > { %v3336_v63 = vpop.permute.xlu0 %3335 }
 0xceb   : > { %v3004_v36 = vpop.permute.xlu1 %3003 }
 0xcec   : > { %4491 = vmatmul.msk.bf16.gmra.mxu0 %vm1067_vm5, %v6586_v24  ;;  %3025 = vmatpush.bf16.msrb.mxu3 %v3004_v36 }
 0xced   : > { %4507 = vmatmul.msk.bf16.vlgmr.msra.gmra.mxu2 %vm1067_vm5, %v3209_v1 }
 0xcf0   : > { %3026 = vmatpush.bf16.msrb.mxu3 %v3002_v48 }
 0xcf4   : > { %3354 = vmatpush.bf16.msra.mxu3 %v3336_v63 }
 0xcfc   : > { %4501 = vmatmul.msk.bf16.vlgmr.msrb.gmra.mxu0 %vm1067_vm5, %v3044_v7 }
 0xcfd   : > { %4508 = vmatmul.msk.bf16.gmra.mxu2 %vm1067_vm5, %v3211_v27 }
 0xd0c   : > { %4502 = vmatmul.msk.bf16.gmra.mxu0 %vm1067_vm5, %v3046_v31 }
 0xd0d   : > { %4509 = vmatmul.msk.bf16.gmra.mxu2 %vm1067_vm5, %v3213_v20 }
 0xd1c   : > { %4503 = vmatmul.msk.bf16.gmra.mxu0 %vm1067_vm5, %v3048_v54 }
 0xd3f   : > { %v2914_v19 = vpop.f32.mrf.mxu2 }
 0xd40   : > { %v6671_v59 = vadd.f32 %v2914_v19, %v5847_v12 }
 0xd42   : > { %v2929_v47 = vsel %vm1110_vm14, %v6671_v59, -inf }
 0xd43   : > { %2930 = vmax.xlane.f32.xlu0 %v2929_v47 }
 0xd47   : > { %v2916_v42 = vpop.f32.mrf.mxu2 }
 0xd48   : > { %v6676_v40 = vadd.f32 %v2916_v42, %v5829_v9 }
 0xd49   : > { %v2758_v53 = vpop.f32.mrf.mxu0 }
 0xd4a   : > { %v6679_v11 = vadd.f32 %v2758_v53, %v5847_v12  ;;  %v2932_v24 = vsel %vm1110_vm14, %v6676_v40, -inf }
 0xd4b   : > { %2933 = vmax.xlane.f32.xlu2 %v2932_v24 }
 0xd4c   : > { %v2773_v26 = vsel %vm1110_vm14, %v6679_v11, -inf }
 0xd4d   : > { %2774 = vmax.xlane.f32.xlu1 %v2773_v26 }
 0xd4f   : > { %v2919_v52 = vpop.f32.mrf.mxu2 }
 0xd50   : > { %v6686_v58 = vadd.f32 %v2919_v52, %v5730_v41 }
 0xd51   : > { %v2760_v51 = vpop.f32.mrf.mxu0 }
 0xd52   : > { %v6689_v16 = vadd.f32 %v2760_v51, %v5829_v9  ;;  %v2935_v15 = vsel %vm1110_vm14, %v6686_v58, -inf }
 0xd53   : > { %2936 = vmax.xlane.f32.xlu2 %v2935_v15 }
 0xd54   : > { %v2776_v8 = vsel %vm1110_vm14, %v6689_v16, -inf }
 0xd55   : > { %2777 = vmax.xlane.f32.xlu0 %v2776_v8 }
 0xd57   : > { %v2921_v23 = vpop.f32.mrf.mxu2 }
 0xd58   : > { %v6696_v10 = vadd.f32 %v2921_v23, %v5741_v43 }
 0xd59   : > { %v2763_v37 = vpop.f32.mrf.mxu0 }
 0xd5a   : > { %v6699_v38 = vadd.f32 %v2763_v37, %v5730_v41  ;;  %v2938_v25 = vsel %vm1110_vm14, %v6696_v10, -inf }
 0xd5b   : > { %2939 = vmax.xlane.f32.xlu1 %v2938_v25 }
 0xd5c   : > { %v2779_v61 = vsel %vm1110_vm14, %v6699_v38, -inf }
 0xd5d   : > { %2780 = vmax.xlane.f32.xlu0 %v2779_v61 }
 0xd5f   : > { %v2924_v30 = vpop.f32.mrf.mxu2 }
 0xd60   : > { %v6706_v34 = vadd.f32 %v2924_v30, %v5750_v50 }
 0xd61   : > { %v2765_v5 = vpop.f32.mrf.mxu0 }
 0xd62   : > { %v6709_v32 = vadd.f32 %v2765_v5, %v5741_v43  ;;  %v2941_v13 = vsel %vm1110_vm14, %v6706_v34, -inf }
 0xd63   : > { %2942 = vmax.xlane.f32.xlu1 %v2941_v13 }
 0xd64   : > { %v2782_v35 = vsel %vm1110_vm14, %v6709_v32, -inf }
 0xd65   : > { %2783 = vmax.xlane.f32.xlu2 %v2782_v35 }
 0xd67   : > { %v2926_v22 = vpop.f32.mrf.mxu2 }
 0xd68   : > { %v6716_v3 = vadd.f32 %v2926_v22, %v5757_v56 }
 0xd69   : > { %v2768_v39 = vpop.f32.mrf.mxu0 }
 0xd6a   : > { %v6719_v7 = vadd.f32 %v2768_v39, %v5750_v50  ;;  %v2944_v55 = vsel %vm1110_vm14, %v6716_v3, -inf }
 0xd6b   : > { %2945 = vmax.xlane.f32.xlu0 %v2944_v55 }
 0xd6c   : > { %v2785_v0 = vsel %vm1110_vm14, %v6719_v7, -inf }
 0xd6d   : > { %2786 = vmax.xlane.f32.xlu2 %v2785_v0 }
 0xd70   : > { %v3247_v45 = vpop.f32.mrf.mxu2 }
 0xd71   : > { %v6726_v60 = vadd.f32 %v3247_v45, %v5847_v12  ;;  %v2770_v20 = vpop.f32.mrf.mxu0 }
 0xd72   : > { %v6729_v6 = vadd.f32 %v2770_v20, %v5757_v56 }
 0xd73   : > { %v3262_v1 = vsel %vm1110_vm14, %v6726_v60, -inf }
 0xd74   : > { %3263 = vmax.xlane.f32.xlu0 %v3262_v1  ;;  %v2788_v21 = vsel %vm1110_vm14, %v6729_v6, -inf }
 0xd75   : > { %2789 = vmax.xlane.f32.xlu1 %v2788_v21 }
 0xd78   : > { %v3249_v17 = vpop.f32.mrf.mxu2 }
 0xd79   : > { %v6736_v29 = vadd.f32 %v3249_v17, %v5829_v9  ;;  %v3082_v27 = vpop.f32.mrf.mxu0 }
 0xd7a   : > { %v6739_v14 = vadd.f32 %v3082_v27, %v5847_v12 }
 0xd7b   : > { %v3265_v31 = vsel %vm1110_vm14, %v6736_v29, -inf }
 0xd7c   : > { %3266 = vmax.xlane.f32.xlu2 %v3265_v31  ;;  %v3097_v54 = vsel %vm1110_vm14, %v6739_v14, -inf }
 0xd7d   : > { %3098 = vmax.xlane.f32.xlu1 %v3097_v54 }
 0xd80   : > { %v3252_v48 = vpop.f32.mrf.mxu2 }
 0xd81   : > { %v3084_v36 = vpop.f32.mrf.mxu0 }
 0xd82   : > { %v6746_v63 = vadd.f32 %v3084_v36, %v5829_v9  ;;  %v6761_v9 = vadd.f32 %v3252_v48, %v5730_v41 }
 0xd84   : > { %v3100_v19 = vsel %vm1110_vm14, %v6746_v63, -inf  ;;  %v3268_v15 = vsel %vm1110_vm14, %v6761_v9, -inf }
 0xd85   : > { %3101 = vmax.xlane.f32.xlu0 %v3100_v19 }
 0xd88   : > { %v3254_v47 = vpop.f32.mrf.mxu2 }
 0xd89   : > { %v6751_v12 = vadd.f32 %v3254_v47, %v5741_v43  ;;  %v3087_v42 = vpop.f32.mrf.mxu0 }
 0xd8a   : > { %v6754_v53 = vadd.f32 %v3087_v42, %v5730_v41 }
 0xd8b   : > { %v3271_v24 = vsel %vm1110_vm14, %v6751_v12, -inf }
 0xd8c   : > { %v3103_v26 = vsel %vm1110_vm14, %v6754_v53, -inf }
 0xd8d   : > { %3272 = vmax.xlane.f32.xlu0 %v3271_v24  ;;  %3104 = vmax.xlane.f32.xlu2 %v3103_v26 }
 0xd90   : > { %v3257_v51 = vpop.f32.mrf.mxu2 }
 0xd91   : > { %v3089_v52 = vpop.f32.mrf.mxu0  ;;  %v6779_v5 = vadd.f32 %v3257_v51, %v5750_v50 }
 0xd92   : > { %v6766_v8 = vadd.f32 %v3089_v52, %v5741_v43 }
 0xd93   : > { %v3274_v39 = vsel %vm1110_vm14, %v6779_v5, -inf }
 0xd94   : > { %v3106_v41 = vsel %vm1110_vm14, %v6766_v8, -inf }
 0xd95   : > { %3269 = vmax.xlane.f32.xlu2 %v3268_v15 }
 0xd98   : > { %v3259_v61 = vpop.f32.mrf.mxu2 }
 0xd99   : > { %v3092_v23 = vpop.f32.mrf.mxu0  ;;  %v6776_v30 = vadd.f32 %v3259_v61, %v5757_v56 }
 0xd9a   : > { %v6769_v37 = vadd.f32 %v3092_v23, %v5750_v50 }
 0xd9b   : > { %v3277_v22 = vsel %vm1110_vm14, %v6776_v30, -inf }
 0xd9c   : > { %v3109_v25 = vsel %vm1110_vm14, %v6769_v37, -inf }
 0xd9d   : > { %3110 = vmax.xlane.f32.xlu0 %v3109_v25  ;;  %3107 = vmax.xlane.f32.xlu2 %v3106_v41 }
 0xda1   : > { %v3094_v43 = vpop.f32.mrf.mxu0 }
 0xda2   : > { %v6782_v13 = vadd.f32 %v3094_v43, %v5757_v56 }
 0xda4   : > { %v3112_v35 = vsel %vm1110_vm14, %v6782_v13, -inf }
 0xda5   : > { %3113 = vmax.xlane.f32.xlu1 %v3112_v35  ;;  %3278 = vmax.xlane.f32.xlu0 %v3277_v22 }
 0xda6   : > { %3275 = vmax.xlane.f32.xlu2 %v3274_v39 }
 0xdb6   : > { %v2931_v0 = vpop.xlane.xlu0 %2930 }
 0xdb7   : > { %v2947_v56 = vsub.f32 %v6671_v59, %v2931_v0 }
 0xdb9   : > { %v2953_v1 = vmul.f32 1.442695, %v2947_v56 }
 0xdbe   : > { %v2934_v55 = vpop.xlane.xlu2 %2933 }
 0xdbf   : > { %v2948_v27 = vsub.f32 %v6676_v40, %v2934_v55 }
 0xdc0   : > { %v2775_v50 = vpop.xlane.xlu1 %2774 }
 0xdc1   : > { %v2791_v45 = vsub.f32 %v6679_v11, %v2775_v50  ;;  %v2955_v19 = vmul.f32 1.442695, %v2948_v27 }
 0xdc3   : > { %v2797_v20 = vmul.f32 1.442695, %v2791_v45 }
 0xdc5   : > { %5088 = vpow2.f32 %v2797_v20 }
 0xdc6   : > { %v2937_v21 = vpop.xlane.xlu2 %2936  ;;  %5090 = vpow2.f32 %v2953_v1 }
 0xdc7   : > { %v2949_v54 = vsub.f32 %v6686_v58, %v2937_v21 }
 0xdc8   : > { %v2778_v17 = vpop.xlane.xlu0 %2777 }
 0xdc9   : > { %v2792_v31 = vsub.f32 %v6689_v16, %v2778_v17  ;;  %v2957_v59 = vmul.f32 1.442695, %v2949_v54 }
 0xdcb   : > { %v6795_v48 = vpop.eup %5088  ;;  %v2799_v36 = vmul.f32 1.442695, %v2792_v31 }
 0xdcc   : > { %v2809_v11 = vsel %vm1110_vm14, %v6795_v48, 0.0  ;;  %v6800_v40 = vpop.eup %5090 }
 0xdcd   : > { %5092 = vpow2.f32 %v2799_v36  ;;  %2810 = vadd.xlane.f32.xlu1 %v2809_v11  ;;  %v2965_v52 = vsel %vm1110_vm14, %v6800_v40, 0.0 }
 0xdce   : > { %v2940_v47 = vpop.xlane.xlu1 %2939  ;;  %5094 = vpow2.f32 %v2955_v19 }
 0xdcf   : > { %v2950_v42 = vsub.f32 %v6696_v10, %v2940_v47  ;;  %5096 = vpow2.f32 %v2957_v59 }
 0xdd0   : > { %v2781_v24 = vpop.xlane.xlu0 %2780 }
 0xdd1   : > { %v2959_v16 = vmul.f32 1.442695, %v2950_v42  ;;  %v2793_v26 = vsub.f32 %v6699_v38, %v2781_v24 }
 0xdd3   : > { %v6802_v58 = vpop.eup %5092  ;;  %5098 = vpow2.f32 %v2959_v16  ;;  %v2801_v15 = vmul.f32 1.442695, %v2793_v26 }
 0xdd4   : > { %v2812_v51 = vsel %vm1110_vm14, %v6802_v58, 0.0  ;;  %v6809_v10 = vpop.eup %5094 }
 0xdd5   : > { %2966 = vadd.xlane.f32.xlu1 %v2965_v52  ;;  %2813 = vadd.xlane.f32.xlu0 %v2812_v51  ;;  %v6811_v23 = vpop.eup %5096  ;;  %5100 = vpow2.f32 %v2801_v15  ;;  %v2968_v55 = vsel %vm1110_vm14, %v6809_v10, 0.0 }
 0xdd6   : > { %v2943_v25 = vpop.xlane.xlu1 %2942  ;;  %v2971_v39 = vsel %vm1110_vm14, %v6811_v23, 0.0 }
 0xdd7   : > { %v2951_v35 = vsub.f32 %v6706_v34, %v2943_v25 }
 0xdd8   : > { %v2784_v41 = vpop.xlane.xlu2 %2783 }
 0xdd9   : > { %v6813_v61 = vpop.eup %5098  ;;  %v2794_v43 = vsub.f32 %v6709_v32, %v2784_v41  ;;  %v2961_v0 = vmul.f32 1.442695, %v2951_v35 }
 0xdda   : > { %v2974_v38 = vsel %vm1110_vm14, %v6813_v61, 0.0 }
 0xddb   : > { %v2803_v22 = vmul.f32 1.442695, %v2794_v43  ;;  %2975 = vadd.xlane.f32.xlu2 %v2974_v38  ;;  %v6823_v45 = vpop.eup %5100 }
 0xddc   : > { %v2815_v17 = vsel %vm1110_vm14, %v6823_v45, 0.0 }
 0xddd   : > { %5102 = vpow2.f32 %v2803_v22  ;;  %2972 = vadd.xlane.f32.xlu1 %v2971_v39  ;;  %2969 = vadd.xlane.f32.xlu0 %v2968_v55 }
 0xdde   : > { %v2946_v50 = vpop.xlane.xlu0 %2945  ;;  %5104 = vpow2.f32 %v2961_v0 }
 0xddf   : > { %v2952_v34 = vsub.f32 %v6716_v3, %v2946_v50 }
 0xde0   : > { %v2787_v32 = vpop.xlane.xlu2 %2786 }
 0xde1   : > { %v2795_v56 = vsub.f32 %v6719_v7, %v2787_v32  ;;  %v2963_v27 = vmul.f32 1.442695, %v2952_v34 }
 0xde3   : > { %v6826_v20 = vpop.eup %5102  ;;  %v2805_v1 = vmul.f32 1.442695, %v2795_v56 }
 0xde4   : > { %v2818_v21 = vsel %vm1110_vm14, %v6826_v20, 0.0  ;;  %v6833_v54 = vpop.eup %5104 }
 0xde5   : > { %5106 = vpow2.f32 %v2805_v1  ;;  %2819 = vadd.xlane.f32.xlu1 %v2818_v21  ;;  %2816 = vadd.xlane.f32.xlu0 %v2815_v17  ;;  %v2977_v19 = vsel %vm1110_vm14, %v6833_v54, 0.0 }
 0xde6   : > { %5108 = vpow2.f32 %v2963_v27 }
 0xde7   : > { %v3264_v59 = vpop.xlane.xlu0 %3263 }
 0xde8   : > { %v2790_v31 = vpop.xlane.xlu1 %2789  ;;  %v3280_v16 = vsub.f32 %v6726_v60, %v3264_v59 }
 0xde9   : > { %v2796_v7 = vsub.f32 %v6729_v6, %v2790_v31 }
 0xdea   : > { %v3286_v15 = vmul.f32 1.442695, %v3280_v16 }
 0xdeb   : > { %v6836_v36 = vpop.eup %5106  ;;  %v2807_v3 = vmul.f32 1.442695, %v2796_v7 }
 0xdec   : > { %v2821_v11 = vsel %vm1110_vm14, %v6836_v36, 0.0  ;;  %v6842_v42 = vpop.eup %5108 }
 0xded   : > { %5110 = vpow2.f32 %v2807_v3  ;;  %2822 = vadd.xlane.f32.xlu2 %v2821_v11  ;;  %2978 = vadd.xlane.f32.xlu1 %v2977_v19  ;;  %v2980_v51 = vsel %vm1110_vm14, %v6842_v42, 0.0 }
 0xdef   : > { %v3267_v25 = vpop.xlane.xlu2 %3266 }
 0xdf0   : > { %v3099_v47 = vpop.xlane.xlu1 %3098  ;;  %v3281_v60 = vsub.f32 %v6736_v29, %v3267_v25 }
 0xdf1   : > { %v3115_v24 = vsub.f32 %v6739_v14, %v3099_v47 }
 0xdf2   : > { %v3288_v22 = vmul.f32 1.442695, %v3281_v60 }
 0xdf3   : > { %v6845_v6 = vpop.eup %5110  ;;  %v3121_v26 = vmul.f32 1.442695, %v3115_v24 }
 0xdf4   : > { %v2824_v52 = vsel %vm1110_vm14, %v6845_v6, 0.0 }
 0xdf5   : > { %5112 = vpow2.f32 %v3121_v26  ;;  %2825 = vadd.xlane.f32.xlu0 %v2824_v52  ;;  %2981 = vadd.xlane.f32.xlu2 %v2980_v51 }
 0xdf6   : > { %5114 = vpow2.f32 %v3286_v15 }
 0xdf8   : > { %v3102_v41 = vpop.xlane.xlu0 %3101 }
 0xdf9   : > { %v3116_v43 = vsub.f32 %v6746_v63, %v3102_v41 }
 0xdfb   : > { %v6853_v14 = vpop.eup %5112  ;;  %v3123_v38 = vmul.f32 1.442695, %v3116_v43 }
 0xdfc   : > { %v3133_v35 = vsel %vm1110_vm14, %v6853_v14, 0.0  ;;  %v6858_v39 = vpop.eup %5114 }
 0xdfd   : > { %5116 = vpow2.f32 %v3123_v38  ;;  %3134 = vadd.xlane.f32.xlu1 %v3133_v35  ;;  %v3298_v63 = vsel %vm1110_vm14, %v6858_v39, 0.0 }
 0xdfe   : > { %5118 = vpow2.f32 %v3288_v22 }
 0xe00   : > { %v3105_v32 = vpop.xlane.xlu2 %3104  ;;  %v3273_v34 = vpop.xlane.xlu0 %3272 }
 0xe01   : > { %v3117_v1 = vsub.f32 %v6754_v53, %v3105_v32 }
 0xe03   : > { %v6860_v55 = vpop.eup %5116  ;;  %v3125_v17 = vmul.f32 1.442695, %v3117_v1 }
 0xe04   : > { %v3136_v0 = vsel %vm1110_vm14, %v6860_v55, 0.0  ;;  %v6866_v29 = vpop.eup %5118 }
 0xe05   : > { %3299 = vadd.xlane.f32.xlu1 %v3298_v63  ;;  %3137 = vadd.xlane.f32.xlu2 %v3136_v0  ;;  %v3301_v50 = vsel %vm1110_vm14, %v6866_v29, 0.0  ;;  %5120 = vpow2.f32 %v3125_v17 }
 0xe08   : > { %v3270_v56 = vpop.xlane.xlu2 %3269 }
 0xe09   : > { %3331 = vrot.lane.b32.xlu0 %v6600_v49, %s7376_s27  ;;  %v3282_v27 = vsub.f32 %v6761_v9, %v3270_v56 }
 0xe0b   : > { %v3290_v3 = vmul.f32 1.442695, %v3282_v27  ;;  %v6885_v59 = vpop.eup %5120 }
 0xe0c   : > { %v3139_v16 = vsel %vm1110_vm14, %v6885_v59, 0.0 }
 0xe0d   : > { %3302 = vadd.xlane.f32.xlu2 %v3301_v50  ;;  %5122 = vpow2.f32 %v3290_v3 }
 0xe10   : > { %v3108_v21 = vpop.xlane.xlu2 %3107  ;;  %v3111_v31 = vpop.xlane.xlu0 %3110 }
 0xe11   : > { %3168 = vrot.lane.b32.xlu0 %v6597_v33, %s7377_s26 }
 0xe18   : > { %v3114_v7 = vpop.xlane.xlu1 %3113  ;;  %v3279_v47 = vpop.xlane.xlu0 %3278 }
 0xe19   : > { %3166 = vrot.lane.b32.xlu0 %v6600_v49, %s7377_s26  ;;  %v3119_v49 = vsub.f32 %v6769_v37, %v3111_v31  ;;  %v3276_v11 = vpop.xlane.xlu2 %3275  ;;  %v6889_v37 = vpop.eup %5122  ;;  %v3120_v26 = vsub.f32 %v6782_v13, %v3114_v7  ;;  %v3285_v60 = vsub.f32 %v6776_v30, %v3279_v47 }
 0xe1a   : > { %v3304_v52 = vsel %vm1110_vm14, %v6889_v37, 0.0 }
 0xe1b   : > { %v3129_v19 = vmul.f32 1.442695, %v3119_v49  ;;  %v3131_v43 = vmul.f32 1.442695, %v3120_v26  ;;  %v3296_v0 = vmul.f32 1.442695, %v3285_v60 }
 0xe1d   : > { %5124 = vpow2.f32 %v3129_v19 }
 0xe1e   : > { %3333 = vrot.lane.b32.xlu1 %v6597_v33, %s7376_s27  ;;  %v3283_v33 = vsub.f32 %v6751_v12, %v3273_v34  ;;  %v3118_v12 = vsub.f32 %v6766_v8, %v3108_v21 }
 0xe20   : > { %v3292_v53 = vmul.f32 1.442695, %v3283_v33  ;;  %v3127_v51 = vmul.f32 1.442695, %v3118_v12 }
 0xe22   : > { %5126 = vpow2.f32 %v3292_v53 }
 0xe25   : > { %3170 = vrot.lane.b32.xlu2 %v6588_v57, %s7377_s26  ;;  %v3284_v57 = vsub.f32 %v6779_v5, %v3276_v11  ;;  %v6893_v5 = vpop.eup %5124 }
 0xe26   : > { %v3145_v8 = vsel %vm1110_vm14, %v6893_v5, 0.0 }
 0xe27   : > { %v3294_v9 = vmul.f32 1.442695, %v3284_v57 }
 0xe28   : > { %v6897_v41 = vpop.eup %5126 }
 0xe29   : > { %5128 = vpow2.f32 %v3294_v9  ;;  %v3307_v38 = vsel %vm1110_vm14, %v6897_v41, 0.0 }
 0xe2f   : > { %v6901_v13 = vpop.eup %5128 }
 0xe30   : > { %v3310_v22 = vsel %vm1110_vm14, %v6901_v13, 0.0 }
 0xe40   : > { %v2811_v24 = vpop.xlane.xlu1 %2810 }
 0xe41   : > { %5130 = vrcp.f32 %v2811_v24 }
 0xe43   : > { %3140 = vadd.xlane.f32.xlu0 %v3139_v16 }
 0xe47   : > { %v5131_v35 = vpop.eup %5130 }
 0xe48   : > { %v2967_v15 = vpop.xlane.xlu1 %2966  ;;  %3305 = vadd.xlane.f32.xlu1 %v3304_v52  ;;  %v2814_v25 = vpop.xlane.xlu0 %2813  ;;  %v2833_v56 = vmul.f32 %v5131_v35, %v6795_v48 }
 0xe49   : > { %5132 = vrcp.f32 %v2814_v25 }
 0xe4a   : > { %5134 = vpow2.f32 %v3127_v51 }
 0xe4b   : > { %3146 = vadd.xlane.f32.xlu0 %v3145_v8  ;;  %5136 = vpow2.f32 %v3131_v43 }
 0xe4c   : > { %5138 = vrcp.f32 %v2967_v15 }
 0xe4e   : > { %3308 = vadd.xlane.f32.xlu2 %v3307_v38  ;;  %v2976_v3 = vpop.xlane.xlu2 %2975 }
 0xe4f   : > { %v5133_v63 = vpop.eup %5132 }
 0xe50   : > { %v2973_v50 = vpop.xlane.xlu1 %2972  ;;  %3311 = vadd.xlane.f32.xlu1 %v3310_v22  ;;  %v2970_v32 = vpop.xlane.xlu0 %2969  ;;  %v2834_v34 = vmul.f32 %v5133_v63, %v6802_v58 }
 0xe51   : > { %v6910_v30 = vpop.eup %5134  ;;  %5140 = vrcp.f32 %v2970_v32 }
 0xe52   : > { %v2839_v1 = vpack.c.bf16 %v2834_v34, %v2833_v56  ;;  %v6912_v21 = vpop.eup %5136  ;;  %5142 = vpow2.f32 %v3296_v0  ;;  %v3142_v17 = vsel %vm1110_vm14, %v6910_v30, 0.0 }
 0xe53   : > { %v5139_v27 = vpop.eup %5138  ;;  %v3148_v31 = vsel %vm1110_vm14, %v6912_v21, 0.0 }
 0xe54   : > { %4492 = vmatmul.msk.bf16.vlgmr.msrb.gmra.mxu1 %vm1110_vm14, %v2839_v1  ;;  %v2989_v49 = vmul.f32 %v5139_v27, %v6800_v40 }
 0xe56   : > { %3143 = vadd.xlane.f32.xlu2 %v3142_v17 }
 0xe57   : > { %v5141_v48 = vpop.eup %5140 }
 0xe58   : > { %v2820_v7 = vpop.xlane.xlu1 %2819  ;;  %3149 = vadd.xlane.f32.xlu1 %v3148_v31  ;;  %v2817_v58 = vpop.xlane.xlu0 %2816  ;;  %v2990_v11 = vmul.f32 %v5141_v48, %v6809_v10 }
 0xe59   : > { %5144 = vrcp.f32 %v2820_v7  ;;  %v6921_v33 = vpop.eup %5142 }
 0xe5a   : > { %5146 = vrcp.f32 %v2817_v58  ;;  %v2995_v19 = vpack.c.bf16 %v2990_v11, %v2989_v49  ;;  %v3313_v57 = vsel %vm1110_vm14, %v6921_v33, 0.0 }
 0xe5b   : > { %5148 = vrcp.f32 %v2973_v50 }
 0xe5c   : > { %4498 = vmatmul.msk.bf16.vlgmr.msrb.gmra.mxu3 %vm1110_vm14, %v2995_v19  ;;  %5150 = vrcp.f32 %v2976_v3 }
 0xe5e   : > { %3314 = vadd.xlane.f32.xlu2 %v3313_v57 }
 0xe5f   : > { %v5145_v53 = vpop.eup %5144 }
 0xe60   : > { %v5147_v47 = vpop.eup %5146  ;;  %v2836_v40 = vmul.f32 %v5145_v53, %v6826_v20  ;;  %v2823_v10 = vpop.xlane.xlu2 %2822 }
 0xe61   : > { %v2835_v24 = vmul.f32 %v5147_v47, %v6823_v45  ;;  %v5149_v16 = vpop.eup %5148  ;;  %5152 = vrcp.f32 %v2823_v10  ;;  %v2979_v43 = vpop.xlane.xlu1 %2978 }
 0xe62   : > { %v5151_v12 = vpop.eup %5150  ;;  %v2991_v26 = vmul.f32 %v5149_v16, %v6811_v23 }
 0xe63   : > { %v2840_v9 = vpack.c.bf16 %v2836_v40, %v2835_v24  ;;  %v2992_v51 = vmul.f32 %v5151_v12, %v6813_v61 }
 0xe65   : > { %4493 = vmatmul.msk.bf16.gmra.mxu1 %vm1110_vm14, %v2840_v9  ;;  %v2996_v25 = vpack.c.bf16 %v2992_v51, %v2991_v26 }
 0xe67   : > { %v5153_v20 = vpop.eup %5152 }
 0xe68   : > { %v2826_v52 = vpop.xlane.xlu0 %2825  ;;  %v2982_v15 = vpop.xlane.xlu2 %2981  ;;  %v2837_v8 = vmul.f32 %v5153_v20, %v6836_v36 }
 0xe69   : > { %5154 = vrcp.f32 %v2826_v52 }
 0xe6a   : > { %5156 = vrcp.f32 %v2982_v15 }
 0xe6b   : > { %5158 = vrcp.f32 %v2979_v43 }
 0xe6c   : > { %4499 = vmatmul.msk.bf16.gmra.mxu3 %vm1110_vm14, %v2996_v25 }
 0xe6f   : > { %v5155_v45 = vpop.eup %5154 }
 0xe70   : > { %v2838_v60 = vmul.f32 %v5155_v45, %v6845_v6  ;;  %v5157_v23 = vpop.eup %5156  ;;  %v3135_v32 = vpop.xlane.xlu1 %3134 }
 0xe71   : > { %v5159_v35 = vpop.eup %5158  ;;  %v2994_v61 = vmul.f32 %v5157_v23, %v6842_v42 }
 0xe72   : > { %v2841_v38 = vpack.c.bf16 %v2838_v60, %v2837_v8  ;;  %v2993_v63 = vmul.f32 %v5159_v35, %v6833_v54 }
 0xe74   : > { %v2997_v0 = vpack.c.bf16 %v2994_v61, %v2993_v63 }
 0xe75   : > { %4494 = vmatmul.msk.bf16.gmra.mxu1 %vm1110_vm14, %v2841_v38 }
 0xe78   : > { %v3138_v22 = vpop.xlane.xlu2 %3137  ;;  %v3300_v6 = vpop.xlane.xlu1 %3299 }
 0xe79   : > { %5160 = vrcp.f32 %v3138_v22 }
 0xe7a   : > { %5162 = vrcp.f32 %v3135_v32 }
 0xe7b   : > { %v3332_v50 = vpop.permute.xlu0 %3331 }
 0xe7c   : > { %4500 = vmatmul.msk.bf16.gmra.mxu3 %vm1110_vm14, %v2997_v0 }
 0xe7f   : > { %v5161_v1 = vpop.eup %5160 }
 0xe80   : > { %v3303_v56 = vpop.xlane.xlu2 %3302  ;;  %v5163_v17 = vpop.eup %5162  ;;  %v3158_v42 = vmul.f32 %v5161_v1, %v6860_v55 }
 0xe81   : > { %5164 = vrcp.f32 %v3303_v56  ;;  %v3157_v27 = vmul.f32 %v5163_v17, %v6853_v14 }
 0xe82   : > { %5166 = vrcp.f32 %v3300_v6 }
 0xe83   : > { %v3169_v36 = vpop.permute.xlu0 %3168  ;;  %v3163_v58 = vpack.c.bf16 %v3158_v42, %v3157_v27 }
 0xe87   : > { %v5165_v54 = vpop.eup %5164 }
 0xe88   : > { %v3171_v34 = vpop.permute.xlu2 %3170  ;;  %v5167_v7 = vpop.eup %5166  ;;  %v3323_v49 = vmul.f32 %v5165_v54, %v6866_v29 }
 0xe89   : > { %3189 = vmatpush.bf16.msra.mxu1 %v3171_v34  ;;  %v3322_v3 = vmul.f32 %v5167_v7, %v6858_v39 }
 0xe8b   : > { %v3167_v31 = vpop.permute.xlu0 %3166  ;;  %v3328_v11 = vpack.c.bf16 %v3323_v49, %v3322_v3 }
 0xe8d   : > { %3190 = vmatpush.bf16.msra.mxu1 %v3169_v36 }
 0xe90   : > { %v3334_v48 = vpop.permute.xlu1 %3333 }
 0xe91   : > { %3191 = vmatpush.bf16.msra.mxu1 %v3167_v31  ;;  %3355 = vmatpush.bf16.msra.mxu3 %v3334_v48 }
 0xe94   : > { %4504 = vmatmul.msk.bf16.vlgmr.msra.gmra.mxu1 %vm1110_vm14, %v3163_v58 }
 0xe95   : > { %3356 = vmatpush.bf16.msra.mxu3 %v3332_v50 }
 0xe98   : > { %4510 = vmatmul.msk.bf16.vlgmr.msra.gmra.mxu3 %vm1110_vm14, %v3328_v11 }
 0xeb6   : > { %v3141_v14 = vpop.xlane.xlu0 %3140 }
 0xebb   : > { %v3306_v55 = vpop.xlane.xlu1 %3305 }
 0xebc   : > { %5168 = vrcp.f32 %v3306_v55 }
 0xec1   : > { %v3309_v19 = vpop.xlane.xlu2 %3308 }
 0xec2   : > { %5170 = vrcp.f32 %v3309_v19  ;;  %v5169_v57 = vpop.eup %5168 }
 0xec3   : > { %5172 = vrcp.f32 %v3141_v14  ;;  %v3324_v47 = vmul.f32 %v5169_v57, %v6889_v37  ;;  %v3312_v40 = vpop.xlane.xlu1 %3311  ;;  %v3147_v37 = vpop.xlane.xlu0 %3146 }
 0xec8   : > { %v5171_v53 = vpop.eup %5170 }
 0xec9   : > { %v3325_v29 = vmul.f32 %v5171_v53, %v6897_v41  ;;  %v3144_v39 = vpop.xlane.xlu2 %3143  ;;  %v5173_v10 = vpop.eup %5172  ;;  %v4737_v53 = vld [vmem:[%s7320_s10 + $0x38] sm:$0xff] }
 0xeca   : > { %5174 = vrcp.f32 %v3144_v39  ;;  %v3159_v16 = vmul.f32 %v5173_v10, %v6885_v59  ;;  %3517 = vmatpush.bf16.msra.mxu0 %v4737_v53 }
 0xecb   : > { %v3329_v24 = vpack.c.bf16 %v3325_v29, %v3324_v47  ;;  %5176 = vrcp.f32 %v3312_v40  ;;  %v3150_v52 = vpop.xlane.xlu1 %3149  ;;  %v4736_v47 = vld [vmem:[%s7320_s10 + $0x30] sm:$0xff]  ;;  %v4735_v29 = vld [vmem:[%s7320_s10 + $0x28] sm:$0xff]  ;;  %v4734_v40 = vld [vmem:[%s7320_s10 + $0x20] sm:$0xff] }
 0xecd   : > { %4511 = vmatmul.msk.bf16.gmra.mxu3 %vm1110_vm14, %v3329_v24 }
 0xece   : > { %3518 = vmatpush.bf16.msra.mxu0 %v4736_v47 }
 0xed0   : > { %v5175_v9 = vpop.eup %5174 }
 0xed1   : > { %v3160_v12 = vmul.f32 %v5175_v9, %v6910_v30  ;;  %v3315_v26 = vpop.xlane.xlu2 %3314  ;;  %v5177_v41 = vpop.eup %5176 }
 0xed2   : > { %5178 = vrcp.f32 %v3315_v26  ;;  %v6950_v15 = vpop.f32.mrf.mxu1  ;;  %v3326_v43 = vmul.f32 %v5177_v41, %v6901_v13  ;;  %3519 = vmatpush.bf16.msra.mxu0 %v4735_v29 }
 0xed3   : > { %v3164_v51 = vpack.c.bf16 %v3160_v12, %v3159_v16  ;;  %5180 = vrcp.f32 %v3150_v52 }
 0xed4   : > { %5182 = vrcp.f32 %v3147_v37 }
 0xed5   : > { %4505 = vmatmul.msk.bf16.gmra.mxu1 %vm1110_vm14, %v3164_v51 }
 0xed6   : > { %3520 = vmatpush.bf16.msra.mxu0 %v4734_v40 }
 0xed8   : > { %v5179_v25 = vpop.eup %5178 }
 0xed9   : > { %v3327_v20 = vmul.f32 %v5179_v25, %v6921_v33  ;;  %v5181_v45 = vpop.eup %5180 }
 0xeda   : > { %v5183_v30 = vpop.eup %5182  ;;  %v3162_v8 = vmul.f32 %v5181_v45, %v6912_v21  ;;  %v2862_v23 = vpop.f32.mrf.mxu1 }
 0xedb   : > { %v3330_v59 = vpack.c.bf16 %v3327_v20, %v3326_v43  ;;  %v3161_v38 = vmul.f32 %v5183_v30, %v6893_v5 }
 0xedd   : > { %4512 = vmatmul.msk.bf16.gmra.mxu3 %vm1110_vm14, %v3330_v59  ;;  %v3165_v35 = vpack.c.bf16 %v3162_v8, %v3161_v38 }
 0xedf   : > { %v3028_v60 = vpop.f32.mrf.mxu3 }
 0xee2   : > { %v6958_v63 = vpop.f32.mrf.mxu1 }
 0xee5   : > { %4506 = vmatmul.msk.bf16.gmra.mxu1 %vm1110_vm14, %v3165_v35 }
 0xee7   : > { %v3030_v61 = vpop.f32.mrf.mxu3 }
 0xee8   : > { %v4871_v22 = vpack.i.bf16 %v3030_v61, %v3028_v60 }
 0xeea   : > { %4872 = vrot.lane.b32.xlu2 %v4871_v22, %s7374_s1  ;;  %v6961_v13 = vpop.f32.mrf.mxu1 }
 0xeef   : > { %v3033_v33 = vpop.f32.mrf.mxu3 }
 0xef2   : > { %v6963_v0 = vpop.f32.mrf.mxu1 }
 0xef7   : > { %v3035_v50 = vpop.f32.mrf.mxu3 }
 0xef8   : > { %v4886_v1 = vpack.i.bf16 %v3035_v50, %v3033_v33 }
 0xefa   : > { %v6965_v21 = vpop.f32.mrf.mxu1 }
 0xeff   : > { %v3038_v32 = vpop.f32.mrf.mxu3 }
 0xf07   : > { %v3040_v56 = vpop.f32.mrf.mxu3 }
 0xf08   : > { %v4901_v54 = vpack.i.bf16 %v3040_v56, %v3038_v32 }
 0xf11   : > { %v3193_v5 = vpop.f32.mrf.mxu1 }
 0xf19   : > { %v3195_v36 = vpop.f32.mrf.mxu1 }
 0xf1a   : > { %v4876_v6 = vpack.i.bf16 %v3195_v36, %v3193_v5 }
 0xf1b   : > { %v3358_v34 = vpop.f32.mrf.mxu3 }
 0xf1c   : > { %4877 = vrot.lane.b32.xlu0 %v4876_v6, %s7375_s19 }
 0xf23   : > { %v3360_v17 = vpop.f32.mrf.mxu3 }
 0xf24   : > { %v4881_v42 = vpack.i.bf16 %v3360_v17, %v3358_v34  ;;  %4887 = vrot.lane.b32.xlu0 %v4886_v1, %s7374_s1 }
 0xf26   : > { %4882 = vrot.lane.b32.xlu1 %v4881_v42, %s5294_s24 }
 0xf2c   : > { %4902 = vrot.lane.b32.xlu0 %v4901_v54, %s7374_s1  ;;  %s4769_s1 = smul.u32 48, %s629_s25 }
 0xf2e   : > { %s7257_s27 = scalar_lea.vmem [#allocation2], %s4769_s1 }
 0xf2f   : > { %s4134_s29 = sshll.u32 %s7257_s27, 4  ;;  %s4135_s29 = int_to_ptr.vmem [resolvable:$true] %s4134_s29 }
 0xf44   : > { %v4873_v39 = vpop.permute.xlu2 %4872 }
 0xf45   : > { %v4875_v10 = vunpack.i.h.bf16 %v4873_v39  ;;  %v4874_v9 = vunpack.i.l.bf16 %v4873_v39 }
 0xf47   : > { %v3446_v52 = vsel %vm1067_vm5, %v2862_v23, %v4875_v10  ;;  %v3445_v51 = vsel %vm1067_vm5, %v6950_v15, %v4874_v9 }
 0xf50   : > { %v3363_v27 = vpop.f32.mrf.mxu3 }
 0xf52   : > { %v3198_v31 = vpop.f32.mrf.mxu1 }
 0xf58   : > { %v3365_v48 = vpop.f32.mrf.mxu3 }
 0xf59   : > { %v4896_v7 = vpack.i.bf16 %v3365_v48, %v3363_v27 }
 0xf5a   : > { %v3200_v58 = vpop.f32.mrf.mxu1 }
 0xf5b   : > { %v4891_v49 = vpack.i.bf16 %v3200_v58, %v3198_v31  ;;  %4897 = vrot.lane.b32.xlu1 %v4896_v7, %s5294_s24 }
 0xf5d   : > { %4892 = vrot.lane.b32.xlu2 %v4891_v49, %s7375_s19 }
 0xf60   : > { %v3368_v3 = vpop.f32.mrf.mxu3 }
 0xf62   : > { %v3203_v11 = vpop.f32.mrf.mxu1 }
 0xf68   : > { %v3370_v55 = vpop.f32.mrf.mxu3 }
 0xf69   : > { %v4911_v19 = vpack.i.bf16 %v3370_v55, %v3368_v3 }
 0xf6a   : > { %v3205_v14 = vpop.f32.mrf.mxu1 }
 0xf6b   : > { %v4906_v57 = vpack.i.bf16 %v3205_v14, %v3203_v11  ;;  %4912 = vrot.lane.b32.xlu1 %v4911_v19, %s5294_s24  ;;  %s4771_s24 = smul.u32 48, %s5418_s0  ;;  %s4122_s0 = scalar_lea.sflag [#allocation3], %s629_s25 }
 0xf6d   : > { %4907 = vrot.lane.b32.xlu2 %v4906_v57, %s7375_s19  ;;  %s4133_s23 = scalar_lea.hbm %s7328_s18, %s4771_s24  ;;  %s5246_s19 = scalar_lea.hbm %s7328_s18, 96 }
 0xf6e   : > { %s4136_s22 = sshll.u32 %s4133_s23, 4  ;;  %s4137_s22 = int_to_ptr.hbm [resolvable:$true] %s4136_s22 }
 0xf6f   : > { %s5240_s20 = sshra.s32 %s4137_s22, 4  ;;  %s5241_s20 = int_to_ptr.hbm [resolvable:$true] %s5240_s20 }
 0xf70   : > { %s5242_s21 = scalar_lea.hbm %s5241_s20, 48  ;;  %p5247_p0 = scmp.lt.s32.totalorder %s5241_s20, %s7328_s18 }
 0xf71   : > { %p5243_p11 = scmp.ne.s32.totalorder %s5241_s20, %s5242_s21  ;;  %p5248_p1 = scmp.lt.s32.totalorder %s5246_s19, %s5242_s21 }
 0xf73   : > { %p5244_p12 = pnand %p5243_p11, %p5435_p5  ;;  %p5249_p2 = por %p5248_p1, %p5247_p0 }
 0xf75   : > { %p5245_p13 = pneg %p5244_p12 }
 0xf77   : > { %p5250_p3 = pnand %p5249_p2, %p5245_p13 }
 0xf8e   : > { %v4878_v24 = vpop.permute.xlu0 %4877 }
 0xf8f   : > { %v4880_v16 = vunpack.i.h.bf16 %v4878_v24  ;;  %v4879_v12 = vunpack.i.l.bf16 %v4878_v24 }
 0xf91   : > { %v3452_v25 = vsel %vm1789_vm9, %v3446_v52, %v4880_v16  ;;  %v3451_v43 = vsel %vm1789_vm9, %v3445_v51, %v4879_v12 }
 0xf96   : > { %v4888_v30 = vpop.permute.xlu0 %4887 }
 0xf97   : > { %v4890_v60 = vunpack.i.h.bf16 %v4888_v30  ;;  %v4889_v38 = vunpack.i.l.bf16 %v4888_v30 }
 0xf98   : > { %v4883_v26 = vpop.permute.xlu1 %4882 }
 0xf99   : > { %v4885_v37 = vunpack.i.h.bf16 %v4883_v26  ;;  %v4884_v41 = vunpack.i.l.bf16 %v4883_v26  ;;  %v3448_v61 = vsel %vm1067_vm5, %v6961_v13, %v4890_v60  ;;  %v3447_v22 = vsel %vm1067_vm5, %v6958_v63, %v4889_v38 }
 0xf9b   : > { %v3457_v20 = vsel %vm1110_vm14, %v3451_v43, %v4884_v41  ;;  %v3458_v59 = vsel %vm1110_vm14, %v3452_v25, %v4885_v37 }
 0xf9c   : > { %v3463_v45 = vpack.c.bf16 %v3458_v59, %v3457_v20 }
 0xf9e   : > { %4538 = vmatmul.msk.bf16.vlgmr.msra.gmra.mxu0 %vm780_vm0, %v3463_v45  ;;  %v4903_v34 = vpop.permute.xlu0 %4902 }
 0xf9f   : > { %v4905_v17 = vunpack.i.h.bf16 %v4903_v34  ;;  %v4904_v13 = vunpack.i.l.bf16 %v4903_v34 }
 0xfa1   : > { %v3450_v27 = vsel %vm1067_vm5, %v6965_v21, %v4905_v17  ;;  %v3449_v31 = vsel %vm1067_vm5, %v6963_v0, %v4904_v13  ;;  %v4926_v21 = vld [vmem:[%s7321_s11 + $0x1] ss:$0 sm:$0xff] }
 0xfb7   : > { %v4893_v8 = vpop.permute.xlu2 %4892 }
 0xfb8   : > { %v4895_v23 = vunpack.i.h.bf16 %v4893_v8  ;;  %v4894_v35 = vunpack.i.l.bf16 %v4893_v8 }
 0xfba   : > { %v3453_v32 = vsel %vm1789_vm9, %v3447_v22, %v4894_v35  ;;  %v3454_v5 = vsel %vm1789_vm9, %v3448_v61, %v4895_v23 }
 0xfc7   : > { %v4908_v1 = vpop.permute.xlu2 %4907 }
 0xfc8   : > { %v4910_v42 = vunpack.i.h.bf16 %v4908_v1  ;;  %v4909_v54 = vunpack.i.l.bf16 %v4908_v1 }
 0xfca   : > { %v3455_v58 = vsel %vm1789_vm9, %v3449_v31, %v4909_v54  ;;  %v3456_v49 = vsel %vm1789_vm9, %v3450_v27, %v4910_v42  ;;  %v4578_v31 = vld [vmem:[%s7324_s14 + $0x70] sm:$0xf] }
 0xfcd   : > { %v4898_v15 = vpop.permute.xlu1 %4897 }
 0xfce   : > { %v4900_v33 = vunpack.i.h.bf16 %v4898_v15  ;;  %v4899_v50 = vunpack.i.l.bf16 %v4898_v15 }
 0xfd0   : > { %v3459_v56 = vsel %vm1110_vm14, %v3453_v32, %v4899_v50  ;;  %v3460_v36 = vsel %vm1110_vm14, %v3454_v5, %v4900_v33 }
 0xfd1   : > { %v3464_v6 = vpack.c.bf16 %v3460_v36, %v3459_v56 }
 0xfd3   : > { %4539 = vmatmul.msk.bf16.gmra.mxu0 %vm780_vm0, %v3464_v6 }
 0xfdd   : > { %v4913_v63 = vpop.permute.xlu1 %4912 }
 0xfde   : > { %v4915_v48 = vunpack.i.h.bf16 %v4913_v63  ;;  %v4914_v7 = vunpack.i.l.bf16 %v4913_v63 }
 0xfe0   : > { %v3461_v3 = vsel %vm1110_vm14, %v3455_v58, %v4914_v7  ;;  %v3462_v11 = vsel %vm1110_vm14, %v3456_v49, %v4915_v48  ;;  %v4745_v48 = vld [vmem:[%s7324_s14 + $0x74] sm:$0xf0]  ;;  %v4744_v7 = vld [vmem:[%s7324_s14 + $0x74] sm:$0xf]  ;;  %v4580_v49 = vld [vmem:[%s7324_s14 + $0x78] sm:$0xf0] }
 0xfe1   : > { %v3465_v55 = vpack.c.bf16 %v3462_v11, %v3461_v3  ;;  %v4579_v58 = vor.u32 %v4745_v48, %v4578_v31  ;;  %v4583_v3 = vor.u32 %v4744_v7, %v4580_v49  ;;  %v4570_v11 = vld [vmem:[%s7324_s14 + $0x60] sm:$0xf] }
 0xfe3   : > { %4540 = vmatmul.msk.bf16.gmra.mxu0 %vm780_vm0, %v3465_v55  ;;  %3769 = vmatpush.bf16.msrb.mxu1 %v4579_v58  ;;  %v4743_v55 = vld [vmem:[%s7324_s14 + $0x64] sm:$0xf0] }
 0xfe4   : > { %3793 = vmatpush.bf16.msrb.mxu2 %v4583_v3 }
0x101b   : > { %v3522_v19 = vpop.f32.mrf.mxu0 }
0x101c   : > { %v3523_v14 = vadd.f32 %v4926_v21, %v3522_v19  ;;  %v4571_v19 = vor.u32 %v4743_v55, %v4570_v11 }
0x101e   : > { %v7017_v0 = vadd.f32 %v3523_v14, %v6416_v44  ;;  %v4572_v14 = vld [vmem:[%s7324_s14 + $0x68] sm:$0xf0]  ;;  %3770 = vmatpush.bf16.msrb.mxu1 %v4571_v19 }
0x1020   : > { %v3547_v57 = vsel %vm780_vm0, %v7017_v0, 0.0 }
0x1021   : > { %3548 = vadd.xlane.f32.xlu0 %v3547_v57 }
0x1023   : > { %v3524_v53 = vpop.f32.mrf.mxu0 }
0x1024   : > { %v3525_v47 = vadd.f32 %v4926_v21, %v3524_v53  ;;  %v4562_v53 = vld [vmem:[%s7324_s14 + $0x50] sm:$0xf] }
0x1026   : > { %v7022_v29 = vadd.f32 %v3525_v47, %v6421_v4  ;;  %v4741_v47 = vld [vmem:[%s7324_s14 + $0x54] sm:$0xf0] }
0x1028   : > { %v3550_v40 = vsel %vm780_vm0, %v7022_v29, 0.0 }
0x1029   : > { %3551 = vadd.xlane.f32.xlu2 %v3550_v40  ;;  %v4740_v40 = vld [vmem:[%s7324_s14 + $0x54] sm:$0xf] }
0x1050   : > { %v3527_v39 = vpop.f32.mrf.mxu0 }
0x1051   : > { %v3528_v24 = vadd.f32 %v4926_v21, %v3527_v39 }
0x1053   : > { %v7027_v10 = vadd.f32 %v3528_v24, %v6426_v2  ;;  %v4563_v24 = vor.u32 %v4741_v47, %v4562_v53 }
0x1055   : > { %v3553_v44 = vsel %vm780_vm0, %v7027_v10, 0.0  ;;  %3771 = vmatpush.bf16.msrb.mxu1 %v4563_v24 }
0x1056   : > { %3554 = vadd.xlane.f32.xlu1 %v3553_v44  ;;  %v4564_v44 = vld [vmem:[%s7324_s14 + $0x58] sm:$0xf0] }
0x1058   : > { %v3529_v9 = vpop.f32.mrf.mxu0 }
0x1059   : > { %v3530_v16 = vadd.f32 %v4926_v21, %v3529_v9 }
0x105b   : > { %v7032_v12 = vadd.f32 %v3530_v16, %v6431_v46  ;;  %v4567_v16 = vor.u32 %v4740_v40, %v4564_v44 }
0x105d   : > { %v3556_v4 = vsel %vm780_vm0, %v7032_v12, 0.0 }
0x105e   : > { %3557 = vadd.xlane.f32.xlu0 %v3556_v4 }
0x1060   : > { %v3532_v26 = vpop.f32.mrf.mxu0 }
0x1061   : > { %v3533_v52 = vadd.f32 %v4926_v21, %v3532_v26  ;;  %v4554_v26 = vld [vmem:[%s7324_s14 + $0x40] sm:$0xf] }
0x1063   : > { %v7037_v51 = vadd.f32 %v3533_v52, %v6436_v28  ;;  %v4739_v52 = vld [vmem:[%s7324_s14 + $0x44] sm:$0xf0] }
0x1065   : > { %v3559_v2 = vsel %vm780_vm0, %v7037_v51, 0.0 }
0x1066   : > { %3560 = vadd.xlane.f32.xlu2 %v3559_v2  ;;  %v4555_v2 = vor.u32 %v4739_v52, %v4554_v26 }
0x1068   : > { %v3534_v37 = vpop.f32.mrf.mxu0  ;;  %3772 = vmatpush.bf16.msrb.mxu1 %v4555_v2 }
0x1069   : > { %v3535_v41 = vadd.f32 %v4926_v21, %v3534_v37  ;;  %v4742_v21 = vld [vmem:[%s7324_s14 + $0x64] sm:$0xf] }
0x106a   : > { %v4575_v57 = vor.u32 %v4742_v21, %v4572_v14  ;;  %v4738_v37 = vld [vmem:[%s7324_s14 + $0x44] sm:$0xf] }
0x106b   : > { %v7042_v25 = vadd.f32 %v3535_v41, %v6441_v62  ;;  %v4556_v41 = vld [vmem:[%s7324_s14 + $0x48] sm:$0xf0] }
0x106c   : > { %3794 = vmatpush.bf16.msrb.mxu2 %v4575_v57 }
0x106d   : > { %v3562_v46 = vsel %vm780_vm0, %v7042_v25, 0.0 }
0x106e   : > { %3563 = vadd.xlane.f32.xlu1 %v3562_v46  ;;  %v4559_v46 = vor.u32 %v4738_v37, %v4556_v41 }
0x1070   : > { %3795 = vmatpush.bf16.msrb.mxu2 %v4567_v16 }
0x1074   : > { %3796 = vmatpush.bf16.msrb.mxu2 %v4559_v46 }
0x1094   : > { %v3549_v43 = vpop.xlane.xlu0 %3548 }
0x1095   : > { %v3565_v20 = vmul.f32 %v3549_v43, %v5470_v18 }
0x1097   : > { %v7048_v59 = vsub.f32 %v7017_v0, %v3565_v20 }
0x1099   : > { %v3577_v28 = vmul.f32 %v7048_v59, %v7048_v59 }
0x109b   : > { %v3583_v45 = vsel %vm780_vm0, %v3577_v28, 0.0 }
0x109c   : > { %v3552_v30 = vpop.xlane.xlu2 %3551  ;;  %3584 = vadd.xlane.f32.xlu0 %v3583_v45 }
0x109d   : > { %v3566_v62 = vmul.f32 %v3552_v30, %v5470_v18 }
0x109f   : > { %v7055_v8 = vsub.f32 %v7022_v29, %v3566_v62 }
0x10a1   : > { %v3578_v60 = vmul.f32 %v7055_v8, %v7055_v8 }
0x10a3   : > { %v3586_v38 = vsel %vm780_vm0, %v3578_v60, 0.0 }
0x10a4   : > { %3587 = vadd.xlane.f32.xlu2 %v3586_v38 }
0x10c9   : > { %v3555_v23 = vpop.xlane.xlu1 %3554 }
0x10ca   : > { %v3567_v35 = vmul.f32 %v3555_v23, %v5470_v18 }
0x10cc   : > { %v7062_v15 = vsub.f32 %v7027_v10, %v3567_v35 }
0x10ce   : > { %v3579_v61 = vmul.f32 %v7062_v15, %v7062_v15 }
0x10d0   : > { %v3589_v22 = vsel %vm780_vm0, %v3579_v61, 0.0 }
0x10d1   : > { %3590 = vadd.xlane.f32.xlu1 %v3589_v22  ;;  %v3558_v33 = vpop.xlane.xlu0 %3557 }
0x10d2   : > { %v3568_v50 = vmul.f32 %v3558_v33, %v5470_v18 }
0x10d4   : > { %v7069_v32 = vsub.f32 %v7032_v12, %v3568_v50 }
0x10d6   : > { %v3580_v5 = vmul.f32 %v7069_v32, %v7069_v32 }
0x10d8   : > { %v3592_v56 = vsel %vm780_vm0, %v3580_v5, 0.0 }
0x10d9   : > { %v3561_v36 = vpop.xlane.xlu2 %3560  ;;  %3593 = vadd.xlane.f32.xlu0 %v3592_v56  ;;  %v7141_v56 = vld [vmem:[%s7322_s12 + $0x1] ss:$0 sm:$0xff] }
0x10da   : > { %v3569_v6 = vmul.f32 %v3561_v36, %v5470_v18 }
0x10dc   : > { %v7076_v34 = vsub.f32 %v7037_v51, %v3569_v6 }
0x10de   : > { %v3581_v1 = vmul.f32 %v7076_v34, %v7076_v34 }
0x10e0   : > { %v3595_v17 = vsel %vm780_vm0, %v3581_v1, 0.0 }
0x10e1   : > { %v3564_v13 = vpop.xlane.xlu1 %3563  ;;  %3596 = vadd.xlane.f32.xlu2 %v3595_v17  ;;  %v7147_v17 = vld [vmem:[%s7323_s13 + $0x1] ss:$0 sm:$0xff] }
0x10e2   : > { %v3570_v42 = vmul.f32 %v3564_v13, %v5470_v18 }
0x10e4   : > { %v7083_v54 = vsub.f32 %v7042_v25, %v3570_v42 }
0x10e6   : > { %v3582_v63 = vmul.f32 %v7083_v54, %v7083_v54 }
0x10e8   : > { %v3598_v27 = vsel %vm780_vm0, %v3582_v63, 0.0 }
0x10e9   : > { %3599 = vadd.xlane.f32.xlu1 %v3598_v27 }
0x110f   : > { %v3585_v39 = vpop.xlane.xlu0 %3584 }
0x1110   : > { %v3601_v9 = vmul.f32 %v3585_v39, %v5470_v18 }
0x1112   : > { %v3607_v4 = vadd.f32 1e-05, %v3601_v9 }
0x1114   : > { %5184 = vrsqrt.f32 %v3607_v4  ;;  %vm3619_vm14 = vweird.f32 %v3607_v4 }
0x1117   : > { %v3588_v43 = vpop.xlane.xlu2 %3587 }
0x1118   : > { %v3602_v20 = vmul.f32 %v3588_v43, %v5470_v18 }
0x111a   : > { %v5185_v28 = vpop.eup %5184  ;;  %v3608_v45 = vadd.f32 1e-05, %v3602_v20 }
0x111b   : > { %v3614_v30 = vmul.f32 %v5185_v28, %v3607_v4  ;;  %vm3620_vm5 = vweird.f32 %v5185_v28 }
0x111c   : > { %5186 = vrsqrt.f32 %v3608_v45  ;;  %vm3621_vm9 = vmor %vm3619_vm14, %vm3620_vm5  ;;  %vm3629_vm8 = vweird.f32 %v3608_v45 }
0x111d   : > { %v3615_v62 = vmul.f32 %v5185_v28, %v3614_v30 }
0x111f   : > { %v3616_v60 = vmul.f32 0.5, %v3615_v62 }
0x1121   : > { %v3617_v38 = vsub.f32 1.5, %v3616_v60 }
0x1122   : > { %v5187_v23 = vpop.eup %5186 }
0x1123   : > { %v3618_v35 = vmul.f32 %v5185_v28, %v3617_v38  ;;  %v3624_v61 = vmul.f32 %v5187_v23, %v3608_v45  ;;  %vm3630_vm7 = vweird.f32 %v5187_v23 }
0x1124   : > { %vm3631_vm10 = vmor %vm3629_vm8, %vm3630_vm7 }
0x1125   : > { %v3625_v22 = vmul.f32 %v5187_v23, %v3624_v61  ;;  %v3622_v33 = vsel %vm3621_vm9, %v5185_v28, %v3618_v35 }
0x1126   : > { %v3673_v36 = vmul.f32 %v3622_v33, %v7048_v59 }
0x1127   : > { %v3626_v50 = vmul.f32 0.5, %v3625_v22 }
0x1128   : > { %v3682_v13 = vmul.f32 %v7141_v56, %v3673_v36 }
0x1129   : > { %v3627_v5 = vsub.f32 1.5, %v3626_v50 }
0x112a   : > { %v3691_v27 = vadd.f32 %v7147_v17, %v3682_v13 }
0x112b   : > { %v3628_v6 = vmul.f32 %v5187_v23, %v3627_v5 }
0x112d   : > { %v3632_v1 = vsel %vm3631_vm10, %v5187_v23, %v3628_v6 }
0x112e   : > { %v3674_v42 = vmul.f32 %v3632_v1, %v7055_v8 }
0x1130   : > { %v3683_v63 = vmul.f32 %v7141_v56, %v3674_v42 }
0x1132   : > { %v3692_v31 = vadd.f32 %v7147_v17, %v3683_v63 }
0x1134   : > { %v3697_v59 = vpack.c.bf16 %v3692_v31, %v3691_v27 }
0x1136   : > { %4584 = vmatmul.msk.bf16.vlgmr.msrb.gmra.mxu1 %vm780_vm0, %v3697_v59  ;;  %4587 = vmatmul.msk.bf16.vlgmr.msrb.gmra.mxu2 %vm780_vm0, %v3697_v59 }
0x1144   : > { %v3591_v48 = vpop.xlane.xlu1 %3590 }
0x1145   : > { %v3603_v7 = vmul.f32 %v3591_v48, %v5470_v18  ;;  %v4760_v48 = vld [vmem:[%s7326_s16 + $0xf0] sm:$0xff] }
0x1147   : > { %v3609_v58 = vadd.f32 1e-05, %v3603_v7  ;;  %v4750_v7 = vld [vmem:[%s7326_s16 + $0xa0] sm:$0xff] }
0x1149   : > { %5188 = vrsqrt.f32 %v3609_v58  ;;  %vm3639_vm12 = vweird.f32 %v3609_v58 }
0x114c   : > { %v3594_v49 = vpop.xlane.xlu0 %3593 }
0x114d   : > { %v3604_v3 = vmul.f32 %v3594_v49, %v5470_v18  ;;  %v4749_v49 = vld [vmem:[%s7326_s16 + $0x98] sm:$0xff] }
0x114f   : > { %v5189_v8 = vpop.eup %5188  ;;  %v3610_v11 = vadd.f32 1e-05, %v3604_v3  ;;  %v4758_v3 = vld [vmem:[%s7326_s16 + $0xe0] sm:$0xff] }
0x1150   : > { %v3634_v55 = vmul.f32 %v5189_v8, %v3609_v58  ;;  %vm3640_vm11 = vweird.f32 %v5189_v8  ;;  %v4759_v58 = vld [vmem:[%s7326_s16 + $0xe8] sm:$0xff] }
0x1151   : > { %5190 = vrsqrt.f32 %v3610_v11  ;;  %vm3641_vm13 = vmor %vm3639_vm12, %vm3640_vm11  ;;  %vm3649_vm1 = vweird.f32 %v3610_v11 }
0x1152   : > { %v3635_v21 = vmul.f32 %v5189_v8, %v3634_v55  ;;  %v4551_v55 = vld [vmem:[%s7325_s15 + $0x2] sm:$0x3] }
0x1154   : > { %v3636_v19 = vmul.f32 0.5, %v3635_v21  ;;  %v3597_v14 = vpop.xlane.xlu2 %3596  ;;  %v4747_v21 = vld [vmem:[%s7326_s16 + $0x88] sm:$0xff] }
0x1155   : > { %v3605_v57 = vmul.f32 %v3597_v14, %v5470_v18  ;;  %v4756_v14 = vld [vmem:[%s7326_s16 + $0xd0] sm:$0xff] }
0x1156   : > { %v3637_v53 = vsub.f32 1.5, %v3636_v19  ;;  %v7215_v19 = vperm.slane %v4551_v55, 0 }
0x1157   : > { %v5191_v47 = vpop.eup %5190  ;;  %v3611_v40 = vadd.f32 1e-05, %v3605_v57  ;;  %v4746_v57 = vld [vmem:[%s7326_s16 + $0x80] sm:$0xff] }
0x1158   : > { %v3638_v39 = vmul.f32 %v5189_v8, %v3637_v53  ;;  %v3644_v24 = vmul.f32 %v5191_v47, %v3610_v11  ;;  %vm3650_vm15 = vweird.f32 %v5191_v47  ;;  %v4757_v11 = vld [vmem:[%s7326_s16 + $0xd8] sm:$0xff] }
0x1159   : > { %5192 = vrsqrt.f32 %v3611_v40  ;;  %vm3651_vm2 = vmor %vm3649_vm1, %vm3650_vm15  ;;  %vm3659_vm4 = vweird.f32 %v3611_v40 }
0x115a   : > { %v3645_v44 = vmul.f32 %v5191_v47, %v3644_v24  ;;  %v3642_v9 = vsel %vm3641_vm13, %v5189_v8, %v3638_v39  ;;  %v4748_v8 = vld [vmem:[%s7326_s16 + $0x90] sm:$0xff]  ;;  %v7227_v24 = vperm.slane %v4551_v55, 1 }
0x115b   : > { %v3675_v37 = vmul.f32 %v3642_v9, %v7062_v15 }
0x115c   : > { %v3646_v16 = vmul.f32 0.5, %v3645_v44  ;;  %v3600_v4 = vpop.xlane.xlu1 %3599  ;;  %v4754_v44 = vld [vmem:[%s7326_s16 + $0xc0] sm:$0xff] }
0x115d   : > { %v3606_v26 = vmul.f32 %v3600_v4, %v5470_v18  ;;  %v3684_v30 = vmul.f32 %v7141_v56, %v3675_v37 }
0x115e   : > { %v3647_v52 = vsub.f32 1.5, %v3646_v16 }
0x115f   : > { %v5193_v2 = vpop.eup %5192  ;;  %v3612_v41 = vadd.f32 1e-05, %v3606_v26  ;;  %v3693_v23 = vadd.f32 %v7147_v17, %v3684_v30 }
0x1160   : > { %v3648_v46 = vmul.f32 %v5191_v47, %v3647_v52  ;;  %v3654_v43 = vmul.f32 %v5193_v2, %v3611_v40  ;;  %vm3660_vm3 = vweird.f32 %v5193_v2  ;;  %v4755_v40 = vld [vmem:[%s7326_s16 + $0xc8] sm:$0xff] }
0x1161   : > { %5194 = vrsqrt.f32 %v3612_v41  ;;  %vm3661_vm6 = vmor %vm3659_vm4, %vm3660_vm3  ;;  %vm3669_vm14 = vweird.f32 %v3612_v41 }
0x1162   : > { %v3652_v20 = vsel %vm3651_vm2, %v5191_v47, %v3648_v46  ;;  %v3655_v28 = vmul.f32 %v5193_v2, %v3654_v43 }
0x1163   : > { %v3676_v45 = vmul.f32 %v3652_v20, %v7069_v32 }
0x1164   : > { %v3656_v62 = vmul.f32 0.5, %v3655_v28 }
0x1165   : > { %v3685_v18 = vmul.f32 %v7141_v56, %v3676_v45 }
0x1166   : > { %v3657_v60 = vsub.f32 1.5, %v3656_v62 }
0x1167   : > { %v5195_v38 = vpop.eup %5194  ;;  %v3694_v15 = vadd.f32 %v7147_v17, %v3685_v18 }
0x1168   : > { %v3658_v35 = vmul.f32 %v5193_v2, %v3657_v60  ;;  %v3664_v61 = vmul.f32 %v5195_v38, %v3612_v41  ;;  %vm3670_vm5 = vweird.f32 %v5195_v38 }
0x1169   : > { %v3698_v22 = vpack.c.bf16 %v3694_v15, %v3693_v23  ;;  %vm3671_vm9 = vmor %vm3669_vm14, %vm3670_vm5 }
0x116a   : > { %v3665_v33 = vmul.f32 %v5195_v38, %v3664_v61  ;;  %v3662_v32 = vsel %vm3661_vm6, %v5193_v2, %v3658_v35 }
0x116b   : > { %4585 = vmatmul.msk.bf16.gmra.mxu1 %vm780_vm0, %v3698_v22  ;;  %4588 = vmatmul.msk.bf16.gmra.mxu2 %vm780_vm0, %v3698_v22  ;;  %v3677_v36 = vmul.f32 %v3662_v32, %v7076_v34  ;;  %v4753_v34 = vld [vmem:[%s7326_s16 + $0xb8] sm:$0xff] }
0x116c   : > { %v3666_v50 = vmul.f32 0.5, %v3665_v33  ;;  %4061 = vmatpush.bf16.msrb.mxu3 %v4753_v34 }
0x116d   : > { %v3686_v42 = vmul.f32 %v7141_v56, %v3677_v36 }
0x116e   : > { %v3667_v5 = vsub.f32 1.5, %v3666_v50 }
0x116f   : > { %v3695_v27 = vadd.f32 %v7147_v17, %v3686_v42 }
0x1170   : > { %v3668_v6 = vmul.f32 %v5195_v38, %v3667_v5 }
0x1172   : > { %v3672_v1 = vsel %vm3671_vm9, %v5195_v38, %v3668_v6 }
0x1173   : > { %v3678_v13 = vmul.f32 %v3672_v1, %v7083_v54  ;;  %v4752_v54 = vld [vmem:[%s7326_s16 + $0xb0] sm:$0xff] }
0x1174   : > { %4062 = vmatpush.bf16.msrb.mxu3 %v4752_v54 }
0x1175   : > { %v3687_v63 = vmul.f32 %v7141_v56, %v3678_v13  ;;  %v4761_v56 = vld [vmem:[%s7326_s16 + $0xf8] sm:$0xff] }
0x1176   : > { %4085 = vmatpush.bf16.msrb.mxu0 %v4761_v56 }
0x1177   : > { %v3696_v31 = vadd.f32 %v7147_v17, %v3687_v63  ;;  %v4751_v17 = vld [vmem:[%s7326_s16 + $0xa8] sm:$0xff] }
0x1178   : > { %4063 = vmatpush.bf16.msrb.mxu3 %v4751_v17 }
0x1179   : > { %v3699_v59 = vpack.c.bf16 %v3696_v31, %v3695_v27 }
0x117a   : > { %4086 = vmatpush.bf16.msrb.mxu0 %v4760_v48 }
0x117b   : > { %4586 = vmatmul.msk.bf16.gmra.mxu1 %vm780_vm0, %v3699_v59  ;;  %4589 = vmatmul.msk.bf16.gmra.mxu2 %vm780_vm0, %v3699_v59 }
0x117c   : > { %4064 = vmatpush.bf16.msrb.mxu3 %v4750_v7 }
0x117e   : > { %4087 = vmatpush.bf16.msrb.mxu0 %v4759_v58 }
0x1180   : > { %4065 = vmatpush.bf16.msrb.mxu3 %v4749_v49 }
0x1182   : > { %4088 = vmatpush.bf16.msrb.mxu0 %v4758_v3 }
0x1184   : > { %4066 = vmatpush.bf16.msrb.mxu3 %v4748_v8 }
0x1186   : > { %4089 = vmatpush.bf16.msrb.mxu0 %v4757_v11 }
0x1188   : > { %4067 = vmatpush.bf16.msrb.mxu3 %v4747_v21 }
0x118a   : > { %4090 = vmatpush.bf16.msrb.mxu0 %v4756_v14 }
0x118c   : > { %4068 = vmatpush.bf16.msrb.mxu3 %v4746_v57 }
0x118e   : > { %4091 = vmatpush.bf16.msrb.mxu0 %v4755_v40 }
0x1192   : > { %4092 = vmatpush.bf16.msrb.mxu0 %v4754_v44 }
0x11b3   : > { %v3774_v53 = vpop.f32.mrf.mxu1 }
0x11b4   : > { %v3775_v47 = vadd.f32 %v3774_v53, %v7215_v19 }
0x11b6   : > { %v3825_v39 = vmul.f32 0.044715, %v3775_v47  ;;  %v3813_v6 = vmul.f32 0.5, %v3775_v47 }
0x11b8   : > { %v3837_v9 = vmul.f32 %v3825_v39, %v3775_v47 }
0x11b9   : > { %v3798_v16 = vpop.f32.mrf.mxu2 }
0x11ba   : > { %v3849_v4 = vmul.f32 %v3837_v9, %v3775_v47  ;;  %v3799_v26 = vadd.f32 %v3798_v16, %v7227_v24 }
0x11bb   : > { %v3776_v52 = vpop.f32.mrf.mxu1 }
0x11bc   : > { %v3861_v2 = vadd.f32 %v3849_v4, %v3775_v47  ;;  %v3826_v37 = vmul.f32 0.044715, %v3799_v26  ;;  %v3777_v41 = vadd.f32 %v3776_v52, %v7215_v19  ;;  %v3814_v54 = vmul.f32 0.5, %v3799_v26 }
0x11be   : > { %v3838_v46 = vmul.f32 %v3826_v37, %v3799_v26  ;;  %v3827_v43 = vmul.f32 0.044715, %v3777_v41  ;;  %v3873_v20 = vmul.f32 0.7978846, %v3861_v2  ;;  %v3815_v1 = vmul.f32 0.5, %v3777_v41 }
0x11c0   : > { %v3850_v28 = vmul.f32 %v3838_v46, %v3799_v26  ;;  %v3839_v45 = vmul.f32 %v3827_v43, %v3777_v41  ;;  %5196 = vtanh.f32 %v3873_v20 }
0x11c1   : > { %v3800_v30 = vpop.f32.mrf.mxu2 }
0x11c2   : > { %v3862_v62 = vadd.f32 %v3850_v28, %v3799_v26  ;;  %v3851_v18 = vmul.f32 %v3839_v45, %v3777_v41  ;;  %v3801_v60 = vadd.f32 %v3800_v30, %v7227_v24 }
0x11c4   : > { %v3863_v38 = vadd.f32 %v3851_v18, %v3777_v41  ;;  %v3828_v23 = vmul.f32 0.044715, %v3801_v60  ;;  %v3874_v15 = vmul.f32 0.7978846, %v3862_v62  ;;  %v3816_v56 = vmul.f32 0.5, %v3801_v60 }
0x11c6   : > { %v3875_v35 = vmul.f32 0.7978846, %v3863_v38  ;;  %v3840_v61 = vmul.f32 %v3828_v23, %v3801_v60  ;;  %v5197_v33 = vpop.eup %5196 }
0x11c7   : > { %v3897_v5 = vadd.f32 1.0, %v5197_v33 }
0x11c8   : > { %5198 = vtanh.f32 %v3875_v35  ;;  %v3852_v22 = vmul.f32 %v3840_v61, %v3801_v60 }
0x11c9   : > { %5200 = vtanh.f32 %v3874_v15  ;;  %v3909_v63 = vmul.f32 %v3897_v5, %v3813_v6 }
0x11ca   : > { %v3864_v32 = vadd.f32 %v3852_v22, %v3801_v60 }
0x11cc   : > { %v3876_v50 = vmul.f32 0.7978846, %v3864_v32 }
0x11ce   : > { %v5199_v36 = vpop.eup %5198  ;;  %5202 = vtanh.f32 %v3876_v50 }
0x11cf   : > { %v3899_v13 = vadd.f32 1.0, %v5199_v36  ;;  %v5201_v42 = vpop.eup %5200 }
0x11d0   : > { %v3898_v31 = vadd.f32 1.0, %v5201_v42 }
0x11d1   : > { %v3911_v27 = vmul.f32 %v3899_v13, %v3815_v1 }
0x11d2   : > { %v3910_v48 = vmul.f32 %v3898_v31, %v3814_v54 }
0x11d3   : > { %v3921_v59 = vpack.c.bf16 %v3911_v27, %v3909_v63 }
0x11d4   : > { %v5203_v34 = vpop.eup %5202 }
0x11d5   : > { %v3900_v17 = vadd.f32 1.0, %v5203_v34  ;;  %4069 = vmatmul.bf16.vlgmr.msrb.gmra.mxu3 %v3921_v59 }
0x11d7   : > { %v3912_v7 = vmul.f32 %v3900_v17, %v3816_v56 }
0x11d9   : > { %v3922_v58 = vpack.c.bf16 %v3912_v7, %v3910_v48 }
0x11db   : > { %4093 = vmatmul.bf16.vlgmr.msrb.gmra.mxu0 %v3922_v58 }
0x11e8   : > { %v3779_v49 = vpop.f32.mrf.mxu1 }
0x11e9   : > { %v3780_v3 = vadd.f32 %v3779_v49, %v7215_v19 }
0x11eb   : > { %v3829_v8 = vmul.f32 0.044715, %v3780_v3  ;;  %v3817_v42 = vmul.f32 0.5, %v3780_v3 }
0x11ed   : > { %v3841_v11 = vmul.f32 %v3829_v8, %v3780_v3 }
0x11ee   : > { %v3803_v55 = vpop.f32.mrf.mxu2 }
0x11ef   : > { %v3804_v21 = vadd.f32 %v3803_v55, %v7227_v24  ;;  %v3853_v14 = vmul.f32 %v3841_v11, %v3780_v3 }
0x11f0   : > { %v3781_v57 = vpop.f32.mrf.mxu1 }
0x11f1   : > { %v3830_v53 = vmul.f32 0.044715, %v3804_v21  ;;  %v3782_v47 = vadd.f32 %v3781_v57, %v7215_v19  ;;  %v3865_v40 = vadd.f32 %v3853_v14, %v3780_v3  ;;  %v3818_v3 = vmul.f32 0.5, %v3804_v21 }
0x11f3   : > { %v3842_v39 = vmul.f32 %v3830_v53, %v3804_v21  ;;  %v3831_v44 = vmul.f32 0.044715, %v3782_v47  ;;  %v3877_v16 = vmul.f32 0.7978846, %v3865_v40  ;;  %v3819_v63 = vmul.f32 0.5, %v3782_v47 }
0x11f5   : > { %v3843_v9 = vmul.f32 %v3831_v44, %v3782_v47  ;;  %v3854_v4 = vmul.f32 %v3842_v39, %v3804_v21  ;;  %5204 = vtanh.f32 %v3877_v16 }
0x11f6   : > { %v3805_v26 = vpop.f32.mrf.mxu2 }
0x11f7   : > { %v3806_v52 = vadd.f32 %v3805_v26, %v7227_v24  ;;  %v3855_v2 = vmul.f32 %v3843_v9, %v3782_v47  ;;  %v3866_v37 = vadd.f32 %v3854_v4, %v3804_v21 }
0x11f8   : > { %v3784_v41 = vpop.f32.mrf.mxu1 }
0x11f9   : > { %v3832_v46 = vmul.f32 0.044715, %v3806_v52  ;;  %v7240_v43 = vadd.f32 %v3784_v41, %v7215_v19  ;;  %v3867_v20 = vadd.f32 %v3855_v2, %v3782_v47  ;;  %v3878_v62 = vmul.f32 0.7978846, %v3866_v37 }
0x11fa   : > { %v3820_v57 = vmul.f32 0.5, %v3806_v52 }
0x11fb   : > { %v3844_v28 = vmul.f32 %v3832_v46, %v3806_v52  ;;  %v3833_v45 = vmul.f32 0.044715, %v7240_v43  ;;  %v3879_v30 = vmul.f32 0.7978846, %v3867_v20  ;;  %v5205_v23 = vpop.eup %5204  ;;  %v3821_v21 = vmul.f32 0.5, %v7240_v43 }
0x11fc   : > { %v3901_v36 = vadd.f32 1.0, %v5205_v23 }
0x11fd   : > { %v3845_v18 = vmul.f32 %v3833_v45, %v7240_v43  ;;  %5206 = vtanh.f32 %v3879_v30  ;;  %v3856_v60 = vmul.f32 %v3844_v28, %v3806_v52 }
0x11fe   : > { %v3808_v38 = vpop.f32.mrf.mxu2  ;;  %5208 = vtanh.f32 %v3878_v62  ;;  %v3913_v17 = vmul.f32 %v3901_v36, %v3817_v42 }
0x11ff   : > { %v3809_v15 = vadd.f32 %v3808_v38, %v7227_v24  ;;  %v3868_v35 = vadd.f32 %v3856_v60, %v3806_v52  ;;  %v3857_v61 = vmul.f32 %v3845_v18, %v7240_v43 }
0x1200   : > { %v3786_v22 = vpop.f32.mrf.mxu1 }
0x1201   : > { %v3834_v33 = vmul.f32 0.044715, %v3809_v15  ;;  %v3787_v32 = vadd.f32 %v3786_v22, %v7215_v19  ;;  %v3880_v50 = vmul.f32 0.7978846, %v3868_v35  ;;  %v3869_v5 = vadd.f32 %v3857_v61, %v7240_v43  ;;  %v4929_v43 = vld [vmem:[%s7327_s17 + $0x1] ss:$0 sm:$0xff] }
0x1202   : > { %v3822_v60 = vmul.f32 0.5, %v3809_v15 }
0x1203   : > { %v5207_v6 = vpop.eup %5206  ;;  %v3846_v1 = vmul.f32 %v3834_v33, %v3809_v15  ;;  %v3835_v13 = vmul.f32 0.044715, %v3787_v32  ;;  %5210 = vtanh.f32 %v3880_v50  ;;  %v3881_v34 = vmul.f32 0.7978846, %v3869_v5 }
0x1204   : > { %v3903_v27 = vadd.f32 1.0, %v5207_v6  ;;  %v5209_v31 = vpop.eup %5208  ;;  %v3823_v52 = vmul.f32 0.5, %v3787_v32 }
0x1205   : > { %v3847_v59 = vmul.f32 %v3835_v13, %v3787_v32  ;;  %v3858_v54 = vmul.f32 %v3846_v1, %v3809_v15  ;;  %v3902_v8 = vadd.f32 1.0, %v5209_v31  ;;  %5212 = vtanh.f32 %v3881_v34 }
0x1206   : > { %v3810_v56 = vpop.f32.mrf.mxu2  ;;  %v3915_v48 = vmul.f32 %v3903_v27, %v3819_v63 }
0x1207   : > { %v3811_v19 = vadd.f32 %v3810_v56, %v7227_v24  ;;  %v3859_v7 = vmul.f32 %v3847_v59, %v3787_v32  ;;  %v3870_v58 = vadd.f32 %v3858_v54, %v3809_v15  ;;  %v3914_v44 = vmul.f32 %v3902_v8, %v3818_v3 }
0x1208   : > { %v3923_v49 = vpack.c.bf16 %v3915_v48, %v3913_v17 }
0x1209   : > { %v5211_v11 = vpop.eup %5210  ;;  %v3836_v55 = vmul.f32 0.044715, %v3811_v19  ;;  %v3871_v14 = vadd.f32 %v3859_v7, %v3787_v32  ;;  %v3882_v39 = vmul.f32 0.7978846, %v3870_v58  ;;  %v3824_v38 = vmul.f32 0.5, %v3811_v19 }
0x120a   : > { %4074 = vmatmul.bf16.gmra.mxu3 %v3923_v49  ;;  %v3904_v53 = vadd.f32 1.0, %v5211_v11 }
0x120b   : > { %v3848_v47 = vmul.f32 %v3836_v55, %v3811_v19  ;;  %v3883_v40 = vmul.f32 0.7978846, %v3871_v14  ;;  %v5213_v4 = vpop.eup %5212 }
0x120c   : > { %v3916_v9 = vmul.f32 %v3904_v53, %v3820_v57  ;;  %v3905_v37 = vadd.f32 1.0, %v5213_v4 }
0x120d   : > { %5214 = vtanh.f32 %v3883_v40  ;;  %v3860_v16 = vmul.f32 %v3848_v47, %v3811_v19 }
0x120e   : > { %v3924_v24 = vpack.c.bf16 %v3916_v9, %v3914_v44  ;;  %5216 = vtanh.f32 %v3882_v39  ;;  %v3917_v28 = vmul.f32 %v3905_v37, %v3821_v21 }
0x120f   : > { %v3872_v26 = vadd.f32 %v3860_v16, %v3811_v19 }
0x1210   : > { %4098 = vmatmul.bf16.gmra.mxu0 %v3924_v24 }
0x1211   : > { %v3884_v2 = vmul.f32 0.7978846, %v3872_v26 }
0x1213   : > { %v5215_v41 = vpop.eup %5214  ;;  %5218 = vtanh.f32 %v3884_v2 }
0x1214   : > { %v3907_v46 = vadd.f32 1.0, %v5215_v41  ;;  %v5217_v20 = vpop.eup %5216 }
0x1215   : > { %v3906_v62 = vadd.f32 1.0, %v5217_v20 }
0x1216   : > { %v3919_v45 = vmul.f32 %v3907_v46, %v3823_v52 }
0x1217   : > { %v3918_v35 = vmul.f32 %v3906_v62, %v3822_v60 }
0x1218   : > { %v3925_v30 = vpack.c.bf16 %v3919_v45, %v3917_v28 }
0x1219   : > { %v5219_v18 = vpop.eup %5218 }
0x121a   : > { %4079 = vmatmul.bf16.gmra.mxu3 %v3925_v30  ;;  %v3908_v23 = vadd.f32 1.0, %v5219_v18 }
0x121c   : > { %v3920_v61 = vmul.f32 %v3908_v23, %v3824_v38 }
0x121e   : > { %v3926_v22 = vpack.c.bf16 %v3920_v61, %v3918_v35 }
0x1220   : > { %4103 = vmatmul.bf16.gmra.mxu0 %v3926_v22 }
0x1258   : > { %v4070_v33 = vpop.f32.mrf.mxu3  ;;  %v4094_v32 = vpop.f32.mrf.mxu0 }
0x1259   : > { %v4071_v50 = vadd.f32 %v4929_v43, %v4070_v33 }
0x125b   : > { %v4095_v5 = vadd.f32 %v4094_v32, %v4071_v50 }
0x125d   : > { %v4109_v36 = vadd.f32 %v4095_v5, %v7017_v0 }
0x125f   : > { %4115 = vst.msk [vmem:[%s7257_s27] sm:$0xff] %vm780_vm0, %v4109_v36 }
0x1260   : > { %v4072_v15 = vpop.f32.mrf.mxu3  ;;  %v4096_v1 = vpop.f32.mrf.mxu0 }
0x1261   : > { %v4073_v6 = vadd.f32 %v4929_v43, %v4072_v15 }
0x1263   : > { %v4097_v13 = vadd.f32 %v4096_v1, %v4073_v6 }
0x1265   : > { %v4110_v42 = vadd.f32 %v4097_v13, %v7022_v29 }
0x1267   : > { %4116 = vst.msk [vmem:[%s7257_s27 + $0x8] sm:$0xff] %vm780_vm0, %v4110_v42 }
0x128d   : > { %v4075_v63 = vpop.f32.mrf.mxu3  ;;  %v4099_v27 = vpop.f32.mrf.mxu0 }
0x128e   : > { %v4076_v0 = vadd.f32 %v4929_v43, %v4075_v63 }
0x1290   : > { %v4100_v31 = vadd.f32 %v4099_v27, %v4076_v0 }
0x1292   : > { %v4111_v59 = vadd.f32 %v4100_v31, %v7027_v10 }
0x1294   : > { %4117 = vst.msk [vmem:[%s7257_s27 + $0x10] sm:$0xff] %vm780_vm0, %v4111_v59 }
0x1295   : > { %v4077_v34 = vpop.f32.mrf.mxu3  ;;  %v4101_v54 = vpop.f32.mrf.mxu0 }
0x1296   : > { %v4078_v56 = vadd.f32 %v4929_v43, %v4077_v34 }
0x1298   : > { %v4102_v17 = vadd.f32 %v4101_v54, %v4078_v56 }
0x129a   : > { %v4112_v48 = vadd.f32 %v4102_v17, %v7032_v12 }
0x129c   : > { %4118 = vst.msk [vmem:[%s7257_s27 + $0x18] sm:$0xff] %vm780_vm0, %v4112_v48 }
0x129d   : > { %v4080_v29 = vpop.f32.mrf.mxu3  ;;  %v4104_v19 = vpop.f32.mrf.mxu0 }
0x129e   : > { %v4081_v7 = vadd.f32 %v4929_v43, %v4080_v29 }
0x12a0   : > { %v4105_v58 = vadd.f32 %v4104_v19, %v4081_v7 }
0x12a2   : > { %v4113_v10 = vadd.f32 %v4105_v58, %v7037_v51 }
0x12a4   : > { %4119 = vst.msk [vmem:[%s7257_s27 + $0x20] sm:$0xff] %vm780_vm0, %v4113_v10 }
0x12a5   : > { %v4082_v49 = vpop.f32.mrf.mxu3  ;;  %v4106_v8 = vpop.f32.mrf.mxu0 }
0x12a6   : > { %v4083_v12 = vadd.f32 %v4929_v43, %v4082_v49 }
0x12a8   : > { %v4107_v11 = vadd.f32 %v4106_v8, %v4083_v12 }
0x12aa   : > { %v4114_v55 = vadd.f32 %v4107_v11, %v7042_v25 }
0x12ac   : > { %4120 = vst.msk [vmem:[%s7257_s27 + $0x28] sm:$0xff] %vm780_vm0, %v4114_v55 }
0x12ad   : > { %5253 = shalt.err (!%p5250_p3)
}
0x12ae   : > { %s5300_s25 = smov 128   ;;  %s5301_s27 = smov 8  }
0x12af   : > { %4772 = dma.vmem_to_hbm [thread:$0]  (%p5435_p5), %s4135_s29, 768, %s4137_s22, %s4122_s0, %s5300_s25, %s5300_s25, %s5301_s27  }
0x12b0 PF: > { %s7378_s3 = sld [smem:[#allocation5_spill]]  ;;  %p4778_p4 = scmp.ge.s32.totalorder %s5288_s30, 2 }
0x12b2   : > { %p4775_p7 = pnand %p4778_p4, %p5439_p6 }
0x12b4   : > { %p4776_p8 = pneg %p4775_p7 }
0x12b6   : > { %s4151_s1 = sand.u32 1, %s7378_s3  }
0x12b7   : > { %s4152_s24 = scalar_lea.sflag [#allocation3], %s4151_s1 }
0x12b8   : > { %5271 = dma.done.wait (%p4776_p8), %s4152_s24, 768  }
0x12b9   : > { %5273 = vsyncadd (%p4776_p8), %s4152_s24, 4294966528  ;;  %s7380_s30 = sld [smem:[#allocation7_spill]]  ;;  %s7383_s27 = smov %s5280_s28 }
0x12ba   : > { %s7381_s20 = sld [smem:[#allocation6_spill]] }
0x12bb   : > { %s7382_s29 = sld [smem:[#allocation8_spill]] }
0x12bf   : > { %p28_p9 = scmp.ge.s32.totalorder %s7380_s30, 4  }
0x12c0   : > { %s7384_s28 = smov %s7381_s20 }
0x12c1   :  { %30 = sbr.rel (!%p28_p9) target bundleno = 9 (0x9), region = 154 }
0x12c6   :  { %4158 = vsyncpa [#allocation3], 1 }
0x12c7   :  { %4160 = vsyncpa [#allocation3 + $0x1], 1 }

</bundles_post_ra>
